<compile_context>
chip_gen: v7x
topology: tpu7x:2x2x1
jax: 0.10.0
libtpu: 0.0.40
codegen_flags: <defaults>
</compile_context>

<pallas_src>
import functools
import math

import jax
import jax.numpy as jnp
from jax import lax
from jax.experimental import pallas as pl
from jax.experimental.pallas import tpu as pltpu

_INV_SQRT2 = 1.0 / math.sqrt(2.0)


def _layernorm(x, g, b, eps=1e-5):
    mu = jnp.mean(x, axis=-1, keepdims=True)
    var = jnp.mean(jnp.square(x - mu), axis=-1, keepdims=True)
    return (x - mu) * lax.rsqrt(var + eps) * g + b


def _gelu_exact(x):
    return 0.5 * x * (1.0 + lax.erf(x * _INV_SQRT2))


# -----------------------------------------------------------------------------
# Shared math: this exact function runs BOTH inside the Pallas kernel (on loaded
# VMEM refs) and outside (reference A), guaranteeing the plumbing check is tight.
# -----------------------------------------------------------------------------
def _decoder_math(x_col, in_w, in_b, pos, wqkv, bqkv, wo, bo, w1, b1, w2, b2, ln,
                  *, n_heads, batch, seq, mxu_dtype):
    """x_col: (B*T, 1) f32.  Stacked per-layer weights carry a leading L axis.
    Returns (B*T, H) f32."""
    n_layers = wqkv.shape[0]
    H = in_w.shape[1]
    hd = H // n_heads

    # in_proj: GehringLinear(1, H) == broadcast mul-add (exact, K=1).
    x = x_col * in_w + in_b                                     # (rows, H)

    # Positional embeddings for rows grouped as [b0 t0..T-1, b1 t0..T-1, ...].
    pos_rows = jnp.concatenate([pos] * batch, axis=0) if batch > 1 else pos

    # Additive float attn_mask exactly as the module builds it: triu(ones, 1),
    # i.e. +1.0 on strictly-future positions, ADDED to the scaled scores
    # (PyTorch float-mask-add semantics — reproduced literally, not -inf).
    r = lax.broadcasted_iota(jnp.int32, (seq, seq), 0)
    c = lax.broadcasted_iota(jnp.int32, (seq, seq), 1)
    mask = (c > r).astype(jnp.float32)                          # (T, T)

    for l in range(n_layers):                                   # static unroll
        x = x + pos_rows

        # Fused QKV projection; 1/sqrt(hd) is already folded into the Q columns.
        qkv = jnp.dot(x.astype(mxu_dtype), wqkv[l],
                      preferred_element_type=jnp.float32) + bqkv[l]

        # Attention: static loops over batch elements and heads; each head's
        # context is accumulated directly through its slice of the output
        # projection (no lane concatenation of 8-wide head slices).
        attn_rows = []
        for b_i in range(batch):
            r0 = b_i * seq
            acc = None
            for h in range(n_heads):
                c0 = h * hd
                qh = qkv[r0:r0 + seq, c0:c0 + hd].astype(mxu_dtype)
                kh = qkv[r0:r0 + seq, H + c0:H + c0 + hd].astype(mxu_dtype)
                vh = qkv[r0:r0 + seq, 2 * H + c0:2 * H + c0 + hd].astype(mxu_dtype)
                s = lax.dot_general(qh, kh, (((1,), (1,)), ((), ())),
                                    preferred_element_type=jnp.float32)
                s = s + mask
                m = jnp.max(s, axis=-1, keepdims=True)
                p = jnp.exp(s - m)
                denom = jnp.sum(p, axis=-1, keepdims=True)
                ctx = jnp.dot(p.astype(mxu_dtype), vh,
                              preferred_element_type=jnp.float32) / denom
                proj = jnp.dot(ctx.astype(mxu_dtype), wo[l, c0:c0 + hd, :],
                               preferred_element_type=jnp.float32)
                acc = proj if acc is None else acc + proj
            attn_rows.append(acc)
        attn = attn_rows[0] if batch == 1 else jnp.concatenate(attn_rows, axis=0)

        x = x + attn + bo[l]
        xn = _layernorm(x, ln[l, 0:1], ln[l, 1:2])

        # Feed-forward: H -> 2H (exact GELU) -> H.
        h1 = jnp.dot(xn.astype(mxu_dtype), w1[l],
                     preferred_element_type=jnp.float32) + b1[l]
        h1 = _gelu_exact(h1)
        h2 = jnp.dot(h1.astype(mxu_dtype), w2[l],
                     preferred_element_type=jnp.float32) + b2[l]

        x = _layernorm(xn + h2, ln[l, 2:3], ln[l, 3:4])
    return x


# -----------------------------------------------------------------------------
# Pallas kernel: whole-array VMEM refs, single invocation (no grid).
# -----------------------------------------------------------------------------
def fused_decoder_kernel(x_ref, in_w_ref, in_b_ref, pos_ref,
                         wqkv_ref, bqkv_ref, wo_ref, bo_ref,
                         w1_ref, b1_ref, w2_ref, b2_ref, ln_ref,
                         o_ref, *, n_heads, batch, seq, mxu_dtype):
    y = _decoder_math(
        x_ref[...], in_w_ref[...], in_b_ref[...], pos_ref[...],
        wqkv_ref[...], bqkv_ref[...], wo_ref[...], bo_ref[...],
        w1_ref[...], b1_ref[...], w2_ref[...], b2_ref[...], ln_ref[...],
        n_heads=n_heads, batch=batch, seq=seq, mxu_dtype=mxu_dtype)
    # Note: with H=32 this is a masked (sub-128-lane) store; negligible here.
    o_ref[...] = y.astype(o_ref.dtype)


# -----------------------------------------------------------------------------
# Parameter stacking (leading L axis) + wrapper
# -----------------------------------------------------------------------------
def _stack_layer_params(layers, n_heads, mxu_dtype):
    H = layers[0]['wq'].shape[0]
    scale = 1.0 / math.sqrt(H // n_heads)      # fold 1/sqrt(hd) into Q at stack time

    def stack(fn):
        return jnp.stack([fn(lp) for lp in layers], axis=0)

    return {
        'wqkv': stack(lambda lp: jnp.concatenate(
            [lp['wq'] * scale, lp['wk'], lp['wv']], axis=1)).astype(mxu_dtype),
        'bqkv': stack(lambda lp: jnp.concatenate(
            [lp['bq'] * scale, lp['bk'], lp['bv']], axis=1)),
        'wo': stack(lambda lp: lp['wo']).astype(mxu_dtype),
        'bo': stack(lambda lp: lp['bo']),
        'w1': stack(lambda lp: lp['w1']).astype(mxu_dtype),
        'b1': stack(lambda lp: lp['b1']),
        'w2': stack(lambda lp: lp['w2']).astype(mxu_dtype),
        'b2': stack(lambda lp: lp['b2']),
        'ln': stack(lambda lp: jnp.concatenate(
            [lp['g1'], lp['beta1'], lp['g2'], lp['beta2']], axis=0)),
    }


def transformer_decoder_forward(X, params, n_heads, *, mxu_dtype=jnp.bfloat16):
    """X: (B, T, 1) float32.  Returns ((B, T, H), None) like the module."""
    B, T, _ = X.shape
    H = params['in_w'].shape[1]
    assert H % n_heads == 0, "n_heads must divide hidden_size"

    stk = _stack_layer_params(params['layers'], n_heads, mxu_dtype)
    pos = params['pos_weights'][1:T + 1]           # rows 1..T of the sinusoid table
    x_col = X.reshape(B * T, 1)

    kernel = functools.partial(fused_decoder_kernel, n_heads=n_heads,
                               batch=B, seq=T, mxu_dtype=mxu_dtype)

    vmem = pl.BlockSpec(memory_space=pltpu.MemorySpace.VMEM)   # whole array in VMEM
    out = pl.pallas_call(
        kernel,
        out_shape=jax.ShapeDtypeStruct((B * T, H), jnp.float32),
        in_specs=[vmem] * 13,
        out_specs=vmem,
    )(x_col, params['in_w'], params['in_b'], pos,
      stk['wqkv'], stk['bqkv'], stk['wo'], stk['bo'],
      stk['w1'], stk['b1'], stk['w2'], stk['b2'], stk['ln'])

    return out.reshape(B, T, H), None


# -----------------------------------------------------------------------------
# Deterministic synthetic parameters + sinusoidal embedding table
# -----------------------------------------------------------------------------
def get_embedding(n_embeds, embed_dim, padding_idx=0):
    max_ts, min_ts = 256.0, 1.0
    n_timescales = embed_dim // 2
    increment = math.log(max_ts / min_ts) / (n_timescales - 1)
    timescales = jnp.arange(n_timescales, dtype=jnp.float32)
    inv_timescales = min_ts * jnp.exp(timescales * -increment)
    positions = jnp.arange(n_embeds, dtype=jnp.float32)[:, None]
    scaled_time = positions * inv_timescales[None, :]
    signal = jnp.concatenate([jnp.sin(scaled_time), jnp.cos(scaled_time)], axis=1)
    if embed_dim % 2 == 1:
        signal = jnp.concatenate([signal, jnp.zeros((n_embeds, 1), jnp.float32)], axis=1)
    if padding_idx is not None:
        signal = signal.at[padding_idx, :].set(0.0)
    return signal


def make_params(key, hidden_size, n_layers):
    H, H2 = hidden_size, 2 * hidden_size
    keys = jax.random.split(key, 2 + n_layers)
    params = {
        'in_w': 0.5 * jax.random.normal(keys[0], (1, H), jnp.float32),
        'in_b': 0.1 * jax.random.normal(keys[1], (1, H), jnp.float32),
        'pos_weights': get_embedding(256, H),
        'layers': [],
    }
    for li in range(n_layers):
        lk = jax.random.split(keys[2 + li], 12)
        s = 1.0 / math.sqrt(H)
        params['layers'].append({
            'wq': s * jax.random.normal(lk[0], (H, H), jnp.float32),
            'bq': 0.05 * jax.random.normal(lk[1], (1, H), jnp.float32),
            'wk': s * jax.random.normal(lk[2], (H, H), jnp.float32),
            'bk': 0.05 * jax.random.normal(lk[3], (1, H), jnp.float32),
            'wv': s * jax.random.normal(lk[4], (H, H), jnp.float32),
            'bv': 0.05 * jax.random.normal(lk[5], (1, H), jnp.float32),
            'wo': s * jax.random.normal(lk[6], (H, H), jnp.float32),
            'bo': 0.05 * jax.random.normal(lk[7], (1, H), jnp.float32),
            'g1': jnp.ones((1, H), jnp.float32),
            'beta1': jnp.zeros((1, H), jnp.float32),
            'w1': s * jax.random.normal(lk[8], (H, H2), jnp.float32),
            'b1': 0.05 * jax.random.normal(lk[9], (1, H2), jnp.float32),
            'w2': (1.0 / math.sqrt(H2)) * jax.random.normal(lk[10], (H2, H), jnp.float32),
            'b2': 0.05 * jax.random.normal(lk[11], (1, H), jnp.float32),
            'g2': jnp.ones((1, H), jnp.float32),
            'beta2': jnp.zeros((1, H), jnp.float32),
        })
    return params


# -----------------------------------------------------------------------------
# Reference B: independently written, module-shaped (batched 3-D, separate Q/K/V,
# q scaled AFTER projection, softmax-then-matmul, head concat) at matched bf16
# matmul precision.  Checks semantics rather than plumbing.
# -----------------------------------------------------------------------------
def ref_forward_module(X, params, n_heads, mxu_dtype=jnp.bfloat16):
    B, T, _ = X.shape
    H = params['in_w'].shape[1]
    hd = H // n_heads
    scale = 1.0 / math.sqrt(hd)

    def mm(a, w):
        return jnp.dot(a.astype(mxu_dtype), w.astype(mxu_dtype),
                       preferred_element_type=jnp.float32)

    x = X * params['in_w'] + params['in_b']
    pos = params['pos_weights'][1:T + 1]
    idx = jnp.arange(T)
    mask = (idx[None, :] > idx[:, None]).astype(jnp.float32)   # additive +1 mask

    for lp in params['layers']:
        x = x + pos[None]
        q = (mm(x, lp['wq']) + lp['bq']) * scale
        k = mm(x, lp['wk']) + lp['bk']
        v = mm(x, lp['wv']) + lp['bv']
        qh = q.reshape(B, T, n_heads, hd).astype(mxu_dtype)
        kh = k.reshape(B, T, n_heads, hd).astype(mxu_dtype)
        vh = v.reshape(B, T, n_heads, hd).astype(mxu_dtype)
        s = jnp.einsum('bqhd,bkhd->bhqk', qh, kh,
                       preferred_element_type=jnp.float32) + mask
        p = jax.nn.softmax(s, axis=-1)
        ctx = jnp.einsum('bhqk,bkhd->bqhd', p.astype(mxu_dtype), vh,
                         preferred_element_type=jnp.float32).reshape(B, T, H)
        x = x + mm(ctx, lp['wo']) + lp['bo']
        x = _layernorm(x, lp['g1'], lp['beta1'])
        h1 = _gelu_exact(mm(x, lp['w1']) + lp['b1'])
        x = _layernorm(x + mm(h1, lp['w2']) + lp['b2'], lp['g2'], lp['beta2'])
    return x


# -----------------------------------------------------------------------------
# Main
# -----------------------------------------------------------------------------
if __name__ == "__main__":
    B, T, H, N_LAYERS, N_HEADS = 2, 8, 32, 2, 4

    key = jax.random.PRNGKey(0)
    k_x, k_p = jax.random.split(key)
    X = jax.random.normal(k_x, (B, T, 1), jnp.float32)
    params = make_params(k_p, H, N_LAYERS)

    fwd = jax.jit(functools.partial(transformer_decoder_forward, n_heads=N_HEADS))
    out, _ = fwd(X, params)
    out = jax.block_until_ready(out)
    assert out.shape == (B, T, H)

    # Check A (plumbing, tight): the EXACT same math graph run outside Pallas on the
    # same stacked/folded/bf16-cast weights.  Any diff is only Mosaic-vs-XLA
    # lowering noise (bf16 MXU products are exact; accumulation in f32).
    stk = _stack_layer_params(params['layers'], N_HEADS, jnp.bfloat16)
    pos = params['pos_weights'][1:T + 1]
    ref_a = _decoder_math(X.reshape(B * T, 1), params['in_w'], params['in_b'], pos,
                          stk['wqkv'], stk['bqkv'], stk['wo'], stk['bo'],
                          stk['w1'], stk['b1'], stk['w2'], stk['b2'], stk['ln'],
                          n_heads=N_HEADS, batch=B, seq=T,
                          mxu_dtype=jnp.bfloat16).reshape(B, T, H)
    ref_a = jax.block_until_ready(ref_a)
    err_a = jnp.max(jnp.abs(out - ref_a))
    assert jnp.allclose(out, ref_a, rtol=1e-3, atol=1e-3), (
        f"shared-math (plumbing) mismatch: max abs diff {err_a}")

    # Check B (semantics): independently written module-shaped reference at matched
    # bf16 matmul precision; tolerance absorbs formulation-order bf16 rounding
    # (fused-QKV / folded scale / post-matmul normalization / head accumulation).
    ref_b = jax.block_until_ready(ref_forward_module(X, params, N_HEADS, jnp.bfloat16))
    err_b = jnp.max(jnp.abs(out - ref_b))
    assert jnp.allclose(out, ref_b, rtol=5e-2, atol=5e-2), (
        f"module-shaped reference mismatch: max abs diff {err_b}")

    print("KERNEL_OK")
</pallas_src>

<mosaic_0001>
module attributes {stable_mosaic.version = 11 : i64} {
  func.func @fused_decoder_kernel(%arg0: memref<16x1xf32, #tpu.memory_space<vmem>>, %arg1: memref<1x32xf32, #tpu.memory_space<vmem>>, %arg2: memref<1x32xf32, #tpu.memory_space<vmem>>, %arg3: memref<8x32xf32, #tpu.memory_space<vmem>>, %arg4: memref<2x32x96xbf16, #tpu.memory_space<vmem>>, %arg5: memref<2x1x96xf32, #tpu.memory_space<vmem>>, %arg6: memref<2x32x32xbf16, #tpu.memory_space<vmem>>, %arg7: memref<2x1x32xf32, #tpu.memory_space<vmem>>, %arg8: memref<2x32x64xbf16, #tpu.memory_space<vmem>>, %arg9: memref<2x1x64xf32, #tpu.memory_space<vmem>>, %arg10: memref<2x64x32xbf16, #tpu.memory_space<vmem>>, %arg11: memref<2x1x32xf32, #tpu.memory_space<vmem>>, %arg12: memref<2x4x32xf32, #tpu.memory_space<vmem>>, %arg13: memref<16x32xf32, #tpu.memory_space<vmem>>) attributes {dimension_semantics = [], scalar_prefetch = 0 : i64, scratch_operands = 0 : i64, tpu.core_type = #tpu.core_type<tc>} {
    %c0 = arith.constant 0 : index
    %c0_0 = arith.constant 0 : index
    %0 = vector.load %arg0[%c0, %c0_0] : memref<16x1xf32, #tpu.memory_space<vmem>>, vector<16x1xf32>
    %c0_1 = arith.constant 0 : index
    %c0_2 = arith.constant 0 : index
    %1 = vector.load %arg1[%c0_1, %c0_2] : memref<1x32xf32, #tpu.memory_space<vmem>>, vector<1x32xf32>
    %c0_3 = arith.constant 0 : index
    %c0_4 = arith.constant 0 : index
    %2 = vector.load %arg2[%c0_3, %c0_4] : memref<1x32xf32, #tpu.memory_space<vmem>>, vector<1x32xf32>
    %c0_5 = arith.constant 0 : index
    %c0_6 = arith.constant 0 : index
    %3 = vector.load %arg3[%c0_5, %c0_6] : memref<8x32xf32, #tpu.memory_space<vmem>>, vector<8x32xf32>
    %c0_7 = arith.constant 0 : index
    %c0_8 = arith.constant 0 : index
    %c0_9 = arith.constant 0 : index
    %4 = vector.load %arg4[%c0_7, %c0_8, %c0_9] : memref<2x32x96xbf16, #tpu.memory_space<vmem>>, vector<2x32x96xbf16>
    %c0_10 = arith.constant 0 : index
    %c0_11 = arith.constant 0 : index
    %c0_12 = arith.constant 0 : index
    %5 = vector.load %arg5[%c0_10, %c0_11, %c0_12] : memref<2x1x96xf32, #tpu.memory_space<vmem>>, vector<2x1x96xf32>
    %c0_13 = arith.constant 0 : index
    %c0_14 = arith.constant 0 : index
    %c0_15 = arith.constant 0 : index
    %6 = vector.load %arg6[%c0_13, %c0_14, %c0_15] : memref<2x32x32xbf16, #tpu.memory_space<vmem>>, vector<2x32x32xbf16>
    %c0_16 = arith.constant 0 : index
    %c0_17 = arith.constant 0 : index
    %c0_18 = arith.constant 0 : index
    %7 = vector.load %arg7[%c0_16, %c0_17, %c0_18] : memref<2x1x32xf32, #tpu.memory_space<vmem>>, vector<2x1x32xf32>
    %c0_19 = arith.constant 0 : index
    %c0_20 = arith.constant 0 : index
    %c0_21 = arith.constant 0 : index
    %8 = vector.load %arg8[%c0_19, %c0_20, %c0_21] : memref<2x32x64xbf16, #tpu.memory_space<vmem>>, vector<2x32x64xbf16>
    %c0_22 = arith.constant 0 : index
    %c0_23 = arith.constant 0 : index
    %c0_24 = arith.constant 0 : index
    %9 = vector.load %arg9[%c0_22, %c0_23, %c0_24] : memref<2x1x64xf32, #tpu.memory_space<vmem>>, vector<2x1x64xf32>
    %c0_25 = arith.constant 0 : index
    %c0_26 = arith.constant 0 : index
    %c0_27 = arith.constant 0 : index
    %10 = vector.load %arg10[%c0_25, %c0_26, %c0_27] : memref<2x64x32xbf16, #tpu.memory_space<vmem>>, vector<2x64x32xbf16>
    %c0_28 = arith.constant 0 : index
    %c0_29 = arith.constant 0 : index
    %c0_30 = arith.constant 0 : index
    %11 = vector.load %arg11[%c0_28, %c0_29, %c0_30] : memref<2x1x32xf32, #tpu.memory_space<vmem>>, vector<2x1x32xf32>
    %c0_31 = arith.constant 0 : index
    %c0_32 = arith.constant 0 : index
    %c0_33 = arith.constant 0 : index
    %12 = vector.load %arg12[%c0_31, %c0_32, %c0_33] : memref<2x4x32xf32, #tpu.memory_space<vmem>>, vector<2x4x32xf32>
    %13 = vector.broadcast %0 : vector<16x1xf32> to vector<16x32xf32>
    %14 = vector.broadcast %1 : vector<1x32xf32> to vector<16x32xf32>
    %15 = arith.mulf %13, %14 : vector<16x32xf32>
    %16 = vector.broadcast %2 : vector<1x32xf32> to vector<16x32xf32>
    %17 = arith.addf %15, %16 : vector<16x32xf32>
    %18 = tpu.concatenate %3, %3 in 0 : vector<8x32xf32>, vector<8x32xf32> -> vector<16x32xf32>
    %19 = tpu.iota {dimensions = array<i32: 0>} : vector<8x8xi32>
    %20 = tpu.iota {dimensions = array<i32: 1>} : vector<8x8xi32>
    %21 = arith.cmpi sgt, %20, %19 : vector<8x8xi32>
    %22 = arith.extui %21 : vector<8x8xi1> to vector<8x8xi32>
    %23 = arith.sitofp %22 : vector<8x8xi32> to vector<8x8xf32>
    %24 = arith.addf %17, %18 : vector<16x32xf32>
    %25 = arith.truncf %24 : vector<16x32xf32> to vector<16x32xbf16>
    %26 = vector.extract_strided_slice %4 {offsets = [0, 0, 0], sizes = [1, 32, 96], strides = [1, 1, 1]} : vector<2x32x96xbf16> to vector<1x32x96xbf16>
    %27 = vector.shape_cast %26 : vector<1x32x96xbf16> to vector<32x96xbf16>
    %cst = arith.constant dense<0.000000e+00> : vector<16x96xf32>
    %28 = tpu.matmul %25, %27, %cst {dimension_numbers = #tpu.dot_dimension_numbers<[1], [0], [0], [1], [0, 0, 1, 1], [], []>} : vector<16x32xbf16>, vector<32x96xbf16>, vector<16x96xf32> -> vector<16x96xf32>
    %29 = vector.extract_strided_slice %5 {offsets = [0, 0, 0], sizes = [1, 1, 96], strides = [1, 1, 1]} : vector<2x1x96xf32> to vector<1x1x96xf32>
    %30 = vector.shape_cast %29 : vector<1x1x96xf32> to vector<1x96xf32>
    %31 = vector.broadcast %30 : vector<1x96xf32> to vector<16x96xf32>
    %32 = arith.addf %28, %31 : vector<16x96xf32>
    %33 = vector.extract_strided_slice %32 {offsets = [0, 0], sizes = [8, 8], strides = [1, 1]} : vector<16x96xf32> to vector<8x8xf32>
    %34 = arith.truncf %33 : vector<8x8xf32> to vector<8x8xbf16>
    %35 = vector.extract_strided_slice %32 {offsets = [0, 32], sizes = [8, 8], strides = [1, 1]} : vector<16x96xf32> to vector<8x8xf32>
    %36 = arith.truncf %35 : vector<8x8xf32> to vector<8x8xbf16>
    %37 = vector.extract_strided_slice %32 {offsets = [0, 64], sizes = [8, 8], strides = [1, 1]} : vector<16x96xf32> to vector<8x8xf32>
    %38 = arith.truncf %37 : vector<8x8xf32> to vector<8x8xbf16>
    %cst_34 = arith.constant dense<0.000000e+00> : vector<8x8xf32>
    %39 = tpu.matmul %34, %36, %cst_34 {dimension_numbers = #tpu.dot_dimension_numbers<[1], [1], [0], [0], [0, 0, 1, 0], [], []>} : vector<8x8xbf16>, vector<8x8xbf16>, vector<8x8xf32> -> vector<8x8xf32>
    %40 = arith.addf %39, %23 : vector<8x8xf32>
    %cst_35 = arith.constant dense<0xFF800000> : vector<8xf32>
    %41 = vector.multi_reduction <maximumf>, %40, %cst_35 [1] : vector<8x8xf32> to vector<8xf32>
    %42 = vector.shape_cast %41 : vector<8xf32> to vector<8x1xf32>
    %43 = vector.broadcast %42 : vector<8x1xf32> to vector<8x8xf32>
    %44 = arith.subf %40, %43 : vector<8x8xf32>
    %45 = math.exp %44 : vector<8x8xf32>
    %cst_36 = arith.constant dense<0.000000e+00> : vector<8xf32>
    %46 = vector.multi_reduction <add>, %45, %cst_36 [1] : vector<8x8xf32> to vector<8xf32>
    %47 = vector.shape_cast %46 : vector<8xf32> to vector<8x1xf32>
    %48 = arith.truncf %45 : vector<8x8xf32> to vector<8x8xbf16>
    %cst_37 = arith.constant dense<0.000000e+00> : vector<8x8xf32>
    %49 = tpu.matmul %48, %38, %cst_37 {dimension_numbers = #tpu.dot_dimension_numbers<[1], [0], [0], [1], [0, 0, 1, 1], [], []>} : vector<8x8xbf16>, vector<8x8xbf16>, vector<8x8xf32> -> vector<8x8xf32>
    %50 = vector.broadcast %47 : vector<8x1xf32> to vector<8x8xf32>
    %51 = arith.divf %49, %50 : vector<8x8xf32>
    %52 = arith.truncf %51 : vector<8x8xf32> to vector<8x8xbf16>
    %53 = vector.extract_strided_slice %6 {offsets = [0, 0, 0], sizes = [1, 8, 32], strides = [1, 1, 1]} : vector<2x32x32xbf16> to vector<1x8x32xbf16>
    %54 = vector.shape_cast %53 : vector<1x8x32xbf16> to vector<8x32xbf16>
    %cst_38 = arith.constant dense<0.000000e+00> : vector<8x32xf32>
    %55 = tpu.matmul %52, %54, %cst_38 {dimension_numbers = #tpu.dot_dimension_numbers<[1], [0], [0], [1], [0, 0, 1, 1], [], []>} : vector<8x8xbf16>, vector<8x32xbf16>, vector<8x32xf32> -> vector<8x32xf32>
    %56 = vector.extract_strided_slice %32 {offsets = [0, 8], sizes = [8, 8], strides = [1, 1]} : vector<16x96xf32> to vector<8x8xf32>
    %57 = arith.truncf %56 : vector<8x8xf32> to vector<8x8xbf16>
    %58 = vector.extract_strided_slice %32 {offsets = [0, 40], sizes = [8, 8], strides = [1, 1]} : vector<16x96xf32> to vector<8x8xf32>
    %59 = arith.truncf %58 : vector<8x8xf32> to vector<8x8xbf16>
    %60 = vector.extract_strided_slice %32 {offsets = [0, 72], sizes = [8, 8], strides = [1, 1]} : vector<16x96xf32> to vector<8x8xf32>
    %61 = arith.truncf %60 : vector<8x8xf32> to vector<8x8xbf16>
    %cst_39 = arith.constant dense<0.000000e+00> : vector<8x8xf32>
    %62 = tpu.matmul %57, %59, %cst_39 {dimension_numbers = #tpu.dot_dimension_numbers<[1], [1], [0], [0], [0, 0, 1, 0], [], []>} : vector<8x8xbf16>, vector<8x8xbf16>, vector<8x8xf32> -> vector<8x8xf32>
    %63 = arith.addf %62, %23 : vector<8x8xf32>
    %cst_40 = arith.constant dense<0xFF800000> : vector<8xf32>
    %64 = vector.multi_reduction <maximumf>, %63, %cst_40 [1] : vector<8x8xf32> to vector<8xf32>
    %65 = vector.shape_cast %64 : vector<8xf32> to vector<8x1xf32>
    %66 = vector.broadcast %65 : vector<8x1xf32> to vector<8x8xf32>
    %67 = arith.subf %63, %66 : vector<8x8xf32>
    %68 = math.exp %67 : vector<8x8xf32>
    %cst_41 = arith.constant dense<0.000000e+00> : vector<8xf32>
    %69 = vector.multi_reduction <add>, %68, %cst_41 [1] : vector<8x8xf32> to vector<8xf32>
    %70 = vector.shape_cast %69 : vector<8xf32> to vector<8x1xf32>
    %71 = arith.truncf %68 : vector<8x8xf32> to vector<8x8xbf16>
    %cst_42 = arith.constant dense<0.000000e+00> : vector<8x8xf32>
    %72 = tpu.matmul %71, %61, %cst_42 {dimension_numbers = #tpu.dot_dimension_numbers<[1], [0], [0], [1], [0, 0, 1, 1], [], []>} : vector<8x8xbf16>, vector<8x8xbf16>, vector<8x8xf32> -> vector<8x8xf32>
    %73 = vector.broadcast %70 : vector<8x1xf32> to vector<8x8xf32>
    %74 = arith.divf %72, %73 : vector<8x8xf32>
    %75 = arith.truncf %74 : vector<8x8xf32> to vector<8x8xbf16>
    %76 = vector.extract_strided_slice %6 {offsets = [0, 8, 0], sizes = [1, 8, 32], strides = [1, 1, 1]} : vector<2x32x32xbf16> to vector<1x8x32xbf16>
    %77 = vector.shape_cast %76 : vector<1x8x32xbf16> to vector<8x32xbf16>
    %cst_43 = arith.constant dense<0.000000e+00> : vector<8x32xf32>
    %78 = tpu.matmul %75, %77, %cst_43 {dimension_numbers = #tpu.dot_dimension_numbers<[1], [0], [0], [1], [0, 0, 1, 1], [], []>} : vector<8x8xbf16>, vector<8x32xbf16>, vector<8x32xf32> -> vector<8x32xf32>
    %79 = arith.addf %55, %78 : vector<8x32xf32>
    %80 = vector.extract_strided_slice %32 {offsets = [0, 16], sizes = [8, 8], strides = [1, 1]} : vector<16x96xf32> to vector<8x8xf32>
    %81 = arith.truncf %80 : vector<8x8xf32> to vector<8x8xbf16>
    %82 = vector.extract_strided_slice %32 {offsets = [0, 48], sizes = [8, 8], strides = [1, 1]} : vector<16x96xf32> to vector<8x8xf32>
    %83 = arith.truncf %82 : vector<8x8xf32> to vector<8x8xbf16>
    %84 = vector.extract_strided_slice %32 {offsets = [0, 80], sizes = [8, 8], strides = [1, 1]} : vector<16x96xf32> to vector<8x8xf32>
    %85 = arith.truncf %84 : vector<8x8xf32> to vector<8x8xbf16>
    %cst_44 = arith.constant dense<0.000000e+00> : vector<8x8xf32>
    %86 = tpu.matmul %81, %83, %cst_44 {dimension_numbers = #tpu.dot_dimension_numbers<[1], [1], [0], [0], [0, 0, 1, 0], [], []>} : vector<8x8xbf16>, vector<8x8xbf16>, vector<8x8xf32> -> vector<8x8xf32>
    %87 = arith.addf %86, %23 : vector<8x8xf32>
    %cst_45 = arith.constant dense<0xFF800000> : vector<8xf32>
    %88 = vector.multi_reduction <maximumf>, %87, %cst_45 [1] : vector<8x8xf32> to vector<8xf32>
    %89 = vector.shape_cast %88 : vector<8xf32> to vector<8x1xf32>
    %90 = vector.broadcast %89 : vector<8x1xf32> to vector<8x8xf32>
    %91 = arith.subf %87, %90 : vector<8x8xf32>
    %92 = math.exp %91 : vector<8x8xf32>
    %cst_46 = arith.constant dense<0.000000e+00> : vector<8xf32>
    %93 = vector.multi_reduction <add>, %92, %cst_46 [1] : vector<8x8xf32> to vector<8xf32>
    %94 = vector.shape_cast %93 : vector<8xf32> to vector<8x1xf32>
    %95 = arith.truncf %92 : vector<8x8xf32> to vector<8x8xbf16>
    %cst_47 = arith.constant dense<0.000000e+00> : vector<8x8xf32>
    %96 = tpu.matmul %95, %85, %cst_47 {dimension_numbers = #tpu.dot_dimension_numbers<[1], [0], [0], [1], [0, 0, 1, 1], [], []>} : vector<8x8xbf16>, vector<8x8xbf16>, vector<8x8xf32> -> vector<8x8xf32>
    %97 = vector.broadcast %94 : vector<8x1xf32> to vector<8x8xf32>
    %98 = arith.divf %96, %97 : vector<8x8xf32>
    %99 = arith.truncf %98 : vector<8x8xf32> to vector<8x8xbf16>
    %100 = vector.extract_strided_slice %6 {offsets = [0, 16, 0], sizes = [1, 8, 32], strides = [1, 1, 1]} : vector<2x32x32xbf16> to vector<1x8x32xbf16>
    %101 = vector.shape_cast %100 : vector<1x8x32xbf16> to vector<8x32xbf16>
    %cst_48 = arith.constant dense<0.000000e+00> : vector<8x32xf32>
    %102 = tpu.matmul %99, %101, %cst_48 {dimension_numbers = #tpu.dot_dimension_numbers<[1], [0], [0], [1], [0, 0, 1, 1], [], []>} : vector<8x8xbf16>, vector<8x32xbf16>, vector<8x32xf32> -> vector<8x32xf32>
    %103 = arith.addf %79, %102 : vector<8x32xf32>
    %104 = vector.extract_strided_slice %32 {offsets = [0, 24], sizes = [8, 8], strides = [1, 1]} : vector<16x96xf32> to vector<8x8xf32>
    %105 = arith.truncf %104 : vector<8x8xf32> to vector<8x8xbf16>
    %106 = vector.extract_strided_slice %32 {offsets = [0, 56], sizes = [8, 8], strides = [1, 1]} : vector<16x96xf32> to vector<8x8xf32>
    %107 = arith.truncf %106 : vector<8x8xf32> to vector<8x8xbf16>
    %108 = vector.extract_strided_slice %32 {offsets = [0, 88], sizes = [8, 8], strides = [1, 1]} : vector<16x96xf32> to vector<8x8xf32>
    %109 = arith.truncf %108 : vector<8x8xf32> to vector<8x8xbf16>
    %cst_49 = arith.constant dense<0.000000e+00> : vector<8x8xf32>
    %110 = tpu.matmul %105, %107, %cst_49 {dimension_numbers = #tpu.dot_dimension_numbers<[1], [1], [0], [0], [0, 0, 1, 0], [], []>} : vector<8x8xbf16>, vector<8x8xbf16>, vector<8x8xf32> -> vector<8x8xf32>
    %111 = arith.addf %110, %23 : vector<8x8xf32>
    %cst_50 = arith.constant dense<0xFF800000> : vector<8xf32>
    %112 = vector.multi_reduction <maximumf>, %111, %cst_50 [1] : vector<8x8xf32> to vector<8xf32>
    %113 = vector.shape_cast %112 : vector<8xf32> to vector<8x1xf32>
    %114 = vector.broadcast %113 : vector<8x1xf32> to vector<8x8xf32>
    %115 = arith.subf %111, %114 : vector<8x8xf32>
    %116 = math.exp %115 : vector<8x8xf32>
    %cst_51 = arith.constant dense<0.000000e+00> : vector<8xf32>
    %117 = vector.multi_reduction <add>, %116, %cst_51 [1] : vector<8x8xf32> to vector<8xf32>
    %118 = vector.shape_cast %117 : vector<8xf32> to vector<8x1xf32>
    %119 = arith.truncf %116 : vector<8x8xf32> to vector<8x8xbf16>
    %cst_52 = arith.constant dense<0.000000e+00> : vector<8x8xf32>
    %120 = tpu.matmul %119, %109, %cst_52 {dimension_numbers = #tpu.dot_dimension_numbers<[1], [0], [0], [1], [0, 0, 1, 1], [], []>} : vector<8x8xbf16>, vector<8x8xbf16>, vector<8x8xf32> -> vector<8x8xf32>
    %121 = vector.broadcast %118 : vector<8x1xf32> to vector<8x8xf32>
    %122 = arith.divf %120, %121 : vector<8x8xf32>
    %123 = arith.truncf %122 : vector<8x8xf32> to vector<8x8xbf16>
    %124 = vector.extract_strided_slice %6 {offsets = [0, 24, 0], sizes = [1, 8, 32], strides = [1, 1, 1]} : vector<2x32x32xbf16> to vector<1x8x32xbf16>
    %125 = vector.shape_cast %124 : vector<1x8x32xbf16> to vector<8x32xbf16>
    %cst_53 = arith.constant dense<0.000000e+00> : vector<8x32xf32>
    %126 = tpu.matmul %123, %125, %cst_53 {dimension_numbers = #tpu.dot_dimension_numbers<[1], [0], [0], [1], [0, 0, 1, 1], [], []>} : vector<8x8xbf16>, vector<8x32xbf16>, vector<8x32xf32> -> vector<8x32xf32>
    %127 = arith.addf %103, %126 : vector<8x32xf32>
    %128 = vector.extract_strided_slice %32 {offsets = [8, 0], sizes = [8, 8], strides = [1, 1]} : vector<16x96xf32> to vector<8x8xf32>
    %129 = arith.truncf %128 : vector<8x8xf32> to vector<8x8xbf16>
    %130 = vector.extract_strided_slice %32 {offsets = [8, 32], sizes = [8, 8], strides = [1, 1]} : vector<16x96xf32> to vector<8x8xf32>
    %131 = arith.truncf %130 : vector<8x8xf32> to vector<8x8xbf16>
    %132 = vector.extract_strided_slice %32 {offsets = [8, 64], sizes = [8, 8], strides = [1, 1]} : vector<16x96xf32> to vector<8x8xf32>
    %133 = arith.truncf %132 : vector<8x8xf32> to vector<8x8xbf16>
    %cst_54 = arith.constant dense<0.000000e+00> : vector<8x8xf32>
    %134 = tpu.matmul %129, %131, %cst_54 {dimension_numbers = #tpu.dot_dimension_numbers<[1], [1], [0], [0], [0, 0, 1, 0], [], []>} : vector<8x8xbf16>, vector<8x8xbf16>, vector<8x8xf32> -> vector<8x8xf32>
    %135 = arith.addf %134, %23 : vector<8x8xf32>
    %cst_55 = arith.constant dense<0xFF800000> : vector<8xf32>
    %136 = vector.multi_reduction <maximumf>, %135, %cst_55 [1] : vector<8x8xf32> to vector<8xf32>
    %137 = vector.shape_cast %136 : vector<8xf32> to vector<8x1xf32>
    %138 = vector.broadcast %137 : vector<8x1xf32> to vector<8x8xf32>
    %139 = arith.subf %135, %138 : vector<8x8xf32>
    %140 = math.exp %139 : vector<8x8xf32>
    %cst_56 = arith.constant dense<0.000000e+00> : vector<8xf32>
    %141 = vector.multi_reduction <add>, %140, %cst_56 [1] : vector<8x8xf32> to vector<8xf32>
    %142 = vector.shape_cast %141 : vector<8xf32> to vector<8x1xf32>
    %143 = arith.truncf %140 : vector<8x8xf32> to vector<8x8xbf16>
    %cst_57 = arith.constant dense<0.000000e+00> : vector<8x8xf32>
    %144 = tpu.matmul %143, %133, %cst_57 {dimension_numbers = #tpu.dot_dimension_numbers<[1], [0], [0], [1], [0, 0, 1, 1], [], []>} : vector<8x8xbf16>, vector<8x8xbf16>, vector<8x8xf32> -> vector<8x8xf32>
    %145 = vector.broadcast %142 : vector<8x1xf32> to vector<8x8xf32>
    %146 = arith.divf %144, %145 : vector<8x8xf32>
    %147 = arith.truncf %146 : vector<8x8xf32> to vector<8x8xbf16>
    %148 = vector.extract_strided_slice %6 {offsets = [0, 0, 0], sizes = [1, 8, 32], strides = [1, 1, 1]} : vector<2x32x32xbf16> to vector<1x8x32xbf16>
    %149 = vector.shape_cast %148 : vector<1x8x32xbf16> to vector<8x32xbf16>
    %cst_58 = arith.constant dense<0.000000e+00> : vector<8x32xf32>
    %150 = tpu.matmul %147, %149, %cst_58 {dimension_numbers = #tpu.dot_dimension_numbers<[1], [0], [0], [1], [0, 0, 1, 1], [], []>} : vector<8x8xbf16>, vector<8x32xbf16>, vector<8x32xf32> -> vector<8x32xf32>
    %151 = vector.extract_strided_slice %32 {offsets = [8, 8], sizes = [8, 8], strides = [1, 1]} : vector<16x96xf32> to vector<8x8xf32>
    %152 = arith.truncf %151 : vector<8x8xf32> to vector<8x8xbf16>
    %153 = vector.extract_strided_slice %32 {offsets = [8, 40], sizes = [8, 8], strides = [1, 1]} : vector<16x96xf32> to vector<8x8xf32>
    %154 = arith.truncf %153 : vector<8x8xf32> to vector<8x8xbf16>
    %155 = vector.extract_strided_slice %32 {offsets = [8, 72], sizes = [8, 8], strides = [1, 1]} : vector<16x96xf32> to vector<8x8xf32>
    %156 = arith.truncf %155 : vector<8x8xf32> to vector<8x8xbf16>
    %cst_59 = arith.constant dense<0.000000e+00> : vector<8x8xf32>
    %157 = tpu.matmul %152, %154, %cst_59 {dimension_numbers = #tpu.dot_dimension_numbers<[1], [1], [0], [0], [0, 0, 1, 0], [], []>} : vector<8x8xbf16>, vector<8x8xbf16>, vector<8x8xf32> -> vector<8x8xf32>
    %158 = arith.addf %157, %23 : vector<8x8xf32>
    %cst_60 = arith.constant dense<0xFF800000> : vector<8xf32>
    %159 = vector.multi_reduction <maximumf>, %158, %cst_60 [1] : vector<8x8xf32> to vector<8xf32>
    %160 = vector.shape_cast %159 : vector<8xf32> to vector<8x1xf32>
    %161 = vector.broadcast %160 : vector<8x1xf32> to vector<8x8xf32>
    %162 = arith.subf %158, %161 : vector<8x8xf32>
    %163 = math.exp %162 : vector<8x8xf32>
    %cst_61 = arith.constant dense<0.000000e+00> : vector<8xf32>
    %164 = vector.multi_reduction <add>, %163, %cst_61 [1] : vector<8x8xf32> to vector<8xf32>
    %165 = vector.shape_cast %164 : vector<8xf32> to vector<8x1xf32>
    %166 = arith.truncf %163 : vector<8x8xf32> to vector<8x8xbf16>
    %cst_62 = arith.constant dense<0.000000e+00> : vector<8x8xf32>
    %167 = tpu.matmul %166, %156, %cst_62 {dimension_numbers = #tpu.dot_dimension_numbers<[1], [0], [0], [1], [0, 0, 1, 1], [], []>} : vector<8x8xbf16>, vector<8x8xbf16>, vector<8x8xf32> -> vector<8x8xf32>
    %168 = vector.broadcast %165 : vector<8x1xf32> to vector<8x8xf32>
    %169 = arith.divf %167, %168 : vector<8x8xf32>
    %170 = arith.truncf %169 : vector<8x8xf32> to vector<8x8xbf16>
    %171 = vector.extract_strided_slice %6 {offsets = [0, 8, 0], sizes = [1, 8, 32], strides = [1, 1, 1]} : vector<2x32x32xbf16> to vector<1x8x32xbf16>
    %172 = vector.shape_cast %171 : vector<1x8x32xbf16> to vector<8x32xbf16>
    %cst_63 = arith.constant dense<0.000000e+00> : vector<8x32xf32>
    %173 = tpu.matmul %170, %172, %cst_63 {dimension_numbers = #tpu.dot_dimension_numbers<[1], [0], [0], [1], [0, 0, 1, 1], [], []>} : vector<8x8xbf16>, vector<8x32xbf16>, vector<8x32xf32> -> vector<8x32xf32>
    %174 = arith.addf %150, %173 : vector<8x32xf32>
    %175 = vector.extract_strided_slice %32 {offsets = [8, 16], sizes = [8, 8], strides = [1, 1]} : vector<16x96xf32> to vector<8x8xf32>
    %176 = arith.truncf %175 : vector<8x8xf32> to vector<8x8xbf16>
    %177 = vector.extract_strided_slice %32 {offsets = [8, 48], sizes = [8, 8], strides = [1, 1]} : vector<16x96xf32> to vector<8x8xf32>
    %178 = arith.truncf %177 : vector<8x8xf32> to vector<8x8xbf16>
    %179 = vector.extract_strided_slice %32 {offsets = [8, 80], sizes = [8, 8], strides = [1, 1]} : vector<16x96xf32> to vector<8x8xf32>
    %180 = arith.truncf %179 : vector<8x8xf32> to vector<8x8xbf16>
    %cst_64 = arith.constant dense<0.000000e+00> : vector<8x8xf32>
    %181 = tpu.matmul %176, %178, %cst_64 {dimension_numbers = #tpu.dot_dimension_numbers<[1], [1], [0], [0], [0, 0, 1, 0], [], []>} : vector<8x8xbf16>, vector<8x8xbf16>, vector<8x8xf32> -> vector<8x8xf32>
    %182 = arith.addf %181, %23 : vector<8x8xf32>
    %cst_65 = arith.constant dense<0xFF800000> : vector<8xf32>
    %183 = vector.multi_reduction <maximumf>, %182, %cst_65 [1] : vector<8x8xf32> to vector<8xf32>
    %184 = vector.shape_cast %183 : vector<8xf32> to vector<8x1xf32>
    %185 = vector.broadcast %184 : vector<8x1xf32> to vector<8x8xf32>
    %186 = arith.subf %182, %185 : vector<8x8xf32>
    %187 = math.exp %186 : vector<8x8xf32>
    %cst_66 = arith.constant dense<0.000000e+00> : vector<8xf32>
    %188 = vector.multi_reduction <add>, %187, %cst_66 [1] : vector<8x8xf32> to vector<8xf32>
    %189 = vector.shape_cast %188 : vector<8xf32> to vector<8x1xf32>
    %190 = arith.truncf %187 : vector<8x8xf32> to vector<8x8xbf16>
    %cst_67 = arith.constant dense<0.000000e+00> : vector<8x8xf32>
    %191 = tpu.matmul %190, %180, %cst_67 {dimension_numbers = #tpu.dot_dimension_numbers<[1], [0], [0], [1], [0, 0, 1, 1], [], []>} : vector<8x8xbf16>, vector<8x8xbf16>, vector<8x8xf32> -> vector<8x8xf32>
    %192 = vector.broadcast %189 : vector<8x1xf32> to vector<8x8xf32>
    %193 = arith.divf %191, %192 : vector<8x8xf32>
    %194 = arith.truncf %193 : vector<8x8xf32> to vector<8x8xbf16>
    %195 = vector.extract_strided_slice %6 {offsets = [0, 16, 0], sizes = [1, 8, 32], strides = [1, 1, 1]} : vector<2x32x32xbf16> to vector<1x8x32xbf16>
    %196 = vector.shape_cast %195 : vector<1x8x32xbf16> to vector<8x32xbf16>
    %cst_68 = arith.constant dense<0.000000e+00> : vector<8x32xf32>
    %197 = tpu.matmul %194, %196, %cst_68 {dimension_numbers = #tpu.dot_dimension_numbers<[1], [0], [0], [1], [0, 0, 1, 1], [], []>} : vector<8x8xbf16>, vector<8x32xbf16>, vector<8x32xf32> -> vector<8x32xf32>
    %198 = arith.addf %174, %197 : vector<8x32xf32>
    %199 = vector.extract_strided_slice %32 {offsets = [8, 24], sizes = [8, 8], strides = [1, 1]} : vector<16x96xf32> to vector<8x8xf32>
    %200 = arith.truncf %199 : vector<8x8xf32> to vector<8x8xbf16>
    %201 = vector.extract_strided_slice %32 {offsets = [8, 56], sizes = [8, 8], strides = [1, 1]} : vector<16x96xf32> to vector<8x8xf32>
    %202 = arith.truncf %201 : vector<8x8xf32> to vector<8x8xbf16>
    %203 = vector.extract_strided_slice %32 {offsets = [8, 88], sizes = [8, 8], strides = [1, 1]} : vector<16x96xf32> to vector<8x8xf32>
    %204 = arith.truncf %203 : vector<8x8xf32> to vector<8x8xbf16>
    %cst_69 = arith.constant dense<0.000000e+00> : vector<8x8xf32>
    %205 = tpu.matmul %200, %202, %cst_69 {dimension_numbers = #tpu.dot_dimension_numbers<[1], [1], [0], [0], [0, 0, 1, 0], [], []>} : vector<8x8xbf16>, vector<8x8xbf16>, vector<8x8xf32> -> vector<8x8xf32>
    %206 = arith.addf %205, %23 : vector<8x8xf32>
    %cst_70 = arith.constant dense<0xFF800000> : vector<8xf32>
    %207 = vector.multi_reduction <maximumf>, %206, %cst_70 [1] : vector<8x8xf32> to vector<8xf32>
    %208 = vector.shape_cast %207 : vector<8xf32> to vector<8x1xf32>
    %209 = vector.broadcast %208 : vector<8x1xf32> to vector<8x8xf32>
    %210 = arith.subf %206, %209 : vector<8x8xf32>
    %211 = math.exp %210 : vector<8x8xf32>
    %cst_71 = arith.constant dense<0.000000e+00> : vector<8xf32>
    %212 = vector.multi_reduction <add>, %211, %cst_71 [1] : vector<8x8xf32> to vector<8xf32>
    %213 = vector.shape_cast %212 : vector<8xf32> to vector<8x1xf32>
    %214 = arith.truncf %211 : vector<8x8xf32> to vector<8x8xbf16>
    %cst_72 = arith.constant dense<0.000000e+00> : vector<8x8xf32>
    %215 = tpu.matmul %214, %204, %cst_72 {dimension_numbers = #tpu.dot_dimension_numbers<[1], [0], [0], [1], [0, 0, 1, 1], [], []>} : vector<8x8xbf16>, vector<8x8xbf16>, vector<8x8xf32> -> vector<8x8xf32>
    %216 = vector.broadcast %213 : vector<8x1xf32> to vector<8x8xf32>
    %217 = arith.divf %215, %216 : vector<8x8xf32>
    %218 = arith.truncf %217 : vector<8x8xf32> to vector<8x8xbf16>
    %219 = vector.extract_strided_slice %6 {offsets = [0, 24, 0], sizes = [1, 8, 32], strides = [1, 1, 1]} : vector<2x32x32xbf16> to vector<1x8x32xbf16>
    %220 = vector.shape_cast %219 : vector<1x8x32xbf16> to vector<8x32xbf16>
    %cst_73 = arith.constant dense<0.000000e+00> : vector<8x32xf32>
    %221 = tpu.matmul %218, %220, %cst_73 {dimension_numbers = #tpu.dot_dimension_numbers<[1], [0], [0], [1], [0, 0, 1, 1], [], []>} : vector<8x8xbf16>, vector<8x32xbf16>, vector<8x32xf32> -> vector<8x32xf32>
    %222 = arith.addf %198, %221 : vector<8x32xf32>
    %223 = tpu.concatenate %127, %222 in 0 : vector<8x32xf32>, vector<8x32xf32> -> vector<16x32xf32>
    %224 = arith.addf %24, %223 : vector<16x32xf32>
    %225 = vector.extract_strided_slice %7 {offsets = [0, 0, 0], sizes = [1, 1, 32], strides = [1, 1, 1]} : vector<2x1x32xf32> to vector<1x1x32xf32>
    %226 = vector.shape_cast %225 : vector<1x1x32xf32> to vector<1x32xf32>
    %227 = vector.broadcast %226 : vector<1x32xf32> to vector<16x32xf32>
    %228 = arith.addf %224, %227 : vector<16x32xf32>
    %229 = vector.extract_strided_slice %12 {offsets = [0, 0, 0], sizes = [1, 1, 32], strides = [1, 1, 1]} : vector<2x4x32xf32> to vector<1x1x32xf32>
    %230 = vector.shape_cast %229 : vector<1x1x32xf32> to vector<1x32xf32>
    %231 = vector.extract_strided_slice %12 {offsets = [0, 1, 0], sizes = [1, 1, 32], strides = [1, 1, 1]} : vector<2x4x32xf32> to vector<1x1x32xf32>
    %232 = vector.shape_cast %231 : vector<1x1x32xf32> to vector<1x32xf32>
    %cst_74 = arith.constant dense<0.000000e+00> : vector<16xf32>
    %233 = vector.multi_reduction <add>, %228, %cst_74 [1] : vector<16x32xf32> to vector<16xf32>
    %234 = vector.shape_cast %233 : vector<16xf32> to vector<16x1xf32>
    %cst_75 = arith.constant 3.200000e+01 : f32
    %235 = vector.broadcast %cst_75 : f32 to vector<16x1xf32>
    %236 = arith.divf %234, %235 : vector<16x1xf32>
    %237 = vector.broadcast %236 : vector<16x1xf32> to vector<16x32xf32>
    %238 = arith.subf %228, %237 : vector<16x32xf32>
    %239 = arith.mulf %238, %238 : vector<16x32xf32>
    %cst_76 = arith.constant dense<0.000000e+00> : vector<16xf32>
    %240 = vector.multi_reduction <add>, %239, %cst_76 [1] : vector<16x32xf32> to vector<16xf32>
    %241 = vector.shape_cast %240 : vector<16xf32> to vector<16x1xf32>
    %cst_77 = arith.constant 3.200000e+01 : f32
    %242 = vector.broadcast %cst_77 : f32 to vector<16x1xf32>
    %243 = arith.divf %241, %242 : vector<16x1xf32>
    %244 = vector.broadcast %236 : vector<16x1xf32> to vector<16x32xf32>
    %245 = arith.subf %228, %244 : vector<16x32xf32>
    %cst_78 = arith.constant 9.99999974E-6 : f32
    %246 = vector.broadcast %cst_78 : f32 to vector<16x1xf32>
    %247 = arith.addf %243, %246 : vector<16x1xf32>
    %248 = math.rsqrt %247 : vector<16x1xf32>
    %249 = vector.broadcast %248 : vector<16x1xf32> to vector<16x32xf32>
    %250 = arith.mulf %245, %249 : vector<16x32xf32>
    %251 = vector.broadcast %230 : vector<1x32xf32> to vector<16x32xf32>
    %252 = arith.mulf %250, %251 : vector<16x32xf32>
    %253 = vector.broadcast %232 : vector<1x32xf32> to vector<16x32xf32>
    %254 = arith.addf %252, %253 : vector<16x32xf32>
    %255 = arith.truncf %254 : vector<16x32xf32> to vector<16x32xbf16>
    %256 = vector.extract_strided_slice %8 {offsets = [0, 0, 0], sizes = [1, 32, 64], strides = [1, 1, 1]} : vector<2x32x64xbf16> to vector<1x32x64xbf16>
    %257 = vector.shape_cast %256 : vector<1x32x64xbf16> to vector<32x64xbf16>
    %cst_79 = arith.constant dense<0.000000e+00> : vector<16x64xf32>
    %258 = tpu.matmul %255, %257, %cst_79 {dimension_numbers = #tpu.dot_dimension_numbers<[1], [0], [0], [1], [0, 0, 1, 1], [], []>} : vector<16x32xbf16>, vector<32x64xbf16>, vector<16x64xf32> -> vector<16x64xf32>
    %259 = vector.extract_strided_slice %9 {offsets = [0, 0, 0], sizes = [1, 1, 64], strides = [1, 1, 1]} : vector<2x1x64xf32> to vector<1x1x64xf32>
    %260 = vector.shape_cast %259 : vector<1x1x64xf32> to vector<1x64xf32>
    %261 = vector.broadcast %260 : vector<1x64xf32> to vector<16x64xf32>
    %262 = arith.addf %258, %261 : vector<16x64xf32>
    %cst_80 = arith.constant 5.000000e-01 : f32
    %263 = vector.broadcast %cst_80 : f32 to vector<16x64xf32>
    %264 = arith.mulf %263, %262 : vector<16x64xf32>
    %cst_81 = arith.constant 0.707106769 : f32
    %265 = vector.broadcast %cst_81 : f32 to vector<16x64xf32>
    %266 = arith.mulf %262, %265 : vector<16x64xf32>
    %267 = math.erf %266 : vector<16x64xf32>
    %cst_82 = arith.constant 1.000000e+00 : f32
    %268 = vector.broadcast %cst_82 : f32 to vector<16x64xf32>
    %269 = arith.addf %268, %267 : vector<16x64xf32>
    %270 = arith.mulf %264, %269 : vector<16x64xf32>
    %271 = arith.truncf %270 : vector<16x64xf32> to vector<16x64xbf16>
    %272 = vector.extract_strided_slice %10 {offsets = [0, 0, 0], sizes = [1, 64, 32], strides = [1, 1, 1]} : vector<2x64x32xbf16> to vector<1x64x32xbf16>
    %273 = vector.shape_cast %272 : vector<1x64x32xbf16> to vector<64x32xbf16>
    %cst_83 = arith.constant dense<0.000000e+00> : vector<16x32xf32>
    %274 = tpu.matmul %271, %273, %cst_83 {dimension_numbers = #tpu.dot_dimension_numbers<[1], [0], [0], [1], [0, 0, 1, 1], [], []>} : vector<16x64xbf16>, vector<64x32xbf16>, vector<16x32xf32> -> vector<16x32xf32>
    %275 = vector.extract_strided_slice %11 {offsets = [0, 0, 0], sizes = [1, 1, 32], strides = [1, 1, 1]} : vector<2x1x32xf32> to vector<1x1x32xf32>
    %276 = vector.shape_cast %275 : vector<1x1x32xf32> to vector<1x32xf32>
    %277 = vector.broadcast %276 : vector<1x32xf32> to vector<16x32xf32>
    %278 = arith.addf %274, %277 : vector<16x32xf32>
    %279 = arith.addf %254, %278 : vector<16x32xf32>
    %280 = vector.extract_strided_slice %12 {offsets = [0, 2, 0], sizes = [1, 1, 32], strides = [1, 1, 1]} : vector<2x4x32xf32> to vector<1x1x32xf32>
    %281 = vector.shape_cast %280 : vector<1x1x32xf32> to vector<1x32xf32>
    %282 = vector.extract_strided_slice %12 {offsets = [0, 3, 0], sizes = [1, 1, 32], strides = [1, 1, 1]} : vector<2x4x32xf32> to vector<1x1x32xf32>
    %283 = vector.shape_cast %282 : vector<1x1x32xf32> to vector<1x32xf32>
    %cst_84 = arith.constant dense<0.000000e+00> : vector<16xf32>
    %284 = vector.multi_reduction <add>, %279, %cst_84 [1] : vector<16x32xf32> to vector<16xf32>
    %285 = vector.shape_cast %284 : vector<16xf32> to vector<16x1xf32>
    %cst_85 = arith.constant 3.200000e+01 : f32
    %286 = vector.broadcast %cst_85 : f32 to vector<16x1xf32>
    %287 = arith.divf %285, %286 : vector<16x1xf32>
    %288 = vector.broadcast %287 : vector<16x1xf32> to vector<16x32xf32>
    %289 = arith.subf %279, %288 : vector<16x32xf32>
    %290 = arith.mulf %289, %289 : vector<16x32xf32>
    %cst_86 = arith.constant dense<0.000000e+00> : vector<16xf32>
    %291 = vector.multi_reduction <add>, %290, %cst_86 [1] : vector<16x32xf32> to vector<16xf32>
    %292 = vector.shape_cast %291 : vector<16xf32> to vector<16x1xf32>
    %cst_87 = arith.constant 3.200000e+01 : f32
    %293 = vector.broadcast %cst_87 : f32 to vector<16x1xf32>
    %294 = arith.divf %292, %293 : vector<16x1xf32>
    %295 = vector.broadcast %287 : vector<16x1xf32> to vector<16x32xf32>
    %296 = arith.subf %279, %295 : vector<16x32xf32>
    %cst_88 = arith.constant 9.99999974E-6 : f32
    %297 = vector.broadcast %cst_88 : f32 to vector<16x1xf32>
    %298 = arith.addf %294, %297 : vector<16x1xf32>
    %299 = math.rsqrt %298 : vector<16x1xf32>
    %300 = vector.broadcast %299 : vector<16x1xf32> to vector<16x32xf32>
    %301 = arith.mulf %296, %300 : vector<16x32xf32>
    %302 = vector.broadcast %281 : vector<1x32xf32> to vector<16x32xf32>
    %303 = arith.mulf %301, %302 : vector<16x32xf32>
    %304 = vector.broadcast %283 : vector<1x32xf32> to vector<16x32xf32>
    %305 = arith.addf %303, %304 : vector<16x32xf32>
    %306 = arith.addf %305, %18 : vector<16x32xf32>
    %307 = arith.truncf %306 : vector<16x32xf32> to vector<16x32xbf16>
    %308 = vector.extract_strided_slice %4 {offsets = [1, 0, 0], sizes = [1, 32, 96], strides = [1, 1, 1]} : vector<2x32x96xbf16> to vector<1x32x96xbf16>
    %309 = vector.shape_cast %308 : vector<1x32x96xbf16> to vector<32x96xbf16>
    %cst_89 = arith.constant dense<0.000000e+00> : vector<16x96xf32>
    %310 = tpu.matmul %307, %309, %cst_89 {dimension_numbers = #tpu.dot_dimension_numbers<[1], [0], [0], [1], [0, 0, 1, 1], [], []>} : vector<16x32xbf16>, vector<32x96xbf16>, vector<16x96xf32> -> vector<16x96xf32>
    %311 = vector.extract_strided_slice %5 {offsets = [1, 0, 0], sizes = [1, 1, 96], strides = [1, 1, 1]} : vector<2x1x96xf32> to vector<1x1x96xf32>
    %312 = vector.shape_cast %311 : vector<1x1x96xf32> to vector<1x96xf32>
    %313 = vector.broadcast %312 : vector<1x96xf32> to vector<16x96xf32>
    %314 = arith.addf %310, %313 : vector<16x96xf32>
    %315 = vector.extract_strided_slice %314 {offsets = [0, 0], sizes = [8, 8], strides = [1, 1]} : vector<16x96xf32> to vector<8x8xf32>
    %316 = arith.truncf %315 : vector<8x8xf32> to vector<8x8xbf16>
    %317 = vector.extract_strided_slice %314 {offsets = [0, 32], sizes = [8, 8], strides = [1, 1]} : vector<16x96xf32> to vector<8x8xf32>
    %318 = arith.truncf %317 : vector<8x8xf32> to vector<8x8xbf16>
    %319 = vector.extract_strided_slice %314 {offsets = [0, 64], sizes = [8, 8], strides = [1, 1]} : vector<16x96xf32> to vector<8x8xf32>
    %320 = arith.truncf %319 : vector<8x8xf32> to vector<8x8xbf16>
    %cst_90 = arith.constant dense<0.000000e+00> : vector<8x8xf32>
    %321 = tpu.matmul %316, %318, %cst_90 {dimension_numbers = #tpu.dot_dimension_numbers<[1], [1], [0], [0], [0, 0, 1, 0], [], []>} : vector<8x8xbf16>, vector<8x8xbf16>, vector<8x8xf32> -> vector<8x8xf32>
    %322 = arith.addf %321, %23 : vector<8x8xf32>
    %cst_91 = arith.constant dense<0xFF800000> : vector<8xf32>
    %323 = vector.multi_reduction <maximumf>, %322, %cst_91 [1] : vector<8x8xf32> to vector<8xf32>
    %324 = vector.shape_cast %323 : vector<8xf32> to vector<8x1xf32>
    %325 = vector.broadcast %324 : vector<8x1xf32> to vector<8x8xf32>
    %326 = arith.subf %322, %325 : vector<8x8xf32>
    %327 = math.exp %326 : vector<8x8xf32>
    %cst_92 = arith.constant dense<0.000000e+00> : vector<8xf32>
    %328 = vector.multi_reduction <add>, %327, %cst_92 [1] : vector<8x8xf32> to vector<8xf32>
    %329 = vector.shape_cast %328 : vector<8xf32> to vector<8x1xf32>
    %330 = arith.truncf %327 : vector<8x8xf32> to vector<8x8xbf16>
    %cst_93 = arith.constant dense<0.000000e+00> : vector<8x8xf32>
    %331 = tpu.matmul %330, %320, %cst_93 {dimension_numbers = #tpu.dot_dimension_numbers<[1], [0], [0], [1], [0, 0, 1, 1], [], []>} : vector<8x8xbf16>, vector<8x8xbf16>, vector<8x8xf32> -> vector<8x8xf32>
    %332 = vector.broadcast %329 : vector<8x1xf32> to vector<8x8xf32>
    %333 = arith.divf %331, %332 : vector<8x8xf32>
    %334 = arith.truncf %333 : vector<8x8xf32> to vector<8x8xbf16>
    %335 = vector.extract_strided_slice %6 {offsets = [1, 0, 0], sizes = [1, 8, 32], strides = [1, 1, 1]} : vector<2x32x32xbf16> to vector<1x8x32xbf16>
    %336 = vector.shape_cast %335 : vector<1x8x32xbf16> to vector<8x32xbf16>
    %cst_94 = arith.constant dense<0.000000e+00> : vector<8x32xf32>
    %337 = tpu.matmul %334, %336, %cst_94 {dimension_numbers = #tpu.dot_dimension_numbers<[1], [0], [0], [1], [0, 0, 1, 1], [], []>} : vector<8x8xbf16>, vector<8x32xbf16>, vector<8x32xf32> -> vector<8x32xf32>
    %338 = vector.extract_strided_slice %314 {offsets = [0, 8], sizes = [8, 8], strides = [1, 1]} : vector<16x96xf32> to vector<8x8xf32>
    %339 = arith.truncf %338 : vector<8x8xf32> to vector<8x8xbf16>
    %340 = vector.extract_strided_slice %314 {offsets = [0, 40], sizes = [8, 8], strides = [1, 1]} : vector<16x96xf32> to vector<8x8xf32>
    %341 = arith.truncf %340 : vector<8x8xf32> to vector<8x8xbf16>
    %342 = vector.extract_strided_slice %314 {offsets = [0, 72], sizes = [8, 8], strides = [1, 1]} : vector<16x96xf32> to vector<8x8xf32>
    %343 = arith.truncf %342 : vector<8x8xf32> to vector<8x8xbf16>
    %cst_95 = arith.constant dense<0.000000e+00> : vector<8x8xf32>
    %344 = tpu.matmul %339, %341, %cst_95 {dimension_numbers = #tpu.dot_dimension_numbers<[1], [1], [0], [0], [0, 0, 1, 0], [], []>} : vector<8x8xbf16>, vector<8x8xbf16>, vector<8x8xf32> -> vector<8x8xf32>
    %345 = arith.addf %344, %23 : vector<8x8xf32>
    %cst_96 = arith.constant dense<0xFF800000> : vector<8xf32>
    %346 = vector.multi_reduction <maximumf>, %345, %cst_96 [1] : vector<8x8xf32> to vector<8xf32>
    %347 = vector.shape_cast %346 : vector<8xf32> to vector<8x1xf32>
    %348 = vector.broadcast %347 : vector<8x1xf32> to vector<8x8xf32>
    %349 = arith.subf %345, %348 : vector<8x8xf32>
    %350 = math.exp %349 : vector<8x8xf32>
    %cst_97 = arith.constant dense<0.000000e+00> : vector<8xf32>
    %351 = vector.multi_reduction <add>, %350, %cst_97 [1] : vector<8x8xf32> to vector<8xf32>
    %352 = vector.shape_cast %351 : vector<8xf32> to vector<8x1xf32>
    %353 = arith.truncf %350 : vector<8x8xf32> to vector<8x8xbf16>
    %cst_98 = arith.constant dense<0.000000e+00> : vector<8x8xf32>
    %354 = tpu.matmul %353, %343, %cst_98 {dimension_numbers = #tpu.dot_dimension_numbers<[1], [0], [0], [1], [0, 0, 1, 1], [], []>} : vector<8x8xbf16>, vector<8x8xbf16>, vector<8x8xf32> -> vector<8x8xf32>
    %355 = vector.broadcast %352 : vector<8x1xf32> to vector<8x8xf32>
    %356 = arith.divf %354, %355 : vector<8x8xf32>
    %357 = arith.truncf %356 : vector<8x8xf32> to vector<8x8xbf16>
    %358 = vector.extract_strided_slice %6 {offsets = [1, 8, 0], sizes = [1, 8, 32], strides = [1, 1, 1]} : vector<2x32x32xbf16> to vector<1x8x32xbf16>
    %359 = vector.shape_cast %358 : vector<1x8x32xbf16> to vector<8x32xbf16>
    %cst_99 = arith.constant dense<0.000000e+00> : vector<8x32xf32>
    %360 = tpu.matmul %357, %359, %cst_99 {dimension_numbers = #tpu.dot_dimension_numbers<[1], [0], [0], [1], [0, 0, 1, 1], [], []>} : vector<8x8xbf16>, vector<8x32xbf16>, vector<8x32xf32> -> vector<8x32xf32>
    %361 = arith.addf %337, %360 : vector<8x32xf32>
    %362 = vector.extract_strided_slice %314 {offsets = [0, 16], sizes = [8, 8], strides = [1, 1]} : vector<16x96xf32> to vector<8x8xf32>
    %363 = arith.truncf %362 : vector<8x8xf32> to vector<8x8xbf16>
    %364 = vector.extract_strided_slice %314 {offsets = [0, 48], sizes = [8, 8], strides = [1, 1]} : vector<16x96xf32> to vector<8x8xf32>
    %365 = arith.truncf %364 : vector<8x8xf32> to vector<8x8xbf16>
    %366 = vector.extract_strided_slice %314 {offsets = [0, 80], sizes = [8, 8], strides = [1, 1]} : vector<16x96xf32> to vector<8x8xf32>
    %367 = arith.truncf %366 : vector<8x8xf32> to vector<8x8xbf16>
    %cst_100 = arith.constant dense<0.000000e+00> : vector<8x8xf32>
    %368 = tpu.matmul %363, %365, %cst_100 {dimension_numbers = #tpu.dot_dimension_numbers<[1], [1], [0], [0], [0, 0, 1, 0], [], []>} : vector<8x8xbf16>, vector<8x8xbf16>, vector<8x8xf32> -> vector<8x8xf32>
    %369 = arith.addf %368, %23 : vector<8x8xf32>
    %cst_101 = arith.constant dense<0xFF800000> : vector<8xf32>
    %370 = vector.multi_reduction <maximumf>, %369, %cst_101 [1] : vector<8x8xf32> to vector<8xf32>
    %371 = vector.shape_cast %370 : vector<8xf32> to vector<8x1xf32>
    %372 = vector.broadcast %371 : vector<8x1xf32> to vector<8x8xf32>
    %373 = arith.subf %369, %372 : vector<8x8xf32>
    %374 = math.exp %373 : vector<8x8xf32>
    %cst_102 = arith.constant dense<0.000000e+00> : vector<8xf32>
    %375 = vector.multi_reduction <add>, %374, %cst_102 [1] : vector<8x8xf32> to vector<8xf32>
    %376 = vector.shape_cast %375 : vector<8xf32> to vector<8x1xf32>
    %377 = arith.truncf %374 : vector<8x8xf32> to vector<8x8xbf16>
    %cst_103 = arith.constant dense<0.000000e+00> : vector<8x8xf32>
    %378 = tpu.matmul %377, %367, %cst_103 {dimension_numbers = #tpu.dot_dimension_numbers<[1], [0], [0], [1], [0, 0, 1, 1], [], []>} : vector<8x8xbf16>, vector<8x8xbf16>, vector<8x8xf32> -> vector<8x8xf32>
    %379 = vector.broadcast %376 : vector<8x1xf32> to vector<8x8xf32>
    %380 = arith.divf %378, %379 : vector<8x8xf32>
    %381 = arith.truncf %380 : vector<8x8xf32> to vector<8x8xbf16>
    %382 = vector.extract_strided_slice %6 {offsets = [1, 16, 0], sizes = [1, 8, 32], strides = [1, 1, 1]} : vector<2x32x32xbf16> to vector<1x8x32xbf16>
    %383 = vector.shape_cast %382 : vector<1x8x32xbf16> to vector<8x32xbf16>
    %cst_104 = arith.constant dense<0.000000e+00> : vector<8x32xf32>
    %384 = tpu.matmul %381, %383, %cst_104 {dimension_numbers = #tpu.dot_dimension_numbers<[1], [0], [0], [1], [0, 0, 1, 1], [], []>} : vector<8x8xbf16>, vector<8x32xbf16>, vector<8x32xf32> -> vector<8x32xf32>
    %385 = arith.addf %361, %384 : vector<8x32xf32>
    %386 = vector.extract_strided_slice %314 {offsets = [0, 24], sizes = [8, 8], strides = [1, 1]} : vector<16x96xf32> to vector<8x8xf32>
    %387 = arith.truncf %386 : vector<8x8xf32> to vector<8x8xbf16>
    %388 = vector.extract_strided_slice %314 {offsets = [0, 56], sizes = [8, 8], strides = [1, 1]} : vector<16x96xf32> to vector<8x8xf32>
    %389 = arith.truncf %388 : vector<8x8xf32> to vector<8x8xbf16>
    %390 = vector.extract_strided_slice %314 {offsets = [0, 88], sizes = [8, 8], strides = [1, 1]} : vector<16x96xf32> to vector<8x8xf32>
    %391 = arith.truncf %390 : vector<8x8xf32> to vector<8x8xbf16>
    %cst_105 = arith.constant dense<0.000000e+00> : vector<8x8xf32>
    %392 = tpu.matmul %387, %389, %cst_105 {dimension_numbers = #tpu.dot_dimension_numbers<[1], [1], [0], [0], [0, 0, 1, 0], [], []>} : vector<8x8xbf16>, vector<8x8xbf16>, vector<8x8xf32> -> vector<8x8xf32>
    %393 = arith.addf %392, %23 : vector<8x8xf32>
    %cst_106 = arith.constant dense<0xFF800000> : vector<8xf32>
    %394 = vector.multi_reduction <maximumf>, %393, %cst_106 [1] : vector<8x8xf32> to vector<8xf32>
    %395 = vector.shape_cast %394 : vector<8xf32> to vector<8x1xf32>
    %396 = vector.broadcast %395 : vector<8x1xf32> to vector<8x8xf32>
    %397 = arith.subf %393, %396 : vector<8x8xf32>
    %398 = math.exp %397 : vector<8x8xf32>
    %cst_107 = arith.constant dense<0.000000e+00> : vector<8xf32>
    %399 = vector.multi_reduction <add>, %398, %cst_107 [1] : vector<8x8xf32> to vector<8xf32>
    %400 = vector.shape_cast %399 : vector<8xf32> to vector<8x1xf32>
    %401 = arith.truncf %398 : vector<8x8xf32> to vector<8x8xbf16>
    %cst_108 = arith.constant dense<0.000000e+00> : vector<8x8xf32>
    %402 = tpu.matmul %401, %391, %cst_108 {dimension_numbers = #tpu.dot_dimension_numbers<[1], [0], [0], [1], [0, 0, 1, 1], [], []>} : vector<8x8xbf16>, vector<8x8xbf16>, vector<8x8xf32> -> vector<8x8xf32>
    %403 = vector.broadcast %400 : vector<8x1xf32> to vector<8x8xf32>
    %404 = arith.divf %402, %403 : vector<8x8xf32>
    %405 = arith.truncf %404 : vector<8x8xf32> to vector<8x8xbf16>
    %406 = vector.extract_strided_slice %6 {offsets = [1, 24, 0], sizes = [1, 8, 32], strides = [1, 1, 1]} : vector<2x32x32xbf16> to vector<1x8x32xbf16>
    %407 = vector.shape_cast %406 : vector<1x8x32xbf16> to vector<8x32xbf16>
    %cst_109 = arith.constant dense<0.000000e+00> : vector<8x32xf32>
    %408 = tpu.matmul %405, %407, %cst_109 {dimension_numbers = #tpu.dot_dimension_numbers<[1], [0], [0], [1], [0, 0, 1, 1], [], []>} : vector<8x8xbf16>, vector<8x32xbf16>, vector<8x32xf32> -> vector<8x32xf32>
    %409 = arith.addf %385, %408 : vector<8x32xf32>
    %410 = vector.extract_strided_slice %314 {offsets = [8, 0], sizes = [8, 8], strides = [1, 1]} : vector<16x96xf32> to vector<8x8xf32>
    %411 = arith.truncf %410 : vector<8x8xf32> to vector<8x8xbf16>
    %412 = vector.extract_strided_slice %314 {offsets = [8, 32], sizes = [8, 8], strides = [1, 1]} : vector<16x96xf32> to vector<8x8xf32>
    %413 = arith.truncf %412 : vector<8x8xf32> to vector<8x8xbf16>
    %414 = vector.extract_strided_slice %314 {offsets = [8, 64], sizes = [8, 8], strides = [1, 1]} : vector<16x96xf32> to vector<8x8xf32>
    %415 = arith.truncf %414 : vector<8x8xf32> to vector<8x8xbf16>
    %cst_110 = arith.constant dense<0.000000e+00> : vector<8x8xf32>
    %416 = tpu.matmul %411, %413, %cst_110 {dimension_numbers = #tpu.dot_dimension_numbers<[1], [1], [0], [0], [0, 0, 1, 0], [], []>} : vector<8x8xbf16>, vector<8x8xbf16>, vector<8x8xf32> -> vector<8x8xf32>
    %417 = arith.addf %416, %23 : vector<8x8xf32>
    %cst_111 = arith.constant dense<0xFF800000> : vector<8xf32>
    %418 = vector.multi_reduction <maximumf>, %417, %cst_111 [1] : vector<8x8xf32> to vector<8xf32>
    %419 = vector.shape_cast %418 : vector<8xf32> to vector<8x1xf32>
    %420 = vector.broadcast %419 : vector<8x1xf32> to vector<8x8xf32>
    %421 = arith.subf %417, %420 : vector<8x8xf32>
    %422 = math.exp %421 : vector<8x8xf32>
    %cst_112 = arith.constant dense<0.000000e+00> : vector<8xf32>
    %423 = vector.multi_reduction <add>, %422, %cst_112 [1] : vector<8x8xf32> to vector<8xf32>
    %424 = vector.shape_cast %423 : vector<8xf32> to vector<8x1xf32>
    %425 = arith.truncf %422 : vector<8x8xf32> to vector<8x8xbf16>
    %cst_113 = arith.constant dense<0.000000e+00> : vector<8x8xf32>
    %426 = tpu.matmul %425, %415, %cst_113 {dimension_numbers = #tpu.dot_dimension_numbers<[1], [0], [0], [1], [0, 0, 1, 1], [], []>} : vector<8x8xbf16>, vector<8x8xbf16>, vector<8x8xf32> -> vector<8x8xf32>
    %427 = vector.broadcast %424 : vector<8x1xf32> to vector<8x8xf32>
    %428 = arith.divf %426, %427 : vector<8x8xf32>
    %429 = arith.truncf %428 : vector<8x8xf32> to vector<8x8xbf16>
    %430 = vector.extract_strided_slice %6 {offsets = [1, 0, 0], sizes = [1, 8, 32], strides = [1, 1, 1]} : vector<2x32x32xbf16> to vector<1x8x32xbf16>
    %431 = vector.shape_cast %430 : vector<1x8x32xbf16> to vector<8x32xbf16>
    %cst_114 = arith.constant dense<0.000000e+00> : vector<8x32xf32>
    %432 = tpu.matmul %429, %431, %cst_114 {dimension_numbers = #tpu.dot_dimension_numbers<[1], [0], [0], [1], [0, 0, 1, 1], [], []>} : vector<8x8xbf16>, vector<8x32xbf16>, vector<8x32xf32> -> vector<8x32xf32>
    %433 = vector.extract_strided_slice %314 {offsets = [8, 8], sizes = [8, 8], strides = [1, 1]} : vector<16x96xf32> to vector<8x8xf32>
    %434 = arith.truncf %433 : vector<8x8xf32> to vector<8x8xbf16>
    %435 = vector.extract_strided_slice %314 {offsets = [8, 40], sizes = [8, 8], strides = [1, 1]} : vector<16x96xf32> to vector<8x8xf32>
    %436 = arith.truncf %435 : vector<8x8xf32> to vector<8x8xbf16>
    %437 = vector.extract_strided_slice %314 {offsets = [8, 72], sizes = [8, 8], strides = [1, 1]} : vector<16x96xf32> to vector<8x8xf32>
    %438 = arith.truncf %437 : vector<8x8xf32> to vector<8x8xbf16>
    %cst_115 = arith.constant dense<0.000000e+00> : vector<8x8xf32>
    %439 = tpu.matmul %434, %436, %cst_115 {dimension_numbers = #tpu.dot_dimension_numbers<[1], [1], [0], [0], [0, 0, 1, 0], [], []>} : vector<8x8xbf16>, vector<8x8xbf16>, vector<8x8xf32> -> vector<8x8xf32>
    %440 = arith.addf %439, %23 : vector<8x8xf32>
    %cst_116 = arith.constant dense<0xFF800000> : vector<8xf32>
    %441 = vector.multi_reduction <maximumf>, %440, %cst_116 [1] : vector<8x8xf32> to vector<8xf32>
    %442 = vector.shape_cast %441 : vector<8xf32> to vector<8x1xf32>
    %443 = vector.broadcast %442 : vector<8x1xf32> to vector<8x8xf32>
    %444 = arith.subf %440, %443 : vector<8x8xf32>
    %445 = math.exp %444 : vector<8x8xf32>
    %cst_117 = arith.constant dense<0.000000e+00> : vector<8xf32>
    %446 = vector.multi_reduction <add>, %445, %cst_117 [1] : vector<8x8xf32> to vector<8xf32>
    %447 = vector.shape_cast %446 : vector<8xf32> to vector<8x1xf32>
    %448 = arith.truncf %445 : vector<8x8xf32> to vector<8x8xbf16>
    %cst_118 = arith.constant dense<0.000000e+00> : vector<8x8xf32>
    %449 = tpu.matmul %448, %438, %cst_118 {dimension_numbers = #tpu.dot_dimension_numbers<[1], [0], [0], [1], [0, 0, 1, 1], [], []>} : vector<8x8xbf16>, vector<8x8xbf16>, vector<8x8xf32> -> vector<8x8xf32>
    %450 = vector.broadcast %447 : vector<8x1xf32> to vector<8x8xf32>
    %451 = arith.divf %449, %450 : vector<8x8xf32>
    %452 = arith.truncf %451 : vector<8x8xf32> to vector<8x8xbf16>
    %453 = vector.extract_strided_slice %6 {offsets = [1, 8, 0], sizes = [1, 8, 32], strides = [1, 1, 1]} : vector<2x32x32xbf16> to vector<1x8x32xbf16>
    %454 = vector.shape_cast %453 : vector<1x8x32xbf16> to vector<8x32xbf16>
    %cst_119 = arith.constant dense<0.000000e+00> : vector<8x32xf32>
    %455 = tpu.matmul %452, %454, %cst_119 {dimension_numbers = #tpu.dot_dimension_numbers<[1], [0], [0], [1], [0, 0, 1, 1], [], []>} : vector<8x8xbf16>, vector<8x32xbf16>, vector<8x32xf32> -> vector<8x32xf32>
    %456 = arith.addf %432, %455 : vector<8x32xf32>
    %457 = vector.extract_strided_slice %314 {offsets = [8, 16], sizes = [8, 8], strides = [1, 1]} : vector<16x96xf32> to vector<8x8xf32>
    %458 = arith.truncf %457 : vector<8x8xf32> to vector<8x8xbf16>
    %459 = vector.extract_strided_slice %314 {offsets = [8, 48], sizes = [8, 8], strides = [1, 1]} : vector<16x96xf32> to vector<8x8xf32>
    %460 = arith.truncf %459 : vector<8x8xf32> to vector<8x8xbf16>
    %461 = vector.extract_strided_slice %314 {offsets = [8, 80], sizes = [8, 8], strides = [1, 1]} : vector<16x96xf32> to vector<8x8xf32>
    %462 = arith.truncf %461 : vector<8x8xf32> to vector<8x8xbf16>
    %cst_120 = arith.constant dense<0.000000e+00> : vector<8x8xf32>
    %463 = tpu.matmul %458, %460, %cst_120 {dimension_numbers = #tpu.dot_dimension_numbers<[1], [1], [0], [0], [0, 0, 1, 0], [], []>} : vector<8x8xbf16>, vector<8x8xbf16>, vector<8x8xf32> -> vector<8x8xf32>
    %464 = arith.addf %463, %23 : vector<8x8xf32>
    %cst_121 = arith.constant dense<0xFF800000> : vector<8xf32>
    %465 = vector.multi_reduction <maximumf>, %464, %cst_121 [1] : vector<8x8xf32> to vector<8xf32>
    %466 = vector.shape_cast %465 : vector<8xf32> to vector<8x1xf32>
    %467 = vector.broadcast %466 : vector<8x1xf32> to vector<8x8xf32>
    %468 = arith.subf %464, %467 : vector<8x8xf32>
    %469 = math.exp %468 : vector<8x8xf32>
    %cst_122 = arith.constant dense<0.000000e+00> : vector<8xf32>
    %470 = vector.multi_reduction <add>, %469, %cst_122 [1] : vector<8x8xf32> to vector<8xf32>
    %471 = vector.shape_cast %470 : vector<8xf32> to vector<8x1xf32>
    %472 = arith.truncf %469 : vector<8x8xf32> to vector<8x8xbf16>
    %cst_123 = arith.constant dense<0.000000e+00> : vector<8x8xf32>
    %473 = tpu.matmul %472, %462, %cst_123 {dimension_numbers = #tpu.dot_dimension_numbers<[1], [0], [0], [1], [0, 0, 1, 1], [], []>} : vector<8x8xbf16>, vector<8x8xbf16>, vector<8x8xf32> -> vector<8x8xf32>
    %474 = vector.broadcast %471 : vector<8x1xf32> to vector<8x8xf32>
    %475 = arith.divf %473, %474 : vector<8x8xf32>
    %476 = arith.truncf %475 : vector<8x8xf32> to vector<8x8xbf16>
    %477 = vector.extract_strided_slice %6 {offsets = [1, 16, 0], sizes = [1, 8, 32], strides = [1, 1, 1]} : vector<2x32x32xbf16> to vector<1x8x32xbf16>
    %478 = vector.shape_cast %477 : vector<1x8x32xbf16> to vector<8x32xbf16>
    %cst_124 = arith.constant dense<0.000000e+00> : vector<8x32xf32>
    %479 = tpu.matmul %476, %478, %cst_124 {dimension_numbers = #tpu.dot_dimension_numbers<[1], [0], [0], [1], [0, 0, 1, 1], [], []>} : vector<8x8xbf16>, vector<8x32xbf16>, vector<8x32xf32> -> vector<8x32xf32>
    %480 = arith.addf %456, %479 : vector<8x32xf32>
    %481 = vector.extract_strided_slice %314 {offsets = [8, 24], sizes = [8, 8], strides = [1, 1]} : vector<16x96xf32> to vector<8x8xf32>
    %482 = arith.truncf %481 : vector<8x8xf32> to vector<8x8xbf16>
    %483 = vector.extract_strided_slice %314 {offsets = [8, 56], sizes = [8, 8], strides = [1, 1]} : vector<16x96xf32> to vector<8x8xf32>
    %484 = arith.truncf %483 : vector<8x8xf32> to vector<8x8xbf16>
    %485 = vector.extract_strided_slice %314 {offsets = [8, 88], sizes = [8, 8], strides = [1, 1]} : vector<16x96xf32> to vector<8x8xf32>
    %486 = arith.truncf %485 : vector<8x8xf32> to vector<8x8xbf16>
    %cst_125 = arith.constant dense<0.000000e+00> : vector<8x8xf32>
    %487 = tpu.matmul %482, %484, %cst_125 {dimension_numbers = #tpu.dot_dimension_numbers<[1], [1], [0], [0], [0, 0, 1, 0], [], []>} : vector<8x8xbf16>, vector<8x8xbf16>, vector<8x8xf32> -> vector<8x8xf32>
    %488 = arith.addf %487, %23 : vector<8x8xf32>
    %cst_126 = arith.constant dense<0xFF800000> : vector<8xf32>
    %489 = vector.multi_reduction <maximumf>, %488, %cst_126 [1] : vector<8x8xf32> to vector<8xf32>
    %490 = vector.shape_cast %489 : vector<8xf32> to vector<8x1xf32>
    %491 = vector.broadcast %490 : vector<8x1xf32> to vector<8x8xf32>
    %492 = arith.subf %488, %491 : vector<8x8xf32>
    %493 = math.exp %492 : vector<8x8xf32>
    %cst_127 = arith.constant dense<0.000000e+00> : vector<8xf32>
    %494 = vector.multi_reduction <add>, %493, %cst_127 [1] : vector<8x8xf32> to vector<8xf32>
    %495 = vector.shape_cast %494 : vector<8xf32> to vector<8x1xf32>
    %496 = arith.truncf %493 : vector<8x8xf32> to vector<8x8xbf16>
    %cst_128 = arith.constant dense<0.000000e+00> : vector<8x8xf32>
    %497 = tpu.matmul %496, %486, %cst_128 {dimension_numbers = #tpu.dot_dimension_numbers<[1], [0], [0], [1], [0, 0, 1, 1], [], []>} : vector<8x8xbf16>, vector<8x8xbf16>, vector<8x8xf32> -> vector<8x8xf32>
    %498 = vector.broadcast %495 : vector<8x1xf32> to vector<8x8xf32>
    %499 = arith.divf %497, %498 : vector<8x8xf32>
    %500 = arith.truncf %499 : vector<8x8xf32> to vector<8x8xbf16>
    %501 = vector.extract_strided_slice %6 {offsets = [1, 24, 0], sizes = [1, 8, 32], strides = [1, 1, 1]} : vector<2x32x32xbf16> to vector<1x8x32xbf16>
    %502 = vector.shape_cast %501 : vector<1x8x32xbf16> to vector<8x32xbf16>
    %cst_129 = arith.constant dense<0.000000e+00> : vector<8x32xf32>
    %503 = tpu.matmul %500, %502, %cst_129 {dimension_numbers = #tpu.dot_dimension_numbers<[1], [0], [0], [1], [0, 0, 1, 1], [], []>} : vector<8x8xbf16>, vector<8x32xbf16>, vector<8x32xf32> -> vector<8x32xf32>
    %504 = arith.addf %480, %503 : vector<8x32xf32>
    %505 = tpu.concatenate %409, %504 in 0 : vector<8x32xf32>, vector<8x32xf32> -> vector<16x32xf32>
    %506 = arith.addf %306, %505 : vector<16x32xf32>
    %507 = vector.extract_strided_slice %7 {offsets = [1, 0, 0], sizes = [1, 1, 32], strides = [1, 1, 1]} : vector<2x1x32xf32> to vector<1x1x32xf32>
    %508 = vector.shape_cast %507 : vector<1x1x32xf32> to vector<1x32xf32>
    %509 = vector.broadcast %508 : vector<1x32xf32> to vector<16x32xf32>
    %510 = arith.addf %506, %509 : vector<16x32xf32>
    %511 = vector.extract_strided_slice %12 {offsets = [1, 0, 0], sizes = [1, 1, 32], strides = [1, 1, 1]} : vector<2x4x32xf32> to vector<1x1x32xf32>
    %512 = vector.shape_cast %511 : vector<1x1x32xf32> to vector<1x32xf32>
    %513 = vector.extract_strided_slice %12 {offsets = [1, 1, 0], sizes = [1, 1, 32], strides = [1, 1, 1]} : vector<2x4x32xf32> to vector<1x1x32xf32>
    %514 = vector.shape_cast %513 : vector<1x1x32xf32> to vector<1x32xf32>
    %cst_130 = arith.constant dense<0.000000e+00> : vector<16xf32>
    %515 = vector.multi_reduction <add>, %510, %cst_130 [1] : vector<16x32xf32> to vector<16xf32>
    %516 = vector.shape_cast %515 : vector<16xf32> to vector<16x1xf32>
    %cst_131 = arith.constant 3.200000e+01 : f32
    %517 = vector.broadcast %cst_131 : f32 to vector<16x1xf32>
    %518 = arith.divf %516, %517 : vector<16x1xf32>
    %519 = vector.broadcast %518 : vector<16x1xf32> to vector<16x32xf32>
    %520 = arith.subf %510, %519 : vector<16x32xf32>
    %521 = arith.mulf %520, %520 : vector<16x32xf32>
    %cst_132 = arith.constant dense<0.000000e+00> : vector<16xf32>
    %522 = vector.multi_reduction <add>, %521, %cst_132 [1] : vector<16x32xf32> to vector<16xf32>
    %523 = vector.shape_cast %522 : vector<16xf32> to vector<16x1xf32>
    %cst_133 = arith.constant 3.200000e+01 : f32
    %524 = vector.broadcast %cst_133 : f32 to vector<16x1xf32>
    %525 = arith.divf %523, %524 : vector<16x1xf32>
    %526 = vector.broadcast %518 : vector<16x1xf32> to vector<16x32xf32>
    %527 = arith.subf %510, %526 : vector<16x32xf32>
    %cst_134 = arith.constant 9.99999974E-6 : f32
    %528 = vector.broadcast %cst_134 : f32 to vector<16x1xf32>
    %529 = arith.addf %525, %528 : vector<16x1xf32>
    %530 = math.rsqrt %529 : vector<16x1xf32>
    %531 = vector.broadcast %530 : vector<16x1xf32> to vector<16x32xf32>
    %532 = arith.mulf %527, %531 : vector<16x32xf32>
    %533 = vector.broadcast %512 : vector<1x32xf32> to vector<16x32xf32>
    %534 = arith.mulf %532, %533 : vector<16x32xf32>
    %535 = vector.broadcast %514 : vector<1x32xf32> to vector<16x32xf32>
    %536 = arith.addf %534, %535 : vector<16x32xf32>
    %537 = arith.truncf %536 : vector<16x32xf32> to vector<16x32xbf16>
    %538 = vector.extract_strided_slice %8 {offsets = [1, 0, 0], sizes = [1, 32, 64], strides = [1, 1, 1]} : vector<2x32x64xbf16> to vector<1x32x64xbf16>
    %539 = vector.shape_cast %538 : vector<1x32x64xbf16> to vector<32x64xbf16>
    %cst_135 = arith.constant dense<0.000000e+00> : vector<16x64xf32>
    %540 = tpu.matmul %537, %539, %cst_135 {dimension_numbers = #tpu.dot_dimension_numbers<[1], [0], [0], [1], [0, 0, 1, 1], [], []>} : vector<16x32xbf16>, vector<32x64xbf16>, vector<16x64xf32> -> vector<16x64xf32>
    %541 = vector.extract_strided_slice %9 {offsets = [1, 0, 0], sizes = [1, 1, 64], strides = [1, 1, 1]} : vector<2x1x64xf32> to vector<1x1x64xf32>
    %542 = vector.shape_cast %541 : vector<1x1x64xf32> to vector<1x64xf32>
    %543 = vector.broadcast %542 : vector<1x64xf32> to vector<16x64xf32>
    %544 = arith.addf %540, %543 : vector<16x64xf32>
    %cst_136 = arith.constant 5.000000e-01 : f32
    %545 = vector.broadcast %cst_136 : f32 to vector<16x64xf32>
    %546 = arith.mulf %545, %544 : vector<16x64xf32>
    %cst_137 = arith.constant 0.707106769 : f32
    %547 = vector.broadcast %cst_137 : f32 to vector<16x64xf32>
    %548 = arith.mulf %544, %547 : vector<16x64xf32>
    %549 = math.erf %548 : vector<16x64xf32>
    %cst_138 = arith.constant 1.000000e+00 : f32
    %550 = vector.broadcast %cst_138 : f32 to vector<16x64xf32>
    %551 = arith.addf %550, %549 : vector<16x64xf32>
    %552 = arith.mulf %546, %551 : vector<16x64xf32>
    %553 = arith.truncf %552 : vector<16x64xf32> to vector<16x64xbf16>
    %554 = vector.extract_strided_slice %10 {offsets = [1, 0, 0], sizes = [1, 64, 32], strides = [1, 1, 1]} : vector<2x64x32xbf16> to vector<1x64x32xbf16>
    %555 = vector.shape_cast %554 : vector<1x64x32xbf16> to vector<64x32xbf16>
    %cst_139 = arith.constant dense<0.000000e+00> : vector<16x32xf32>
    %556 = tpu.matmul %553, %555, %cst_139 {dimension_numbers = #tpu.dot_dimension_numbers<[1], [0], [0], [1], [0, 0, 1, 1], [], []>} : vector<16x64xbf16>, vector<64x32xbf16>, vector<16x32xf32> -> vector<16x32xf32>
    %557 = vector.extract_strided_slice %11 {offsets = [1, 0, 0], sizes = [1, 1, 32], strides = [1, 1, 1]} : vector<2x1x32xf32> to vector<1x1x32xf32>
    %558 = vector.shape_cast %557 : vector<1x1x32xf32> to vector<1x32xf32>
    %559 = vector.broadcast %558 : vector<1x32xf32> to vector<16x32xf32>
    %560 = arith.addf %556, %559 : vector<16x32xf32>
    %561 = arith.addf %536, %560 : vector<16x32xf32>
    %562 = vector.extract_strided_slice %12 {offsets = [1, 2, 0], sizes = [1, 1, 32], strides = [1, 1, 1]} : vector<2x4x32xf32> to vector<1x1x32xf32>
    %563 = vector.shape_cast %562 : vector<1x1x32xf32> to vector<1x32xf32>
    %564 = vector.extract_strided_slice %12 {offsets = [1, 3, 0], sizes = [1, 1, 32], strides = [1, 1, 1]} : vector<2x4x32xf32> to vector<1x1x32xf32>
    %565 = vector.shape_cast %564 : vector<1x1x32xf32> to vector<1x32xf32>
    %cst_140 = arith.constant dense<0.000000e+00> : vector<16xf32>
    %566 = vector.multi_reduction <add>, %561, %cst_140 [1] : vector<16x32xf32> to vector<16xf32>
    %567 = vector.shape_cast %566 : vector<16xf32> to vector<16x1xf32>
    %cst_141 = arith.constant 3.200000e+01 : f32
    %568 = vector.broadcast %cst_141 : f32 to vector<16x1xf32>
    %569 = arith.divf %567, %568 : vector<16x1xf32>
    %570 = vector.broadcast %569 : vector<16x1xf32> to vector<16x32xf32>
    %571 = arith.subf %561, %570 : vector<16x32xf32>
    %572 = arith.mulf %571, %571 : vector<16x32xf32>
    %cst_142 = arith.constant dense<0.000000e+00> : vector<16xf32>
    %573 = vector.multi_reduction <add>, %572, %cst_142 [1] : vector<16x32xf32> to vector<16xf32>
    %574 = vector.shape_cast %573 : vector<16xf32> to vector<16x1xf32>
    %cst_143 = arith.constant 3.200000e+01 : f32
    %575 = vector.broadcast %cst_143 : f32 to vector<16x1xf32>
    %576 = arith.divf %574, %575 : vector<16x1xf32>
    %577 = vector.broadcast %569 : vector<16x1xf32> to vector<16x32xf32>
    %578 = arith.subf %561, %577 : vector<16x32xf32>
    %cst_144 = arith.constant 9.99999974E-6 : f32
    %579 = vector.broadcast %cst_144 : f32 to vector<16x1xf32>
    %580 = arith.addf %576, %579 : vector<16x1xf32>
    %581 = math.rsqrt %580 : vector<16x1xf32>
    %582 = vector.broadcast %581 : vector<16x1xf32> to vector<16x32xf32>
    %583 = arith.mulf %578, %582 : vector<16x32xf32>
    %584 = vector.broadcast %563 : vector<1x32xf32> to vector<16x32xf32>
    %585 = arith.mulf %583, %584 : vector<16x32xf32>
    %586 = vector.broadcast %565 : vector<1x32xf32> to vector<16x32xf32>
    %587 = arith.addf %585, %586 : vector<16x32xf32>
    %c0_145 = arith.constant 0 : index
    %c0_146 = arith.constant 0 : index
    %588 = vector.load %arg13[%c0_145, %c0_146] : memref<16x32xf32, #tpu.memory_space<vmem>>, vector<16x32xf32>
    tpu.vector_store %arg13[%c0_145, %c0_146], %587 {strides = array<i32>} : memref<16x32xf32, #tpu.memory_space<vmem>>, vector<16x32xf32>,
    return
  }
}

</mosaic_0001>

<bundles_post_ra>
// kernel: transformer_decoder_forward.1
= control target key start
LH: loop header
LB: loop body
LE: loop exit
PB: predicated region body
PF: predicated region fallthrough
CT: control target
= control target key end

     0   :  { %v3945_v1 = vmov 0   ;;  %v3946_v4 = vmov 0.0   ;;  %vm3947_vm0 = vmmov 0   ;;  %s4714_s0 = inlined_call_operand.vmem [shape: f32[16,1], index: 0, kind: input, shape index: {}]   ;;  %s4715_s1 = inlined_call_operand.vmem [shape: f32[1,32], index: 1, kind: input, shape index: {}]   ;;  %s4716_s2 = inlined_call_operand.vmem [shape: f32[1,32], index: 2, kind: input, shape index: {}]   ;;  %s4717_s3 = inlined_call_operand.vmem [shape: f32[8,32], index: 3, kind: input, shape index: {}]   ;;  %s4718_s4 = inlined_call_operand.vmem [shape: bf16[2,32,96], index: 4, kind: input, shape index: {}]   ;;  %s4719_s5 = inlined_call_operand.vmem [shape: f32[2,1,96], index: 5, kind: input, shape index: {}]   ;;  %s4720_s6 = inlined_call_operand.vmem [shape: bf16[2,32,32], index: 6, kind: input, shape index: {}]   ;;  %s4721_s7 = inlined_call_operand.vmem [shape: f32[2,1,32], index: 7, kind: input, shape index: {}]   ;;  %s4722_s8 = inlined_call_operand.vmem [shape: bf16[2,32,64], index: 8, kind: input, shape index: {}]   ;;  %s4723_s9 = inlined_call_operand.vmem [shape: f32[2,1,64], index: 9, kind: input, shape index: {}]   ;;  %s4724_s10 = inlined_call_operand.vmem [shape: bf16[2,64,32], index: 10, kind: input, shape index: {}]   ;;  %s4725_s11 = inlined_call_operand.vmem [shape: f32[2,1,32], index: 11, kind: input, shape index: {}]   ;;  %s4726_s12 = inlined_call_operand.vmem [shape: f32[2,4,32], index: 12, kind: input, shape index: {}]   ;;  %s4727_s13 = inlined_call_operand.hbm [shape: f32[16,32], index: 13, kind: output, shape index: {}]  }
   0x1   :  { %v46_v0 = vld [vmem:[%s4714_s0] sm:$0xff]  ;;  %3815 = vset.pattern.permute.xlu0 %v3945_v1  ;;  %v47_v2 = vld [vmem:[%s4714_s0 + $0x8] sm:$0xff]  ;;  %3454 = vmatprep.subr.bf16.mxu1 %v3946_v4 }
   0x2   :  { %103 = vperm.xlu0 %3815, %v46_v0   ;;  %v3816_v3 = vld [vmem:[%s4718_s4] sm:$0xff]   ;;  %3468 = vmatprep.subr.bf16.mxu0 %v3946_v4  ;;  %v3817_v5 = vld [vmem:[%s4718_s4 + $0x8] sm:$0xff]  }
   0x3   :  { %3455 = vmatpush3.bf16.msra.mxu1 %v3816_v3  ;;  %3458 = vmatprep.mubr.msk.bf16.mxu1 %vm3947_vm0, %v3946_v4 }
   0x4   :  { %3456 = vmatprep.subr.bf16.mxu1 %v3946_v4  ;;  %3470 = vmatprep.mubr.msk.bf16.mxu0 %vm3947_vm0, %v3946_v4 }
   0x6   :  { %108 = vperm.xlu0 %3815, %v47_v2  }
   0x7   :  { %3457 = vmatpush3.bf16.msra.mxu1 %v3817_v5 }
   0x8   :  { %3462 = vmatprep.subr.bf16.mxu1 %v3946_v4 }
   0x9   :  { %18 = vsyncpa [#allocation3], 0  ;;  %v3255_v6 = vld [vmem:[%s4715_s1] ss:$0 sm:$0xff]  ;;  %vm155_vm1 = vcmask 261120   ;;  %s3948_s21 = smov 120   ;;  %v127_v31 = vlaneseq }
   0xa   :  { %v3256_v9 = vld [vmem:[%s4716_s2] ss:$0 sm:$0xff]  ;;  %s3949_s22 = smov 96   ;;  %s3950_s23 = smov 88   ;;  %vm204_vm2 = vcmask 64512   ;;  %vm266_vm4 = vcmask 1043456  }
   0xb   :  { %v50_v13 = vld [vmem:[%s4717_s3] sm:$0xff]  ;;  %v4094_v32 = vshrl.u32 %v127_v31, 7  ;;  %v130_v33 = vand.u32 127, %v127_v31  ;;  %s3951_s24 = smov 56   ;;  %s3952_s25 = smov 64   ;;  %vm1603_vm5 = vcmask 523264  }
   0xc   :  { %v3258_v18 = vld [vmem:[%s4719_s5] ss:$0 sm:$0xff]  ;;  %s3953_s26 = smov 80   ;;  %s3954_s27 = smov 112   ;;  %v62_v1 = vld [vmem:[%s4720_s6 + $0x4] sm:$0xf] }
   0xd   :  { %vm131_vm3 = vcmp.gt.s32.totalorder %v130_v33, %v4094_v32  ;;  %s3955_s28 = smov 72   ;;  %v61_v63 = vld [vmem:[%s4720_s6] sm:$0xf]  ;;  %v4137_v2 = vsel %vm266_vm4, %v62_v1, 0  ;;  %s3956_s0 = smov 48  }
   0xe   :  { %v4098_v34 = vsel %vm131_vm3, 1.0, %v3946_v4  ;;  %v4130_v0 = vsel %vm266_vm4, %v61_v63, 0  ;;  %s3957_s16 = smov 104   ;;  %s3958_s19 = smov 40  }
  0x81   :  { %v104_v7 = vpop.permute.xlu0 %103 }
  0x82   :  { %v117_v8 = vmul.f32 %v3255_v6, %v104_v7 }
  0x84   :  { %v125_v11 = vadd.f32 %v3256_v9, %v117_v8 }
  0x85   :  { %v109_v10 = vpop.permute.xlu0 %108 }
  0x86   :  { %v118_v12 = vmul.f32 %v3255_v6, %v109_v10  ;;  %v4061_v15 = vadd.f32 %v125_v11, %v50_v13 }
  0x88   :  { %v126_v14 = vadd.f32 %v3256_v9, %v118_v12 }
  0x8a   :  { %v4063_v16 = vadd.f32 %v126_v14, %v50_v13 }
  0x8c   :  { %v136_v17 = vpack.c.bf16 %v4063_v16, %v4061_v15 }
  0x8e   :  { %3459 = vmatmul.mubr.msk.bf16.vlgmr.msra.gmra.mrb[0].mxu1 %vm155_vm1, %v136_v17 }
  0x8f   :  { %3464 = vmatprep.mubr.msk.bf16.mxu1 %vm3947_vm0, %v3946_v4 }
 0x161   :  { %v193_v19 = vpop.f32.mrb[0].mxu1 }
 0x162   :  { %v194_v20 = vadd.f32 %v3258_v18, %v193_v19  ;;  %v3460_v21 = vpop.f32.mrb[1].mxu1 }
 0x163   :  { %v196_v22 = vpop.f32.mrb[2].mxu1 }
 0x164   :  { %v4073_v23 = vpack.c.bf16 %v194_v20, %v194_v20  ;;  %v4075_v24 = vadd.f32 %v3258_v18, %v196_v22  ;;  %v3461_v25 = vpop.f32.mrb[3].mxu1 }
 0x166   :  { %313 = vrot.lane.b32.xlu0 %v4073_v23, %s3948_s21  ;;  %202 = vrot.lane.b32.xlu1 %v4073_v23, %s3949_s22 }
 0x16a   :  { %315 = vrot.lane.b32.xlu1 %v4073_v23, %s3950_s23 }
 0x1d8   :  { %v203_v26 = vpop.permute.xlu1 %202  ;;  %v314_v30 = vpop.permute.xlu0 %313 }
 0x1d9   :  { %v209_v27 = vsel %vm204_vm2, %v203_v26, 0 }
 0x1da   :  { %3463 = vmatpush3.bf16.xpose.msra.mxu1 %v209_v27 }
 0x1db   :  { %3474 = vmatprep.subr.bf16.mxu1 %v3946_v4 }
 0x1dc   :  { %v316_v28 = vpop.permute.xlu1 %315 }
 0x1dd   :  { %v321_v29 = vsel %vm204_vm2, %v316_v28, 0 }
 0x1e1   :  { %3465 = vmatmul.mubr.msk.bf16.vlgmr.msra.gmra.mrb[4].mxu1 %vm204_vm2, %v4073_v23 }
 0x1e2   :  { %3475 = vmatpush3.bf16.xpose.msra.mxu1 %v321_v29  ;;  %3476 = vmatprep.mubr.msk.bf16.mxu1 %vm3947_vm0, %v3946_v4 }
 0x1e3   :  { %3486 = vmatprep.subr.bf16.mxu1 %v3946_v4 }
 0x1e9   :  { %3477 = vmatmul.mubr.msk.bf16.vlgmr.msra.gmra.mrb[8].mxu1 %vm204_vm2, %v314_v30 }
 0x1ea   :  { %3488 = vmatprep.mubr.msk.bf16.mxu1 %vm3947_vm0, %v3946_v4  ;;  %3487 = vmatpush3.bf16.msra.mxu1 %v4137_v2 }
 0x1eb   :  { %3498 = vmatprep.subr.bf16.mxu1 %v3946_v4 }
 0x2b4   :  { %v245_v35 = vpop.f32.mrb[4].mxu1 }
 0x2b5   :  { %v246_v36 = vadd.f32 %v4098_v34, %v245_v35  ;;  %v3466_v37 = vpop.f32.mrb[5].mxu1 }
 0x2b6   :  { %v248_v38 = vpop.f32.mrb[6].mxu1 }
 0x2b7   :  { %v3467_v39 = vpop.f32.mrb[7].mxu1  ;;  %v251_v40 = vsel %vm204_vm2, %v246_v36, -inf }
 0x2b8   :  { %252 = vmax.xlane.f32.xlu1 %v251_v40 }
 0x2bc   :  { %v357_v41 = vpop.f32.mrb[8].mxu1 }
 0x2bd   :  { %v358_v42 = vadd.f32 %v4098_v34, %v357_v41  ;;  %v3478_v43 = vpop.f32.mrb[9].mxu1 }
 0x2be   :  { %v360_v44 = vpop.f32.mrb[10].mxu1 }
 0x2bf   :  { %v3479_v45 = vpop.f32.mrb[11].mxu1  ;;  %v363_v46 = vsel %vm204_vm2, %v358_v42, -inf }
 0x2c0   :  { %364 = vmax.xlane.f32.xlu0 %v363_v46 }
 0x2c9   :  { %373 = vrot.lane.b32.xlu1 %v4073_v23, %s3951_s24 }
 0x2d6   :  { %261 = vrot.lane.b32.xlu0 %v4073_v23, %s3952_s25 }
 0x2da   :  { %518 = vrot.lane.b32.xlu0 %v4073_v23, %s3953_s26 }
 0x2de   :  { %516 = vrot.lane.b32.xlu0 %v4073_v23, %s3954_s27 }
 0x345   :  { %v253_v47 = vpop.xlane.xlu1 %252 }
 0x346   :  { %v254_v48 = vsub.f32 %v246_v36, %v253_v47 }
 0x348   :  { %v255_v49 = vmul.f32 1.442695, %v254_v48 }
 0x349   :  { %v374_v56 = vpop.permute.xlu1 %373 }
 0x34a   :  { %3832 = vpow2.f32 %v255_v49  ;;  %v379_v59 = vsel %vm266_vm4, %v374_v56, 0  ;;  %v63_v56 = vld [vmem:[%s4720_s6 + $0x8] sm:$0xf] }
 0x34d   :  { %v365_v50 = vpop.xlane.xlu0 %364 }
 0x34e   :  { %v366_v51 = vsub.f32 %v358_v42, %v365_v50 }
 0x350   :  { %v367_v52 = vmul.f32 1.442695, %v366_v51 }
 0x351   :  { %v262_v53 = vpop.permute.xlu0 %261 }
 0x352   :  { %3834 = vpow2.f32 %v367_v52  ;;  %v268_v54 = vsel %vm266_vm4, %v262_v53, 0 }
 0x353   :  { %3469 = vmatpush3.bf16.msra.mxu0 %v268_v54 }
 0x354   :  { %v3833_v55 = vpop.eup %3832  ;;  %3480 = vmatprep.subr.bf16.mxu0 %v3946_v4 }
 0x355   :  { %v257_v57 = vsel %vm204_vm2, %v3833_v55, 0.0  ;;  %v260_v58 = vpack.c.bf16 %v3833_v55, %v3833_v55  ;;  %v519_v3 = vpop.permute.xlu0 %518  ;;  %v4174_v55 = vpack.c.bf16 %v4075_v24, %v4075_v24 }
 0x356   :  { %258 = vadd.xlane.f32.xlu0 %v257_v57  ;;  %v524_v26 = vsel %vm204_vm2, %v519_v3, 0  ;;  %v4184_v57 = vsel %vm266_vm4, %v63_v56, 0 }
 0x357   :  { %3471 = vmatmul.mubr.msk.bf16.vlgmr.msra.gmra.mrb[0].mxu0 %vm204_vm2, %v260_v58 }
 0x358   :  { %3481 = vmatpush3.bf16.msra.mxu0 %v379_v59  ;;  %3482 = vmatprep.mubr.msk.bf16.mxu0 %vm3947_vm0, %v3946_v4 }
 0x359   :  { %3492 = vmatprep.subr.bf16.mxu0 %v3946_v4  ;;  %v517_v5 = vpop.permute.xlu0 %516 }
 0x35c   :  { %v3835_v60 = vpop.eup %3834 }
 0x35d   :  { %v369_v61 = vsel %vm204_vm2, %v3835_v60, 0.0  ;;  %v372_v62 = vpack.c.bf16 %v3835_v60, %v3835_v60 }
 0x35e   :  { %370 = vadd.xlane.f32.xlu1 %v369_v61 }
 0x35f   :  { %3483 = vmatmul.mubr.msk.bf16.vlgmr.msra.gmra.mrb[4].mxu0 %vm204_vm2, %v372_v62 }
 0x360   :  { %3494 = vmatprep.mubr.msk.bf16.mxu0 %vm3947_vm0, %v3946_v4  ;;  %3493 = vmatpush3.bf16.msra.mxu0 %v4130_v0 }
 0x361   :  { %3504 = vmatprep.subr.bf16.mxu0 %v3946_v4 }
 0x36c   :  { %676 = vrot.lane.b32.xlu0 %v4073_v23, %s3955_s28 }
 0x3e3   :  { %v259_v6 = vpop.xlane.xlu0 %258 }
 0x3e4   :  { %3836 = vrcp.f32 %v259_v6 }
 0x3e7   :  { %v677_v50 = vpop.permute.xlu0 %676 }
 0x3e8   :  { %v682_v53 = vsel %vm204_vm2, %v677_v50, 0 }
 0x3eb   :  { %v371_v7 = vpop.xlane.xlu1 %370 }
 0x3ec   :  { %3838 = vrcp.f32 %v371_v7 }
 0x3ee   :  { %v3837_v8 = vpop.eup %3836 }
 0x3f6   :  { %v3839_v17 = vpop.eup %3838 }
 0x42a   :  { %v304_v9 = vpop.f32.mrb[0].mxu0 }
 0x42b   :  { %v311_v10 = vmul.f32 %v3837_v8, %v304_v9  ;;  %v3472_v11 = vpop.f32.mrb[1].mxu0 }
 0x42c   :  { %v307_v12 = vpop.f32.mrb[2].mxu0 }
 0x42d   :  { %v312_v13 = vpack.c.bf16 %v311_v10, %v311_v10  ;;  %v3473_v14 = vpop.f32.mrb[3].mxu0 }
 0x42f   :  { %3495 = vmatmul.mubr.msk.bf16.vlgmr.msra.gmra.mrb[8].mxu0 %vm204_vm2, %v312_v13 }
 0x430   :  { %3506 = vmatprep.mubr.msk.bf16.mxu0 %vm3947_vm0, %v3946_v4 }
 0x432   :  { %v415_v18 = vpop.f32.mrb[4].mxu0 }
 0x433   :  { %v422_v19 = vmul.f32 %v3839_v17, %v415_v18  ;;  %v3484_v20 = vpop.f32.mrb[5].mxu0 }
 0x434   :  { %v418_v21 = vpop.f32.mrb[6].mxu0 }
 0x435   :  { %v423_v22 = vpack.c.bf16 %v422_v19, %v422_v19  ;;  %v3485_v25 = vpop.f32.mrb[7].mxu0 }
 0x437   :  { %3489 = vmatmul.mubr.msk.bf16.vlgmr.msra.gmra.mrb[12].mxu1 %vm204_vm2, %v423_v22 }
 0x438   :  { %3499 = vmatpush3.bf16.xpose.msra.mxu1 %v524_v26  ;;  %3500 = vmatprep.mubr.msk.bf16.mxu1 %vm3947_vm0, %v3946_v4 }
 0x439   :  { %3510 = vmatprep.subr.bf16.mxu1 %v3946_v4 }
 0x43f   :  { %3501 = vmatmul.mubr.msk.bf16.vlgmr.msra.gmra.mrb[16].mxu1 %vm204_vm2, %v517_v5 }
 0x440   :  { %3512 = vmatprep.mubr.msk.bf16.mxu1 %vm3947_vm0, %v3946_v4  ;;  %3511 = vmatpush3.bf16.msra.mxu1 %v4184_v57 }
 0x441   :  { %3522 = vmatprep.subr.bf16.mxu1 %v3946_v4 }
 0x502   :  { %v510_v27 = vpop.f32.mrb[8].mxu0 }
 0x503   :  { %v3496_v28 = vpop.f32.mrb[9].mxu0 }
 0x504   :  { %v513_v29 = vpop.f32.mrb[10].mxu0 }
 0x505   :  { %v3497_v30 = vpop.f32.mrb[11].mxu0 }
 0x50a   :  { %v464_v31 = vpop.f32.mrb[12].mxu1 }
 0x50b   :  { %v4153_v33 = vadd.f32 %v510_v27, %v464_v31  ;;  %v3490_v35 = vpop.f32.mrb[13].mxu1  ;;  %v64_v31 = vld [vmem:[%s4720_s6 + $0xc] sm:$0xf] }
 0x50c   :  { %v467_v36 = vpop.f32.mrb[14].mxu1  ;;  %v4225_v35 = vsel %vm266_vm4, %v64_v31, 0 }
 0x50d   :  { %v3491_v37 = vpop.f32.mrb[15].mxu1 }
 0x512   :  { %v560_v38 = vpop.f32.mrb[16].mxu1 }
 0x513   :  { %v561_v39 = vadd.f32 %v4098_v34, %v560_v38  ;;  %v3502_v40 = vpop.f32.mrb[17].mxu1 }
 0x514   :  { %v563_v41 = vpop.f32.mrb[18].mxu1 }
 0x515   :  { %v3503_v42 = vpop.f32.mrb[19].mxu1  ;;  %v566_v43 = vsel %vm204_vm2, %v561_v39, -inf }
 0x516   :  { %567 = vmax.xlane.f32.xlu1 %v566_v43 }
 0x527   :  { %576 = vrot.lane.b32.xlu1 %v4073_v23, %s3956_s0 }
 0x52b   :  { %674 = vrot.lane.b32.xlu1 %v4073_v23, %s3957_s16 }
 0x5a3   :  { %v568_v44 = vpop.xlane.xlu1 %567 }
 0x5a4   :  { %v569_v45 = vsub.f32 %v561_v39, %v568_v44 }
 0x5a6   :  { %v570_v46 = vmul.f32 1.442695, %v569_v45 }
 0x5a7   :  { %v577_v47 = vpop.permute.xlu1 %576 }
 0x5a8   :  { %3840 = vpow2.f32 %v570_v46  ;;  %v582_v48 = vsel %vm266_vm4, %v577_v47, 0 }
 0x5a9   :  { %3505 = vmatpush3.bf16.msra.mxu0 %v582_v48 }
 0x5aa   :  { %3516 = vmatprep.subr.bf16.mxu0 %v3946_v4 }
 0x5ab   :  { %v675_v54 = vpop.permute.xlu1 %674 }
 0x5b2   :  { %v3841_v49 = vpop.eup %3840 }
 0x5b3   :  { %v572_v51 = vsel %vm204_vm2, %v3841_v49, 0.0  ;;  %v575_v52 = vpack.c.bf16 %v3841_v49, %v3841_v49 }
 0x5b4   :  { %573 = vadd.xlane.f32.xlu1 %v572_v51 }
 0x5b5   :  { %3507 = vmatmul.mubr.msk.bf16.vlgmr.msra.gmra.mrb[12].mxu0 %vm204_vm2, %v575_v52 }
 0x5b6   :  { %3517 = vmatpush3.bf16.xpose.msra.mxu0 %v682_v53  ;;  %3518 = vmatprep.mubr.msk.bf16.mxu0 %vm3947_vm0, %v3946_v4 }
 0x5b7   :  { %3528 = vmatprep.subr.bf16.mxu0 %v3946_v4 }
 0x5bd   :  { %3519 = vmatmul.mubr.msk.bf16.vlgmr.msra.gmra.mrb[16].mxu0 %vm204_vm2, %v675_v54 }
 0x5be   :  { %3530 = vmatprep.mubr.msk.bf16.mxu0 %vm3947_vm0, %v3946_v4  ;;  %3529 = vmatpush3.bf16.msra.mxu0 %v4225_v35 }
 0x5bf   :  { %3540 = vmatprep.subr.bf16.mxu0 %v3946_v4 }
 0x5c5   :  { %834 = vrot.lane.b32.xlu1 %v4174_v55, %s3949_s22 }
 0x5c9   :  { %945 = vrot.lane.b32.xlu1 %v4174_v55, %s3950_s23 }
 0x641   :  { %v574_v58 = vpop.xlane.xlu1 %573 }
 0x642   :  { %3842 = vrcp.f32 %v574_v58 }
 0x645   :  { %v835_v18 = vpop.permute.xlu1 %834 }
 0x649   :  { %v946_v21 = vpop.permute.xlu1 %945 }
 0x64a   :  { %v951_v22 = vsel %vm204_vm2, %v946_v21, 0 }
 0x64c   :  { %v3843_v24 = vpop.eup %3842 }
 0x688   :  { %v618_v59 = vpop.f32.mrb[12].mxu0 }
 0x689   :  { %v625_v60 = vmul.f32 %v3843_v24, %v618_v59  ;;  %v3508_v61 = vpop.f32.mrb[13].mxu0 }
 0x68a   :  { %v621_v62 = vpop.f32.mrb[14].mxu0 }
 0x68b   :  { %v626_v63 = vpack.c.bf16 %v625_v60, %v625_v60  ;;  %v3509_v1 = vpop.f32.mrb[15].mxu0 }
 0x68d   :  { %3513 = vmatmul.mubr.msk.bf16.vlgmr.msra.gmra.mrb[20].mxu1 %vm204_vm2, %v626_v63 }
 0x68e   :  { %3524 = vmatprep.mubr.msk.bf16.mxu1 %vm3947_vm0, %v3946_v4 }
 0x690   :  { %v718_v3 = vpop.f32.mrb[16].mxu0 }
 0x691   :  { %v719_v5 = vadd.f32 %v4098_v34, %v718_v3  ;;  %v3520_v6 = vpop.f32.mrb[17].mxu0 }
 0x692   :  { %v721_v7 = vpop.f32.mrb[18].mxu0 }
 0x693   :  { %v3521_v8 = vpop.f32.mrb[19].mxu0  ;;  %v724_v9 = vsel %vm204_vm2, %v719_v5, -inf }
 0x694   :  { %725 = vmax.xlane.f32.xlu0 %v724_v9 }
 0x6aa   :  { %734 = vrot.lane.b32.xlu0 %v4073_v23, %s3958_s19  ;;  %v840_v23 = vsel %vm204_vm2, %v835_v18, 0 }
 0x6ae   :  { %943 = vrot.lane.b32.xlu0 %v4174_v55, %s3948_s21 }
 0x721   :  { %v726_v10 = vpop.xlane.xlu0 %725 }
 0x722   :  { %v727_v11 = vsub.f32 %v719_v5, %v726_v10 }
 0x724   :  { %v728_v12 = vmul.f32 1.442695, %v727_v11 }
 0x725   :  { %v735_v13 = vpop.permute.xlu0 %734 }
 0x726   :  { %3844 = vpow2.f32 %v728_v12  ;;  %v740_v14 = vsel %vm266_vm4, %v735_v13, 0 }
 0x727   :  { %3523 = vmatpush3.bf16.msra.mxu1 %v740_v14 }
 0x728   :  { %3534 = vmatprep.subr.bf16.mxu1 %v3946_v4 }
 0x729   :  { %v944_v25 = vpop.permute.xlu0 %943 }
 0x730   :  { %v3845_v17 = vpop.eup %3844 }
 0x731   :  { %v730_v19 = vsel %vm204_vm2, %v3845_v17, 0.0  ;;  %v733_v20 = vpack.c.bf16 %v3845_v17, %v3845_v17 }
 0x732   :  { %731 = vadd.xlane.f32.xlu1 %v730_v19 }
 0x733   :  { %3525 = vmatmul.mubr.msk.bf16.vlgmr.msra.gmra.mrb[24].mxu1 %vm204_vm2, %v733_v20 }
 0x734   :  { %3535 = vmatpush3.bf16.xpose.msra.mxu1 %v840_v23  ;;  %3536 = vmatprep.mubr.msk.bf16.mxu1 %vm3947_vm0, %v3946_v4 }
 0x735   :  { %3546 = vmatprep.subr.bf16.mxu1 %v3946_v4 }
 0x73b   :  { %3537 = vmatmul.mubr.msk.bf16.vlgmr.msra.gmra.mrb[28].mxu1 %vm204_vm2, %v4174_v55 }
 0x73c   :  { %3547 = vmatpush3.bf16.xpose.msra.mxu1 %v951_v22  ;;  %3548 = vmatprep.mubr.msk.bf16.mxu1 %vm3947_vm0, %v3946_v4 }
 0x73d   :  { %3558 = vmatprep.subr.bf16.mxu1 %v3946_v4 }
 0x743   :  { %892 = vrot.lane.b32.xlu1 %v4174_v55, %s3952_s25  ;;  %3549 = vmatmul.mubr.msk.bf16.vlgmr.msra.gmra.mrb[32].mxu1 %vm204_vm2, %v944_v25 }
 0x744   :  { %3559 = vmatpush3.bf16.msra.mxu1 %v4137_v2  ;;  %3560 = vmatprep.mubr.msk.bf16.mxu1 %vm3947_vm0, %v3946_v4 }
 0x745   :  { %3570 = vmatprep.subr.bf16.mxu1 %v3946_v4 }
 0x760   :  { %v667_v26 = vpop.f32.mrb[20].mxu1 }
 0x761   :  { %v4219_v27 = vadd.f32 %v667_v26, %v4153_v33  ;;  %v3514_v28 = vpop.f32.mrb[21].mxu1 }
 0x762   :  { %v670_v29 = vpop.f32.mrb[22].mxu1 }
 0x763   :  { %v3515_v30 = vpop.f32.mrb[23].mxu1 }
 0x7bf   :  { %v732_v2 = vpop.xlane.xlu1 %731 }
 0x7c0   :  { %3846 = vrcp.f32 %v732_v2 }
 0x7c3   :  { %v893_v39 = vpop.permute.xlu1 %892 }
 0x7c4   :  { %v898_v43 = vsel %vm266_vm4, %v893_v39, 0 }
 0x7ca   :  { %v3847_v36 = vpop.eup %3846 }
 0x806   :  { %v776_v37 = vpop.f32.mrb[24].mxu1 }
 0x807   :  { %v783_v33 = vmul.f32 %v3847_v36, %v776_v37  ;;  %v3526_v38 = vpop.f32.mrb[25].mxu1 }
 0x808   :  { %v779_v40 = vpop.f32.mrb[26].mxu1 }
 0x809   :  { %v784_v41 = vpack.c.bf16 %v783_v33, %v783_v33  ;;  %v3527_v42 = vpop.f32.mrb[27].mxu1 }
 0x80b   :  { %3531 = vmatmul.mubr.msk.bf16.vlgmr.msra.gmra.mrb[20].mxu0 %vm204_vm2, %v784_v41 }
 0x80c   :  { %3541 = vmatpush3.bf16.msra.mxu0 %v898_v43  ;;  %3542 = vmatprep.mubr.msk.bf16.mxu0 %vm3947_vm0, %v3946_v4 }
 0x80d   :  { %3552 = vmatprep.subr.bf16.mxu0 %v3946_v4 }
 0x80e   :  { %v876_v44 = vpop.f32.mrb[28].mxu1 }
 0x80f   :  { %v877_v45 = vadd.f32 %v4098_v34, %v876_v44  ;;  %v3538_v46 = vpop.f32.mrb[29].mxu1 }
 0x810   :  { %v879_v47 = vpop.f32.mrb[30].mxu1 }
 0x811   :  { %v3539_v48 = vpop.f32.mrb[31].mxu1  ;;  %v882_v49 = vsel %vm204_vm2, %v877_v45, -inf }
 0x812   :  { %883 = vmax.xlane.f32.xlu0 %v882_v49 }
 0x816   :  { %v987_v50 = vpop.f32.mrb[32].mxu1 }
 0x817   :  { %v988_v51 = vadd.f32 %v4098_v34, %v987_v50  ;;  %v3550_v52 = vpop.f32.mrb[33].mxu1 }
 0x818   :  { %v990_v53 = vpop.f32.mrb[34].mxu1 }
 0x819   :  { %v3551_v54 = vpop.f32.mrb[35].mxu1  ;;  %v993_v56 = vsel %vm204_vm2, %v988_v51, -inf }
 0x81a   :  { %994 = vmax.xlane.f32.xlu0 %v993_v56 }
 0x830   :  { %1003 = vrot.lane.b32.xlu0 %v4174_v55, %s3951_s24 }
 0x834   :  { %1142 = vrot.lane.b32.xlu0 %v4174_v55, %s3953_s26 }
 0x838   :  { %1140 = vrot.lane.b32.xlu0 %v4174_v55, %s3954_s27 }
 0x89f   :  { %v884_v58 = vpop.xlane.xlu0 %883 }
 0x8a0   :  { %v885_v24 = vsub.f32 %v877_v45, %v884_v58 }
 0x8a2   :  { %v886_v59 = vmul.f32 1.442695, %v885_v24 }
 0x8a4   :  { %3848 = vpow2.f32 %v886_v59 }
 0x8a7   :  { %v995_v60 = vpop.xlane.xlu0 %994 }
 0x8a8   :  { %v996_v61 = vsub.f32 %v988_v51, %v995_v60 }
 0x8aa   :  { %v997_v62 = vmul.f32 1.442695, %v996_v61 }
 0x8ab   :  { %v1004_v1 = vpop.permute.xlu0 %1003 }
 0x8ac   :  { %3850 = vpow2.f32 %v997_v62  ;;  %v1009_v6 = vsel %vm266_vm4, %v1004_v1, 0 }
 0x8ae   :  { %v3849_v63 = vpop.eup %3848 }
 0x8af   :  { %v888_v3 = vsel %vm204_vm2, %v3849_v63, 0.0  ;;  %v891_v5 = vpack.c.bf16 %v3849_v63, %v3849_v63  ;;  %v1143_v17 = vpop.permute.xlu0 %1142 }
 0x8b0   :  { %889 = vadd.xlane.f32.xlu0 %v888_v3  ;;  %v1148_v33 = vsel %vm204_vm2, %v1143_v17, 0 }
 0x8b1   :  { %3543 = vmatmul.mubr.msk.bf16.vlgmr.msra.gmra.mrb[24].mxu0 %vm204_vm2, %v891_v5 }
 0x8b2   :  { %3553 = vmatpush3.bf16.msra.mxu0 %v1009_v6  ;;  %3554 = vmatprep.mubr.msk.bf16.mxu0 %vm3947_vm0, %v3946_v4 }
 0x8b3   :  { %3564 = vmatprep.subr.bf16.mxu0 %v3946_v4  ;;  %v1141_v18 = vpop.permute.xlu0 %1140 }
 0x8b6   :  { %v3851_v7 = vpop.eup %3850 }
 0x8b7   :  { %v999_v8 = vsel %vm204_vm2, %v3851_v7, 0.0  ;;  %v1002_v9 = vpack.c.bf16 %v3851_v7, %v3851_v7 }
 0x8b8   :  { %1000 = vadd.xlane.f32.xlu1 %v999_v8 }
 0x8b9   :  { %3555 = vmatmul.mubr.msk.bf16.vlgmr.msra.gmra.mrb[28].mxu0 %vm204_vm2, %v1002_v9 }
 0x8ba   :  { %3565 = vmatpush3.bf16.msra.mxu0 %v4130_v0  ;;  %3566 = vmatprep.mubr.msk.bf16.mxu0 %vm3947_vm0, %v3946_v4 }
 0x8bb   :  { %3576 = vmatprep.subr.bf16.mxu0 %v3946_v4 }
 0x8c6   :  { %1297 = vrot.lane.b32.xlu0 %v4174_v55, %s3955_s28 }
 0x8de   :  { %v825_v10 = vpop.f32.mrb[20].mxu0 }
 0x8df   :  { %v4259_v11 = vadd.f32 %v825_v10, %v4219_v27  ;;  %v3532_v12 = vpop.f32.mrb[21].mxu0 }
 0x8e0   :  { %v828_v13 = vpop.f32.mrb[22].mxu0 }
 0x8e1   :  { %v3533_v14 = vpop.f32.mrb[23].mxu0 }
 0x93d   :  { %v890_v19 = vpop.xlane.xlu0 %889 }
 0x93e   :  { %3852 = vrcp.f32 %v890_v19 }
 0x941   :  { %v1298_v59 = vpop.permute.xlu0 %1297 }
 0x942   :  { %v1303_v62 = vsel %vm204_vm2, %v1298_v59, 0 }
 0x945   :  { %v1001_v0 = vpop.xlane.xlu1 %1000 }
 0x946   :  { %3854 = vrcp.f32 %v1001_v0 }
 0x948   :  { %v3853_v20 = vpop.eup %3852 }
 0x950   :  { %v3855_v27 = vpop.eup %3854 }
 0x984   :  { %v934_v23 = vpop.f32.mrb[24].mxu0 }
 0x985   :  { %v941_v21 = vmul.f32 %v3853_v20, %v934_v23  ;;  %v3544_v22 = vpop.f32.mrb[25].mxu0 }
 0x986   :  { %v937_v25 = vpop.f32.mrb[26].mxu0  ;;  %v3286_v22 = vld [vmem:[%s4721_s7] ss:$0 sm:$0xff] }
 0x987   :  { %v942_v26 = vpack.c.bf16 %v941_v21, %v941_v21  ;;  %v3545_v28 = vpop.f32.mrb[27].mxu0  ;;  %v1450_v21 = vadd.f32 %v4259_v11, %v4061_v15 }
 0x989   :  { %3567 = vmatmul.mubr.msk.bf16.vlgmr.msra.gmra.mrb[32].mxu0 %vm204_vm2, %v942_v26 }
 0x98a   :  { %3578 = vmatprep.mubr.msk.bf16.mxu0 %vm3947_vm0, %v3946_v4 }
 0x98c   :  { %v1045_v29 = vpop.f32.mrb[28].mxu0 }
 0x98d   :  { %v1052_v30 = vmul.f32 %v3855_v27, %v1045_v29  ;;  %v3556_v31 = vpop.f32.mrb[29].mxu0  ;;  %v1458_v27 = vadd.f32 %v3286_v22, %v1450_v21  ;;  %v3821_v21 = vld [vmem:[%s4724_s10 + $0x8] sm:$0xff]  }
 0x98e   :  { %v1048_v2 = vpop.f32.mrb[30].mxu0 }
 0x98f   :  { %v1053_v36 = vpack.c.bf16 %v1052_v30, %v1052_v30  ;;  %v3557_v37 = vpop.f32.mrb[31].mxu0  ;;  %v1460_v29 = vsel %vm155_vm1, %v1458_v27, 0.0 }
 0x991   :  { %3561 = vmatmul.mubr.msk.bf16.vlgmr.msra.gmra.mrb[36].mxu1 %vm204_vm2, %v1053_v36 }
 0x992   :  { %3571 = vmatpush3.bf16.xpose.msra.mxu1 %v1148_v33  ;;  %3572 = vmatprep.mubr.msk.bf16.mxu1 %vm3947_vm0, %v3946_v4 }
 0x993   :  { %3582 = vmatprep.subr.bf16.mxu1 %v3946_v4 }
 0x999   :  { %3573 = vmatmul.mubr.msk.bf16.vlgmr.msra.gmra.mrb[40].mxu1 %vm204_vm2, %v1141_v18 }
 0x99a   :  { %3583 = vmatpush3.bf16.msra.mxu1 %v4184_v57  ;;  %3584 = vmatprep.mubr.msk.bf16.mxu1 %vm3947_vm0, %v3946_v4 }
 0x99b   :  { %3594 = vmatprep.subr.bf16.mxu1 %v3946_v4 }
 0xa5c   :  { %v1134_v38 = vpop.f32.mrb[32].mxu0 }
 0xa5d   :  { %v3568_v39 = vpop.f32.mrb[33].mxu0 }
 0xa5e   :  { %v1137_v40 = vpop.f32.mrb[34].mxu0 }
 0xa5f   :  { %v3569_v41 = vpop.f32.mrb[35].mxu0 }
 0xa64   :  { %v1091_v42 = vpop.f32.mrb[36].mxu1 }
 0xa65   :  { %v4274_v43 = vadd.f32 %v1134_v38, %v1091_v42  ;;  %v3562_v44 = vpop.f32.mrb[37].mxu1 }
 0xa66   :  { %v1094_v45 = vpop.f32.mrb[38].mxu1 }
 0xa67   :  { %v3563_v46 = vpop.f32.mrb[39].mxu1 }
 0xa6c   :  { %v1184_v47 = vpop.f32.mrb[40].mxu1 }
 0xa6d   :  { %v1185_v48 = vadd.f32 %v4098_v34, %v1184_v47  ;;  %v3574_v49 = vpop.f32.mrb[41].mxu1 }
 0xa6e   :  { %v1187_v57 = vpop.f32.mrb[42].mxu1 }
 0xa6f   :  { %v3575_v50 = vpop.f32.mrb[43].mxu1  ;;  %v1190_v51 = vsel %vm204_vm2, %v1185_v48, -inf }
 0xa70   :  { %1191 = vmax.xlane.f32.xlu1 %v1190_v51 }
 0xa81   :  { %1200 = vrot.lane.b32.xlu1 %v4174_v55, %s3956_s0 }
 0xa85   :  { %1295 = vrot.lane.b32.xlu1 %v4174_v55, %s3957_s16 }
 0xafd   :  { %v1192_v52 = vpop.xlane.xlu1 %1191 }
 0xafe   :  { %v1193_v53 = vsub.f32 %v1185_v48, %v1192_v52 }
 0xb00   :  { %v1194_v54 = vmul.f32 1.442695, %v1193_v53 }
 0xb01   :  { %v1201_v56 = vpop.permute.xlu1 %1200 }
 0xb02   :  { %3856 = vpow2.f32 %v1194_v54  ;;  %v1206_v58 = vsel %vm266_vm4, %v1201_v56, 0 }
 0xb03   :  { %3577 = vmatpush3.bf16.msra.mxu0 %v1206_v58 }
 0xb04   :  { %3588 = vmatprep.subr.bf16.mxu0 %v3946_v4 }
 0xb05   :  { %v1296_v63 = vpop.permute.xlu1 %1295 }
 0xb0c   :  { %v3857_v24 = vpop.eup %3856 }
 0xb0d   :  { %v1196_v60 = vsel %vm204_vm2, %v3857_v24, 0.0  ;;  %v1199_v61 = vpack.c.bf16 %v3857_v24, %v3857_v24 }
 0xb0e   :  { %1197 = vadd.xlane.f32.xlu1 %v1196_v60 }
 0xb0f   :  { %3579 = vmatmul.mubr.msk.bf16.vlgmr.msra.gmra.mrb[36].mxu0 %vm204_vm2, %v1199_v61  ;;  %v3819_v61 = vld [vmem:[%s4722_s8 + $0x8] sm:$0xff]  }
 0xb10   :  { %3589 = vmatpush3.bf16.xpose.msra.mxu0 %v1303_v62  ;;  %3590 = vmatprep.mubr.msk.bf16.mxu0 %vm3947_vm0, %v3946_v4 }
 0xb11   :  { %3600 = vmatprep.subr.bf16.mxu0 %v3946_v4 }
 0xb17   :  { %3591 = vmatmul.mubr.msk.bf16.vlgmr.msra.gmra.mrb[40].mxu0 %vm204_vm2, %v1296_v63 }
 0xb18   :  { %3601 = vmatpush3.bf16.msra.mxu0 %v4225_v35  ;;  %3602 = vmatprep.mubr.msk.bf16.mxu0 %vm3947_vm0, %v3946_v4 }
 0xb19   :  { %3614 = vmatprep.subr.bf16.mxu0 %v3946_v4 }
 0xb1f   :  { %1355 = vrot.lane.b32.xlu1 %v4174_v55, %s3958_s19 }
 0xb9b   :  { %v1198_v1 = vpop.xlane.xlu1 %1197 }
 0xb9c   :  { %3858 = vrcp.f32 %v1198_v1 }
 0xb9f   :  { %v1356_v8 = vpop.permute.xlu1 %1355 }
 0xba0   :  { %v1361_v35 = vsel %vm266_vm4, %v1356_v8, 0 }
 0xba6   :  { %v3859_v3 = vpop.eup %3858 }
 0xbe2   :  { %v1242_v5 = vpop.f32.mrb[36].mxu0 }
 0xbe3   :  { %v1249_v6 = vmul.f32 %v3859_v3, %v1242_v5  ;;  %v3580_v7 = vpop.f32.mrb[37].mxu0 }
 0xbe4   :  { %v1245_v9 = vpop.f32.mrb[38].mxu0  ;;  %v1489_v7 = vsub.s32 0, %v4094_v32 }
 0xbe5   :  { %v1250_v10 = vpack.c.bf16 %v1249_v6, %v1249_v6  ;;  %v3581_v12 = vpop.f32.mrb[39].mxu0  ;;  %v4334_v9 = vld [vmem:[%s4726_s12] sm:$0xf] }
 0xbe7   :  { %3585 = vmatmul.mubr.msk.bf16.vlgmr.msra.gmra.mrb[44].mxu1 %vm204_vm2, %v1250_v10  ;;  %v1490_v10 = vrot.slane %v4334_v9, %v1489_v7 }
 0xbe8   :  { %3595 = vmatpush3.bf16.msra.mxu1 %v1361_v35  ;;  %3596 = vmatprep.mubr.msk.bf16.mxu1 %vm3947_vm0, %v3946_v4  ;;  %v1495_v35 = vsub.s32 1, %v4094_v32 }
 0xbe9   :  { %3606 = vmatprep.subr.bf16.mxu1 %v3946_v4 }
 0xbea   :  { %v1339_v55 = vpop.f32.mrb[40].mxu0 }
 0xbeb   :  { %v1340_v13 = vadd.f32 %v4098_v34, %v1339_v55  ;;  %v3592_v14 = vpop.f32.mrb[41].mxu0 }
 0xbec   :  { %v1342_v17 = vpop.f32.mrb[42].mxu0 }
 0xbed   :  { %v3593_v18 = vpop.f32.mrb[43].mxu0  ;;  %v1345_v19 = vsel %vm204_vm2, %v1340_v13, -inf  ;;  %v1496_v17 = vrot.slane %v4334_v9, %v1495_v35 }
 0xbee   :  { %1346 = vmax.xlane.f32.xlu0 %v1345_v19 }
 0xc7b   :  { %v1347_v0 = vpop.xlane.xlu0 %1346 }
 0xc7c   :  { %v1348_v20 = vsub.f32 %v1340_v13, %v1347_v0 }
 0xc7e   :  { %v1349_v23 = vmul.f32 1.442695, %v1348_v20 }
 0xc80   :  { %3860 = vpow2.f32 %v1349_v23  ;;  %v3820_v23 = vld [vmem:[%s4724_s10] sm:$0xff]  }
 0xc8a   :  { %v3861_v25 = vpop.eup %3860 }
 0xc8b   :  { %v1351_v26 = vsel %vm204_vm2, %v3861_v25, 0.0  ;;  %v1354_v28 = vpack.c.bf16 %v3861_v25, %v3861_v25  ;;  %v3823_v25 = vld [vmem:[%s4724_s10 + $0x18] sm:$0xff]  }
 0xc8c   :  { %1352 = vadd.xlane.f32.xlu0 %v1351_v26  ;;  %v3287_v26 = vld [vmem:[%s4723_s9] ss:$0 sm:$0xff] }
 0xc8d   :  { %3597 = vmatmul.mubr.msk.bf16.vlgmr.msra.gmra.mrb[48].mxu1 %vm204_vm2, %v1354_v28 }
 0xc8e   :  { %3610 = vmatprep.mubr.msk.bf16.mxu1 %vm3947_vm0, %v3946_v4 }
 0xc90   :  { %1461 = vadd.xlane.f32.xlu0 %v1460_v29 }
 0xcba   :  { %v1288_v30 = vpop.f32.mrb[44].mxu1 }
 0xcbb   :  { %v1294_v15 = vadd.f32 %v1288_v30, %v4274_v43  ;;  %v3586_v11 = vpop.f32.mrb[45].mxu1 }
 0xcbc   :  { %v1291_v31 = vpop.f32.mrb[46].mxu1 }
 0xcbd   :  { %v3587_v2 = vpop.f32.mrb[47].mxu1 }
 0xd19   :  { %v1353_v36 = vpop.xlane.xlu0 %1352 }
 0xd1a   :  { %3862 = vrcp.f32 %v1353_v36 }
 0xd1d   :  { %v1462_v44 = vpop.xlane.xlu0 %1461 }
 0xd1e   :  { %v1467_v45 = vmul.f32 0.03125, %v1462_v44 }
 0xd20   :  { %v1469_v49 = vsub.f32 %v1458_v27, %v1467_v45  ;;  %v3291_v45 = vld [vmem:[%s4725_s11] ss:$0 sm:$0xff] }
 0xd22   :  { %v1471_v53 = vmul.f32 %v1469_v49, %v1469_v49 }
 0xd24   :  { %v3863_v37 = vpop.eup %3862  ;;  %v1473_v54 = vsel %vm155_vm1, %v1471_v53, 0.0 }
 0xd60   :  { %v1397_v33 = vpop.f32.mrb[48].mxu1 }
 0xd61   :  { %v1404_v38 = vmul.f32 %v3863_v37, %v1397_v33  ;;  %v3598_v39 = vpop.f32.mrb[49].mxu1 }
 0xd62   :  { %v1400_v40 = vpop.f32.mrb[50].mxu1 }
 0xd63   :  { %v1405_v41 = vpack.c.bf16 %v1404_v38, %v1404_v38  ;;  %v3599_v42 = vpop.f32.mrb[51].mxu1 }
 0xd65   :  { %3603 = vmatmul.mubr.msk.bf16.vlgmr.msra.gmra.mrb[44].mxu0 %vm204_vm2, %v1405_v41 }
 0xd66   :  { %3622 = vmatprep.mubr.msk.bf16.mxu0 %vm3947_vm0, %v3946_v4  ;;  %3615 = vmatpush3.bf16.msra.mxu0 %v3820_v23 }
 0xd67   :  { %3616 = vmatprep.subr.bf16.mxu0 %v3946_v4 }
 0xd6a   :  { %3617 = vmatpush3.bf16.msra.mxu0 %v3821_v21 }
 0xd6b   :  { %3618 = vmatprep.subr.bf16.mxu0 %v3946_v4 }
 0xe38   :  { %v1443_v43 = vpop.f32.mrb[44].mxu0 }
 0xe39   :  { %v1449_v46 = vadd.f32 %v1443_v43, %v1294_v15  ;;  %v3604_v47 = vpop.f32.mrb[45].mxu0 }
 0xe3a   :  { %v1446_v48 = vpop.f32.mrb[46].mxu0 }
 0xe3b   :  { %v1451_v57 = vadd.f32 %v1449_v46, %v4063_v16  ;;  %v3605_v50 = vpop.f32.mrb[47].mxu0  ;;  %v3818_v16 = vld [vmem:[%s4722_s8] sm:$0xff]  }
 0xe3c   :  { %3607 = vmatpush3.bf16.msra.mxu1 %v3818_v16 }
 0xe3d   :  { %v1459_v51 = vadd.f32 %v3286_v22, %v1451_v57  ;;  %3608 = vmatprep.subr.bf16.mxu1 %v3946_v4  ;;  %v3822_v22 = vld [vmem:[%s4724_s10 + $0x10] sm:$0xff]  }
 0xe3e   :  { %3619 = vmatpush3.bf16.msra.mxu0 %v3822_v22 }
 0xe3f   :  { %v1463_v52 = vsel %vm155_vm1, %v1459_v51, 0.0  ;;  %3620 = vmatprep.subr.bf16.mxu0 %v3946_v4 }
 0xe40   :  { %1464 = vadd.xlane.f32.xlu0 %v1463_v52  ;;  %3609 = vmatpush3.bf16.msra.mxu1 %v3819_v61 }
 0xe41   :  { %3626 = vmatprep.subr.bf16.mxu1 %v3946_v4 }
 0xe42   :  { %3621 = vmatpush3.bf16.msra.mxu0 %v3823_v25 }
 0xe43   :  { %3640 = vmatprep.subr.bf16.mxu0 %v3946_v4 }
 0xe44   :  { %1474 = vadd.xlane.f32.xlu0 %v1473_v54 }
 0xecd   :  { %v1465_v56 = vpop.xlane.xlu0 %1464 }
 0xece   :  { %v1468_v58 = vmul.f32 0.03125, %v1465_v56 }
 0xed0   :  { %v1470_v24 = vsub.f32 %v1459_v51, %v1468_v58 }
 0xed1   :  { %v1475_v62 = vpop.xlane.xlu0 %1474 }
 0xed2   :  { %v1472_v59 = vmul.f32 %v1470_v24, %v1470_v24  ;;  %v1479_v63 = vmul.f32 0.03125, %v1475_v62 }
 0xed4   :  { %v1476_v60 = vsel %vm155_vm1, %v1472_v59, 0.0  ;;  %v1481_v1 = vadd.f32 1e-05, %v1479_v63 }
 0xed5   :  { %1477 = vadd.xlane.f32.xlu1 %v1476_v60 }
 0xed6   :  { %3864 = vrsqrt.f32 %v1481_v1  ;;  %v3824_v1 = vld [vmem:[%s4718_s4 + $0x10] sm:$0xff]  }
 0xee0   :  { %v3865_v8 = vpop.eup %3864 }
 0xee1   :  { %v1485_v12 = vmul.f32 %v3865_v8, %v1469_v49 }
 0xee3   :  { %v1491_v13 = vmul.f32 %v1490_v10, %v1485_v12 }
 0xee5   :  { %v1497_v19 = vadd.f32 %v1496_v17, %v1491_v13  ;;  %v1678_v13 = vsub.s32 2, %v4094_v32 }
 0xf62   :  { %v1478_v3 = vpop.xlane.xlu1 %1477 }
 0xf63   :  { %v1480_v5 = vmul.f32 0.03125, %v1478_v3  ;;  %v3825_v3 = vld [vmem:[%s4718_s4 + $0x18] sm:$0xff]  }
 0xf65   :  { %v1482_v6 = vadd.f32 1e-05, %v1480_v5 }
 0xf67   :  { %3866 = vrsqrt.f32 %v1482_v6 }
 0xf71   :  { %v3867_v55 = vpop.eup %3866 }
 0xf72   :  { %v1486_v14 = vmul.f32 %v3867_v55, %v1470_v24 }
 0xf74   :  { %v1492_v18 = vmul.f32 %v1490_v10, %v1486_v14  ;;  %v1679_v14 = vrot.slane %v4334_v9, %v1678_v13 }
 0xf76   :  { %v1498_v0 = vadd.f32 %v1496_v17, %v1492_v18  ;;  %v1684_v17 = vsub.s32 3, %v4094_v32 }
 0xf78   :  { %v1499_v20 = vpack.c.bf16 %v1498_v0, %v1497_v19 }
 0xf7a   :  { %3611 = vmatmul.mubr.msk.bf16.vlgmr.msra.gmra.mrb[52].mxu1 %vm155_vm1, %v1499_v20  ;;  %v1685_v20 = vrot.slane %v4334_v9, %v1684_v17  ;;  %v3297_v9 = vld [vmem:[%s4719_s5 + $0x1] ss:$0 sm:$0xff] }
 0xf7b   :  { %3630 = vmatprep.mubr.msk.bf16.mxu1 %vm3947_vm0, %v3946_v4  ;;  %3627 = vmatpush3.bf16.msra.mxu1 %v3824_v1 }
 0xf7c   :  { %3628 = vmatprep.subr.bf16.mxu1 %v3946_v4 }
 0xf7f   :  { %3629 = vmatpush3.bf16.msra.mxu1 %v3825_v3 }
 0xf80   :  { %3634 = vmatprep.subr.bf16.mxu1 %v3946_v4 }
0x104d   :  { %v1555_v28 = vpop.f32.mrb[52].mxu1 }
0x104e   :  { %v1556_v27 = vadd.f32 %v3287_v26, %v1555_v28  ;;  %v3612_v29 = vpop.f32.mrb[53].mxu1  ;;  %v3920_v28 = vld [vmem:[%s4717_s3] sm:$0xff] }
0x104f   :  { %v1558_v30 = vpop.f32.mrb[54].mxu1 }
0x1050   :  { %v1564_v15 = vmul.f32 0.70710677, %v1556_v27  ;;  %v1559_v11 = vadd.f32 %v3287_v26, %v1558_v30  ;;  %v3613_v31 = vpop.f32.mrb[55].mxu1  ;;  %v1562_v38 = vmul.f32 0.5, %v1556_v27 }
0x1052   :  { %3868 = verf.f32 %v1564_v15  ;;  %v1565_v2 = vmul.f32 0.70710677, %v1559_v11  ;;  %v1563_v39 = vmul.f32 0.5, %v1559_v11 }
0x1054   :  { %3870 = verf.f32 %v1565_v2 }
0x105c   :  { %v3869_v36 = vpop.eup %3868 }
0x105d   :  { %v1568_v37 = vadd.f32 1.0, %v3869_v36 }
0x105e   :  { %v3871_v33 = vpop.eup %3870 }
0x105f   :  { %v1569_v40 = vadd.f32 1.0, %v3871_v33  ;;  %v1570_v41 = vmul.f32 %v1568_v37, %v1562_v38 }
0x1061   :  { %v1571_v42 = vmul.f32 %v1569_v40, %v1563_v39 }
0x1063   :  { %v1572_v44 = vpack.c.bf16 %v1571_v42, %v1570_v41 }
0x1065   :  { %3623 = vmatmul.mubr.msk.bf16.vlgmr.msra.gmra.mrb[48].mxu0 %vm1603_vm5, %v1572_v44 }
0x1066   :  { %3642 = vmatprep.mubr.msk.bf16.mxu0 %vm3947_vm0, %v3946_v4 }
0x1138   :  { %v1641_v43 = vpop.f32.mrb[48].mxu0 }
0x1139   :  { %v1642_v46 = vadd.f32 %v3291_v45, %v1641_v43  ;;  %v3624_v47 = vpop.f32.mrb[49].mxu0 }
0x113a   :  { %v1644_v48 = vpop.f32.mrb[50].mxu0 }
0x113b   :  { %v1645_v49 = vadd.f32 %v3291_v45, %v1644_v48  ;;  %v3625_v57 = vpop.f32.mrb[51].mxu0  ;;  %v1648_v50 = vadd.f32 %v1642_v46, %v1497_v19 }
0x113d   :  { %v1650_v51 = vsel %vm155_vm1, %v1648_v50, 0.0  ;;  %v1649_v52 = vadd.f32 %v1645_v49, %v1498_v0 }
0x113e   :  { %1651 = vadd.xlane.f32.xlu0 %v1650_v51 }
0x113f   :  { %v1653_v53 = vsel %vm155_vm1, %v1649_v52, 0.0 }
0x1142   :  { %1654 = vadd.xlane.f32.xlu0 %v1653_v53 }
0x11cb   :  { %v1652_v54 = vpop.xlane.xlu0 %1651 }
0x11cc   :  { %v1656_v56 = vmul.f32 0.03125, %v1652_v54 }
0x11ce   :  { %v1658_v58 = vsub.f32 %v1648_v50, %v1656_v56 }
0x11cf   :  { %v1655_v24 = vpop.xlane.xlu0 %1654 }
0x11d0   :  { %v1657_v59 = vmul.f32 0.03125, %v1655_v24  ;;  %v1660_v60 = vmul.f32 %v1658_v58, %v1658_v58 }
0x11d2   :  { %v1659_v16 = vsub.f32 %v1649_v52, %v1657_v59  ;;  %v1662_v61 = vsel %vm155_vm1, %v1660_v60, 0.0 }
0x11d3   :  { %1663 = vadd.xlane.f32.xlu0 %v1662_v61 }
0x11d4   :  { %v1661_v62 = vmul.f32 %v1659_v16, %v1659_v16 }
0x11d6   :  { %v1665_v63 = vsel %vm155_vm1, %v1661_v62, 0.0 }
0x11d7   :  { %1666 = vadd.xlane.f32.xlu0 %v1665_v63 }
0x1260   :  { %v1664_v5 = vpop.xlane.xlu0 %1663 }
0x1261   :  { %v1668_v6 = vmul.f32 0.03125, %v1664_v5 }
0x1263   :  { %v1670_v8 = vadd.f32 1e-05, %v1668_v6 }
0x1264   :  { %v1667_v10 = vpop.xlane.xlu0 %1666 }
0x1265   :  { %3872 = vrsqrt.f32 %v1670_v8  ;;  %v1669_v12 = vmul.f32 0.03125, %v1667_v10 }
0x1267   :  { %v1671_v55 = vadd.f32 1e-05, %v1669_v12  ;;  %v65_v12 = vld [vmem:[%s4720_s6 + $0x10] sm:$0xf] }
0x1269   :  { %3874 = vrsqrt.f32 %v1671_v55  ;;  %v4457_v55 = vsel %vm266_vm4, %v65_v12, 0 }
0x126f   :  { %v3873_v18 = vpop.eup %3872 }
0x1270   :  { %v1674_v19 = vmul.f32 %v3873_v18, %v1658_v58 }
0x1272   :  { %v1680_v0 = vmul.f32 %v1679_v14, %v1674_v19 }
0x1273   :  { %v3875_v23 = vpop.eup %3874 }
0x1274   :  { %v1675_v21 = vmul.f32 %v3875_v23, %v1659_v16  ;;  %v1686_v25 = vadd.f32 %v1685_v20, %v1680_v0 }
0x1276   :  { %v1681_v22 = vmul.f32 %v1679_v14, %v1675_v21  ;;  %v4394_v27 = vadd.f32 %v3920_v28, %v1686_v25  ;;  %v66_v14 = vld [vmem:[%s4720_s6 + $0x14] sm:$0xf] }
0x1277   :  { %v4464_v18 = vsel %vm266_vm4, %v66_v14, 0 }
0x1278   :  { %v1687_v26 = vadd.f32 %v1685_v20, %v1681_v22 }
0x127a   :  { %v4396_v29 = vadd.f32 %v3920_v28, %v1687_v26 }
0x127c   :  { %v1690_v30 = vpack.c.bf16 %v4396_v29, %v4394_v27 }
0x127e   :  { %3631 = vmatmul.mubr.msk.bf16.vlgmr.msra.gmra.mrb[56].mxu1 %vm155_vm1, %v1690_v30 }
0x127f   :  { %3636 = vmatprep.mubr.msk.bf16.mxu1 %vm3947_vm0, %v3946_v4 }
0x1351   :  { %v1746_v15 = vpop.f32.mrb[56].mxu1 }
0x1352   :  { %v1747_v11 = vadd.f32 %v3297_v9, %v1746_v15  ;;  %v3632_v31 = vpop.f32.mrb[57].mxu1 }
0x1353   :  { %v1749_v2 = vpop.f32.mrb[58].mxu1 }
0x1354   :  { %v4406_v36 = vpack.c.bf16 %v1747_v11, %v1747_v11  ;;  %v4408_v37 = vadd.f32 %v3297_v9, %v1749_v2  ;;  %v3633_v33 = vpop.f32.mrb[59].mxu1 }
0x1356   :  { %1866 = vrot.lane.b32.xlu1 %v4406_v36, %s3950_s23  ;;  %1755 = vrot.lane.b32.xlu0 %v4406_v36, %s3949_s22 }
0x135a   :  { %1864 = vrot.lane.b32.xlu0 %v4406_v36, %s3948_s21 }
0x13c8   :  { %v1756_v38 = vpop.permute.xlu0 %1755  ;;  %v1867_v40 = vpop.permute.xlu1 %1866 }
0x13c9   :  { %v1761_v39 = vsel %vm204_vm2, %v1756_v38, 0  ;;  %v1872_v41 = vsel %vm204_vm2, %v1867_v40, 0 }
0x13ca   :  { %3635 = vmatpush3.bf16.xpose.msra.mxu1 %v1761_v39 }
0x13cb   :  { %3646 = vmatprep.subr.bf16.mxu1 %v3946_v4 }
0x13cc   :  { %v1865_v42 = vpop.permute.xlu0 %1864 }
0x13d1   :  { %3637 = vmatmul.mubr.msk.bf16.vlgmr.msra.gmra.mrb[60].mxu1 %vm204_vm2, %v4406_v36 }
0x13d2   :  { %3647 = vmatpush3.bf16.xpose.msra.mxu1 %v1872_v41  ;;  %3648 = vmatprep.mubr.msk.bf16.mxu1 %vm3947_vm0, %v3946_v4 }
0x13d3   :  { %3658 = vmatprep.subr.bf16.mxu1 %v3946_v4 }
0x13d9   :  { %3649 = vmatmul.mubr.msk.bf16.vlgmr.msra.gmra.mrb[64].mxu1 %vm204_vm2, %v1865_v42 }
0x13da   :  { %3660 = vmatprep.mubr.msk.bf16.mxu1 %vm3947_vm0, %v3946_v4  ;;  %3659 = vmatpush3.bf16.msra.mxu1 %v4464_v18 }
0x13db   :  { %3670 = vmatprep.subr.bf16.mxu1 %v3946_v4 }
0x14a4   :  { %v1797_v44 = vpop.f32.mrb[60].mxu1 }
0x14a5   :  { %v1798_v45 = vadd.f32 %v4098_v34, %v1797_v44  ;;  %v3638_v43 = vpop.f32.mrb[61].mxu1 }
0x14a6   :  { %v1800_v46 = vpop.f32.mrb[62].mxu1 }
0x14a7   :  { %v3639_v47 = vpop.f32.mrb[63].mxu1  ;;  %v1803_v48 = vsel %vm204_vm2, %v1798_v45, -inf }
0x14a8   :  { %1804 = vmax.xlane.f32.xlu0 %v1803_v48 }
0x14ac   :  { %v1908_v49 = vpop.f32.mrb[64].mxu1 }
0x14ad   :  { %v1909_v57 = vadd.f32 %v4098_v34, %v1908_v49  ;;  %v3650_v50 = vpop.f32.mrb[65].mxu1 }
0x14ae   :  { %v1911_v51 = vpop.f32.mrb[66].mxu1 }
0x14af   :  { %v3651_v52 = vpop.f32.mrb[67].mxu1  ;;  %v1914_v53 = vsel %vm204_vm2, %v1909_v57, -inf }
0x14b0   :  { %1915 = vmax.xlane.f32.xlu1 %v1914_v53 }
0x14be   :  { %1813 = vrot.lane.b32.xlu0 %v4406_v36, %s3952_s25 }
0x14c1   :  { %1924 = vrot.lane.b32.xlu1 %v4406_v36, %s3951_s24 }
0x14c5   :  { %2069 = vrot.lane.b32.xlu1 %v4406_v36, %s3953_s26 }
0x14c9   :  { %2067 = vrot.lane.b32.xlu1 %v4406_v36, %s3954_s27 }
0x1535   :  { %v1805_v54 = vpop.xlane.xlu0 %1804 }
0x1536   :  { %v1806_v56 = vsub.f32 %v1798_v45, %v1805_v54 }
0x1538   :  { %v1807_v58 = vmul.f32 1.442695, %v1806_v56 }
0x1539   :  { %v1814_v24 = vpop.permute.xlu0 %1813 }
0x153a   :  { %3876 = vpow2.f32 %v1807_v58  ;;  %v1819_v59 = vsel %vm266_vm4, %v1814_v24, 0 }
0x153b   :  { %3641 = vmatpush3.bf16.msra.mxu0 %v1819_v59 }
0x153c   :  { %3652 = vmatprep.subr.bf16.mxu0 %v3946_v4 }
0x153d   :  { %v1916_v60 = vpop.xlane.xlu1 %1915 }
0x153e   :  { %v1917_v16 = vsub.f32 %v1909_v57, %v1916_v60 }
0x1540   :  { %v1918_v61 = vmul.f32 1.442695, %v1917_v16 }
0x1541   :  { %v1925_v63 = vpop.permute.xlu1 %1924 }
0x1542   :  { %3878 = vpow2.f32 %v1918_v61  ;;  %v1930_v5 = vsel %vm266_vm4, %v1925_v63, 0 }
0x1544   :  { %v3877_v62 = vpop.eup %3876 }
0x1545   :  { %v1809_v1 = vsel %vm204_vm2, %v3877_v62, 0.0  ;;  %v1812_v3 = vpack.c.bf16 %v3877_v62, %v3877_v62  ;;  %v2070_v19 = vpop.permute.xlu1 %2069 }
0x1546   :  { %1810 = vadd.xlane.f32.xlu1 %v1809_v1  ;;  %v2075_v40 = vsel %vm204_vm2, %v2070_v19, 0 }
0x1547   :  { %3643 = vmatmul.mubr.msk.bf16.vlgmr.msra.gmra.mrb[52].mxu0 %vm204_vm2, %v1812_v3 }
0x1548   :  { %3653 = vmatpush3.bf16.msra.mxu0 %v1930_v5  ;;  %3654 = vmatprep.mubr.msk.bf16.mxu0 %vm3947_vm0, %v3946_v4  ;;  %v4503_v5 = vpack.c.bf16 %v4408_v37, %v4408_v37 }
0x1549   :  { %3664 = vmatprep.subr.bf16.mxu0 %v3946_v4  ;;  %v2068_v0 = vpop.permute.xlu1 %2067 }
0x154c   :  { %v3879_v6 = vpop.eup %3878 }
0x154d   :  { %v1920_v8 = vsel %vm204_vm2, %v3879_v6, 0.0  ;;  %v1923_v10 = vpack.c.bf16 %v3879_v6, %v3879_v6  ;;  %v67_v6 = vld [vmem:[%s4720_s6 + $0x18] sm:$0xf] }
0x154e   :  { %1921 = vadd.xlane.f32.xlu0 %v1920_v8  ;;  %v4513_v8 = vsel %vm266_vm4, %v67_v6, 0 }
0x154f   :  { %3655 = vmatmul.mubr.msk.bf16.vlgmr.msra.gmra.mrb[56].mxu0 %vm204_vm2, %v1923_v10 }
0x1550   :  { %3666 = vmatprep.mubr.msk.bf16.mxu0 %vm3947_vm0, %v3946_v4  ;;  %3665 = vmatpush3.bf16.msra.mxu0 %v4457_v55 }
0x1551   :  { %3676 = vmatprep.subr.bf16.mxu0 %v3946_v4 }
0x1557   :  { %2227 = vrot.lane.b32.xlu1 %v4406_v36, %s3955_s28 }
0x15d3   :  { %v1811_v20 = vpop.xlane.xlu1 %1810 }
0x15d4   :  { %3880 = vrcp.f32 %v1811_v20 }
0x15d7   :  { %v2228_v61 = vpop.permute.xlu1 %2227 }
0x15d8   :  { %v2233_v1 = vsel %vm204_vm2, %v2228_v61, 0 }
0x15db   :  { %v1922_v23 = vpop.xlane.xlu0 %1921 }
0x15dc   :  { %3882 = vrcp.f32 %v1922_v23 }
0x15de   :  { %v3881_v21 = vpop.eup %3880 }
0x15e6   :  { %v3883_v15 = vpop.eup %3882 }
0x161a   :  { %v1855_v22 = vpop.f32.mrb[52].mxu0 }
0x161b   :  { %v1862_v25 = vmul.f32 %v3881_v21, %v1855_v22  ;;  %v3644_v26 = vpop.f32.mrb[53].mxu0 }
0x161c   :  { %v1858_v28 = vpop.f32.mrb[54].mxu0 }
0x161d   :  { %v1863_v30 = vpack.c.bf16 %v1862_v25, %v1862_v25  ;;  %v3645_v9 = vpop.f32.mrb[55].mxu0 }
0x161f   :  { %3667 = vmatmul.mubr.msk.bf16.vlgmr.msra.gmra.mrb[60].mxu0 %vm204_vm2, %v1863_v30 }
0x1620   :  { %3678 = vmatprep.mubr.msk.bf16.mxu0 %vm3947_vm0, %v3946_v4 }
0x1622   :  { %v1966_v11 = vpop.f32.mrb[56].mxu0 }
0x1623   :  { %v1973_v31 = vmul.f32 %v3883_v15, %v1966_v11  ;;  %v3656_v2 = vpop.f32.mrb[57].mxu0 }
0x1624   :  { %v1969_v33 = vpop.f32.mrb[58].mxu0 }
0x1625   :  { %v1974_v38 = vpack.c.bf16 %v1973_v31, %v1973_v31  ;;  %v3657_v39 = vpop.f32.mrb[59].mxu0 }
0x1627   :  { %3661 = vmatmul.mubr.msk.bf16.vlgmr.msra.gmra.mrb[68].mxu1 %vm204_vm2, %v1974_v38 }
0x1628   :  { %3671 = vmatpush3.bf16.xpose.msra.mxu1 %v2075_v40  ;;  %3672 = vmatprep.mubr.msk.bf16.mxu1 %vm3947_vm0, %v3946_v4 }
0x1629   :  { %3682 = vmatprep.subr.bf16.mxu1 %v3946_v4 }
0x162f   :  { %3673 = vmatmul.mubr.msk.bf16.vlgmr.msra.gmra.mrb[72].mxu1 %vm204_vm2, %v2068_v0 }
0x1630   :  { %3684 = vmatprep.mubr.msk.bf16.mxu1 %vm3947_vm0, %v3946_v4  ;;  %3683 = vmatpush3.bf16.msra.mxu1 %v4513_v8 }
0x1631   :  { %3694 = vmatprep.subr.bf16.mxu1 %v3946_v4 }
0x16f2   :  { %v2061_v41 = vpop.f32.mrb[60].mxu0 }
0x16f3   :  { %v3668_v42 = vpop.f32.mrb[61].mxu0 }
0x16f4   :  { %v2064_v44 = vpop.f32.mrb[62].mxu0 }
0x16f5   :  { %v3669_v45 = vpop.f32.mrb[63].mxu0 }
0x16fa   :  { %v2015_v43 = vpop.f32.mrb[68].mxu1 }
0x16fb   :  { %v4480_v46 = vadd.f32 %v2061_v41, %v2015_v43  ;;  %v3662_v47 = vpop.f32.mrb[69].mxu1 }
0x16fc   :  { %v2018_v48 = vpop.f32.mrb[70].mxu1 }
0x16fd   :  { %v3663_v49 = vpop.f32.mrb[71].mxu1 }
0x1702   :  { %v2111_v57 = vpop.f32.mrb[72].mxu1 }
0x1703   :  { %v2112_v50 = vadd.f32 %v4098_v34, %v2111_v57  ;;  %v3674_v51 = vpop.f32.mrb[73].mxu1  ;;  %v68_v57 = vld [vmem:[%s4720_s6 + $0x1c] sm:$0xf] }
0x1704   :  { %v2114_v52 = vpop.f32.mrb[74].mxu1 }
0x1705   :  { %v3675_v53 = vpop.f32.mrb[75].mxu1  ;;  %v2117_v54 = vsel %vm204_vm2, %v2112_v50, -inf }
0x1706   :  { %2118 = vmax.xlane.f32.xlu0 %v2117_v54 }
0x171c   :  { %2127 = vrot.lane.b32.xlu0 %v4406_v36, %s3956_s0 }
0x1720   :  { %2225 = vrot.lane.b32.xlu0 %v4406_v36, %s3957_s16 }
0x1793   :  { %v2119_v56 = vpop.xlane.xlu0 %2118 }
0x1794   :  { %v2120_v58 = vsub.f32 %v2112_v50, %v2119_v56  ;;  %v4550_v50 = vsel %vm266_vm4, %v68_v57, 0 }
0x1796   :  { %v2121_v24 = vmul.f32 1.442695, %v2120_v58 }
0x1797   :  { %v2128_v59 = vpop.permute.xlu0 %2127 }
0x1798   :  { %3884 = vpow2.f32 %v2121_v24  ;;  %v2133_v60 = vsel %vm266_vm4, %v2128_v59, 0 }
0x1799   :  { %3677 = vmatpush3.bf16.msra.mxu0 %v2133_v60 }
0x179a   :  { %3688 = vmatprep.subr.bf16.mxu0 %v3946_v4 }
0x179b   :  { %v2226_v3 = vpop.permute.xlu0 %2225 }
0x17a2   :  { %v3885_v16 = vpop.eup %3884 }
0x17a3   :  { %v2123_v62 = vsel %vm204_vm2, %v3885_v16, 0.0  ;;  %v2126_v63 = vpack.c.bf16 %v3885_v16, %v3885_v16 }
0x17a4   :  { %2124 = vadd.xlane.f32.xlu0 %v2123_v62 }
0x17a5   :  { %3679 = vmatmul.mubr.msk.bf16.vlgmr.msra.gmra.mrb[64].mxu0 %vm204_vm2, %v2126_v63 }
0x17a6   :  { %3689 = vmatpush3.bf16.xpose.msra.mxu0 %v2233_v1  ;;  %3690 = vmatprep.mubr.msk.bf16.mxu0 %vm3947_vm0, %v3946_v4 }
0x17a7   :  { %3700 = vmatprep.subr.bf16.mxu0 %v3946_v4 }
0x17ad   :  { %3691 = vmatmul.mubr.msk.bf16.vlgmr.msra.gmra.mrb[68].mxu0 %vm204_vm2, %v2226_v3 }
0x17ae   :  { %3702 = vmatprep.mubr.msk.bf16.mxu0 %vm3947_vm0, %v3946_v4  ;;  %3701 = vmatpush3.bf16.msra.mxu0 %v4550_v50 }
0x17af   :  { %3712 = vmatprep.subr.bf16.mxu0 %v3946_v4 }
0x17ba   :  { %2285 = vrot.lane.b32.xlu0 %v4406_v36, %s3958_s19 }
0x17be   :  { %2496 = vrot.lane.b32.xlu0 %v4503_v5, %s3950_s23 }
0x17c2   :  { %2494 = vrot.lane.b32.xlu0 %v4503_v5, %s3948_s21 }
0x1831   :  { %v2125_v36 = vpop.xlane.xlu0 %2124 }
0x1832   :  { %3886 = vrcp.f32 %v2125_v36 }
0x1835   :  { %v2286_v19 = vpop.permute.xlu0 %2285 }
0x1836   :  { %v2291_v21 = vsel %vm266_vm4, %v2286_v19, 0 }
0x1839   :  { %v2497_v41 = vpop.permute.xlu0 %2496 }
0x183a   :  { %v2502_v42 = vsel %vm204_vm2, %v2497_v41, 0 }
0x183c   :  { %v3887_v37 = vpop.eup %3886 }
0x183d   :  { %v2495_v44 = vpop.permute.xlu0 %2494 }
0x1878   :  { %v2169_v10 = vpop.f32.mrb[64].mxu0 }
0x1879   :  { %v2176_v12 = vmul.f32 %v3887_v37, %v2169_v10  ;;  %v3680_v14 = vpop.f32.mrb[65].mxu0 }
0x187a   :  { %v2172_v0 = vpop.f32.mrb[66].mxu0 }
0x187b   :  { %v2177_v20 = vpack.c.bf16 %v2176_v12, %v2176_v12  ;;  %v3681_v23 = vpop.f32.mrb[67].mxu0 }
0x187d   :  { %3685 = vmatmul.mubr.msk.bf16.vlgmr.msra.gmra.mrb[76].mxu1 %vm204_vm2, %v2177_v20 }
0x187e   :  { %3695 = vmatpush3.bf16.msra.mxu1 %v2291_v21  ;;  %3696 = vmatprep.mubr.msk.bf16.mxu1 %vm3947_vm0, %v3946_v4 }
0x187f   :  { %3706 = vmatprep.subr.bf16.mxu1 %v3946_v4 }
0x1880   :  { %v2269_v22 = vpop.f32.mrb[68].mxu0 }
0x1881   :  { %v2270_v25 = vadd.f32 %v4098_v34, %v2269_v22  ;;  %v3692_v26 = vpop.f32.mrb[69].mxu0 }
0x1882   :  { %v2272_v28 = vpop.f32.mrb[70].mxu0 }
0x1883   :  { %v3693_v30 = vpop.f32.mrb[71].mxu0  ;;  %v2275_v9 = vsel %vm204_vm2, %v2270_v25, -inf }
0x1884   :  { %2276 = vmax.xlane.f32.xlu1 %v2275_v9 }
0x1895   :  { %2385 = vrot.lane.b32.xlu1 %v4503_v5, %s3949_s22 }
0x1911   :  { %v2277_v15 = vpop.xlane.xlu1 %2276 }
0x1912   :  { %v2278_v11 = vsub.f32 %v2270_v25, %v2277_v15 }
0x1914   :  { %v2279_v31 = vmul.f32 1.442695, %v2278_v11 }
0x1915   :  { %v2386_v33 = vpop.permute.xlu1 %2385 }
0x1916   :  { %3888 = vpow2.f32 %v2279_v31  ;;  %v2391_v40 = vsel %vm204_vm2, %v2386_v33, 0 }
0x1920   :  { %v3889_v2 = vpop.eup %3888 }
0x1921   :  { %v2281_v38 = vsel %vm204_vm2, %v3889_v2, 0.0  ;;  %v2284_v39 = vpack.c.bf16 %v3889_v2, %v3889_v2 }
0x1922   :  { %2282 = vadd.xlane.f32.xlu0 %v2281_v38 }
0x1923   :  { %3697 = vmatmul.mubr.msk.bf16.vlgmr.msra.gmra.mrb[80].mxu1 %vm204_vm2, %v2284_v39 }
0x1924   :  { %3707 = vmatpush3.bf16.xpose.msra.mxu1 %v2391_v40  ;;  %3708 = vmatprep.mubr.msk.bf16.mxu1 %vm3947_vm0, %v3946_v4 }
0x1925   :  { %3718 = vmatprep.subr.bf16.mxu1 %v3946_v4 }
0x192b   :  { %3709 = vmatmul.mubr.msk.bf16.vlgmr.msra.gmra.mrb[84].mxu1 %vm204_vm2, %v4503_v5 }
0x192c   :  { %3719 = vmatpush3.bf16.xpose.msra.mxu1 %v2502_v42  ;;  %3720 = vmatprep.mubr.msk.bf16.mxu1 %vm3947_vm0, %v3946_v4 }
0x192d   :  { %3730 = vmatprep.subr.bf16.mxu1 %v3946_v4 }
0x1933   :  { %3721 = vmatmul.mubr.msk.bf16.vlgmr.msra.gmra.mrb[88].mxu1 %vm204_vm2, %v2495_v44 }
0x1934   :  { %3731 = vmatpush3.bf16.msra.mxu1 %v4464_v18  ;;  %3732 = vmatprep.mubr.msk.bf16.mxu1 %vm3947_vm0, %v3946_v4 }
0x1935   :  { %3742 = vmatprep.subr.bf16.mxu1 %v3946_v4 }
0x1950   :  { %v2218_v45 = vpop.f32.mrb[76].mxu1 }
0x1951   :  { %v4544_v43 = vadd.f32 %v2218_v45, %v4480_v46  ;;  %v3686_v47 = vpop.f32.mrb[77].mxu1 }
0x1952   :  { %v2221_v48 = vpop.f32.mrb[78].mxu1 }
0x1953   :  { %v3687_v49 = vpop.f32.mrb[79].mxu1 }
0x19af   :  { %v2283_v18 = vpop.xlane.xlu0 %2282 }
0x19b0   :  { %3890 = vrcp.f32 %v2283_v18 }
0x19ba   :  { %v3891_v51 = vpop.eup %3890 }
0x19f6   :  { %v2327_v52 = vpop.f32.mrb[80].mxu1 }
0x19f7   :  { %v2334_v46 = vmul.f32 %v3891_v51, %v2327_v52  ;;  %v3698_v53 = vpop.f32.mrb[81].mxu1 }
0x19f8   :  { %v2330_v54 = vpop.f32.mrb[82].mxu1 }
0x19f9   :  { %v2335_v56 = vpack.c.bf16 %v2334_v46, %v2334_v46  ;;  %v3699_v58 = vpop.f32.mrb[83].mxu1 }
0x19fb   :  { %3703 = vmatmul.mubr.msk.bf16.vlgmr.msra.gmra.mrb[72].mxu0 %vm204_vm2, %v2335_v56 }
0x19fc   :  { %3714 = vmatprep.mubr.msk.bf16.mxu0 %vm3947_vm0, %v3946_v4 }
0x19fe   :  { %v2427_v24 = vpop.f32.mrb[84].mxu1 }
0x19ff   :  { %v2428_v59 = vadd.f32 %v4098_v34, %v2427_v24  ;;  %v3710_v60 = vpop.f32.mrb[85].mxu1 }
0x1a00   :  { %v2430_v16 = vpop.f32.mrb[86].mxu1 }
0x1a01   :  { %v3711_v61 = vpop.f32.mrb[87].mxu1  ;;  %v2433_v62 = vsel %vm204_vm2, %v2428_v59, -inf }
0x1a02   :  { %2434 = vmax.xlane.f32.xlu1 %v2433_v62 }
0x1a06   :  { %v2538_v63 = vpop.f32.mrb[88].mxu1 }
0x1a07   :  { %v2539_v1 = vadd.f32 %v4098_v34, %v2538_v63  ;;  %v3722_v3 = vpop.f32.mrb[89].mxu1 }
0x1a08   :  { %v2541_v6 = vpop.f32.mrb[90].mxu1 }
0x1a09   :  { %v3723_v36 = vpop.f32.mrb[91].mxu1  ;;  %v2544_v37 = vsel %vm204_vm2, %v2539_v1, -inf }
0x1a0a   :  { %2545 = vmax.xlane.f32.xlu0 %v2544_v37 }
0x1a13   :  { %2554 = vrot.lane.b32.xlu1 %v4503_v5, %s3951_s24 }
0x1a20   :  { %2443 = vrot.lane.b32.xlu0 %v4503_v5, %s3952_s25 }
0x1a24   :  { %2693 = vrot.lane.b32.xlu0 %v4503_v5, %s3953_s26 }
0x1a28   :  { %2691 = vrot.lane.b32.xlu0 %v4503_v5, %s3954_s27 }
0x1a8f   :  { %v2435_v10 = vpop.xlane.xlu1 %2434 }
0x1a90   :  { %v2436_v12 = vsub.f32 %v2428_v59, %v2435_v10 }
0x1a92   :  { %v2437_v14 = vmul.f32 1.442695, %v2436_v12 }
0x1a93   :  { %v2555_v25 = vpop.permute.xlu1 %2554 }
0x1a94   :  { %3892 = vpow2.f32 %v2437_v14  ;;  %v2560_v30 = vsel %vm266_vm4, %v2555_v25, 0 }
0x1a97   :  { %v2546_v19 = vpop.xlane.xlu0 %2545 }
0x1a98   :  { %v2547_v0 = vsub.f32 %v2539_v1, %v2546_v19 }
0x1a9a   :  { %v2548_v20 = vmul.f32 1.442695, %v2547_v0 }
0x1a9b   :  { %v2444_v23 = vpop.permute.xlu0 %2443 }
0x1a9c   :  { %3894 = vpow2.f32 %v2548_v20  ;;  %v2449_v21 = vsel %vm266_vm4, %v2444_v23, 0 }
0x1a9d   :  { %3713 = vmatpush3.bf16.msra.mxu0 %v2449_v21 }
0x1a9e   :  { %v3893_v22 = vpop.eup %3892  ;;  %3724 = vmatprep.subr.bf16.mxu0 %v3946_v4 }
0x1a9f   :  { %v2439_v26 = vsel %vm204_vm2, %v3893_v22, 0.0  ;;  %v2442_v28 = vpack.c.bf16 %v3893_v22, %v3893_v22  ;;  %v2694_v40 = vpop.permute.xlu0 %2693 }
0x1aa0   :  { %2440 = vadd.xlane.f32.xlu0 %v2439_v26  ;;  %v2699_v58 = vsel %vm204_vm2, %v2694_v40, 0 }
0x1aa1   :  { %3715 = vmatmul.mubr.msk.bf16.vlgmr.msra.gmra.mrb[76].mxu0 %vm204_vm2, %v2442_v28 }
0x1aa2   :  { %3725 = vmatpush3.bf16.msra.mxu0 %v2560_v30  ;;  %3726 = vmatprep.mubr.msk.bf16.mxu0 %vm3947_vm0, %v3946_v4 }
0x1aa3   :  { %3736 = vmatprep.subr.bf16.mxu0 %v3946_v4  ;;  %v2692_v41 = vpop.permute.xlu0 %2691 }
0x1aa6   :  { %v3895_v9 = vpop.eup %3894 }
0x1aa7   :  { %v2550_v15 = vsel %vm204_vm2, %v3895_v9, 0.0  ;;  %v2553_v11 = vpack.c.bf16 %v3895_v9, %v3895_v9 }
0x1aa8   :  { %2551 = vadd.xlane.f32.xlu1 %v2550_v15 }
0x1aa9   :  { %3727 = vmatmul.mubr.msk.bf16.vlgmr.msra.gmra.mrb[80].mxu0 %vm204_vm2, %v2553_v11 }
0x1aaa   :  { %3737 = vmatpush3.bf16.msra.mxu0 %v4457_v55  ;;  %3738 = vmatprep.mubr.msk.bf16.mxu0 %vm3947_vm0, %v3946_v4 }
0x1aab   :  { %3748 = vmatprep.subr.bf16.mxu0 %v3946_v4 }
0x1ab6   :  { %2848 = vrot.lane.b32.xlu0 %v4503_v5, %s3955_s28 }
0x1ace   :  { %v2376_v31 = vpop.f32.mrb[72].mxu0 }
0x1acf   :  { %v4586_v2 = vadd.f32 %v2376_v31, %v4544_v43  ;;  %v3704_v33 = vpop.f32.mrb[73].mxu0 }
0x1ad0   :  { %v2379_v38 = vpop.f32.mrb[74].mxu0 }
0x1ad1   :  { %v3705_v39 = vpop.f32.mrb[75].mxu0 }
0x1b2d   :  { %v2441_v42 = vpop.xlane.xlu0 %2440 }
0x1b2e   :  { %3896 = vrcp.f32 %v2441_v42 }
0x1b31   :  { %v2849_v22 = vpop.permute.xlu0 %2848 }
0x1b32   :  { %v2854_v28 = vsel %vm204_vm2, %v2849_v22, 0 }
0x1b35   :  { %v2552_v55 = vpop.xlane.xlu1 %2551 }
0x1b36   :  { %3898 = vrcp.f32 %v2552_v55 }
0x1b38   :  { %v3897_v44 = vpop.eup %3896 }
0x1b40   :  { %v3899_v43 = vpop.eup %3898 }
0x1b74   :  { %v2485_v45 = vpop.f32.mrb[76].mxu0 }
0x1b75   :  { %v2492_v47 = vmul.f32 %v3897_v44, %v2485_v45  ;;  %v3716_v48 = vpop.f32.mrb[77].mxu0 }
0x1b76   :  { %v2488_v49 = vpop.f32.mrb[78].mxu0 }
0x1b77   :  { %v2493_v57 = vpack.c.bf16 %v2492_v47, %v2492_v47  ;;  %v3717_v18 = vpop.f32.mrb[79].mxu0 }
0x1b79   :  { %3739 = vmatmul.mubr.msk.bf16.vlgmr.msra.gmra.mrb[84].mxu0 %vm204_vm2, %v2493_v57 }
0x1b7a   :  { %3750 = vmatprep.mubr.msk.bf16.mxu0 %vm3947_vm0, %v3946_v4 }
0x1b7c   :  { %v2596_v51 = vpop.f32.mrb[80].mxu0 }
0x1b7d   :  { %v2603_v52 = vmul.f32 %v3899_v43, %v2596_v51  ;;  %v3728_v46 = vpop.f32.mrb[81].mxu0  ;;  %v3325_v43 = vld [vmem:[%s4721_s7 + $0x1] ss:$0 sm:$0xff] }
0x1b7e   :  { %v2599_v53 = vpop.f32.mrb[82].mxu0 }
0x1b7f   :  { %v2604_v54 = vpack.c.bf16 %v2603_v52, %v2603_v52  ;;  %v3729_v56 = vpop.f32.mrb[83].mxu0 }
0x1b81   :  { %3733 = vmatmul.mubr.msk.bf16.vlgmr.msra.gmra.mrb[92].mxu1 %vm204_vm2, %v2604_v54 }
0x1b82   :  { %3743 = vmatpush3.bf16.xpose.msra.mxu1 %v2699_v58  ;;  %3744 = vmatprep.mubr.msk.bf16.mxu1 %vm3947_vm0, %v3946_v4 }
0x1b83   :  { %3754 = vmatprep.subr.bf16.mxu1 %v3946_v4 }
0x1b89   :  { %3745 = vmatmul.mubr.msk.bf16.vlgmr.msra.gmra.mrb[96].mxu1 %vm204_vm2, %v2692_v41 }
0x1b8a   :  { %3755 = vmatpush3.bf16.msra.mxu1 %v4513_v8  ;;  %3756 = vmatprep.mubr.msk.bf16.mxu1 %vm3947_vm0, %v3946_v4 }
0x1b8b   :  { %3766 = vmatprep.subr.bf16.mxu1 %v3946_v4 }
0x1c4c   :  { %v2685_v24 = vpop.f32.mrb[84].mxu0 }
0x1c4d   :  { %v3740_v59 = vpop.f32.mrb[85].mxu0 }
0x1c4e   :  { %v2688_v60 = vpop.f32.mrb[86].mxu0 }
0x1c4f   :  { %v3741_v16 = vpop.f32.mrb[87].mxu0 }
0x1c54   :  { %v2642_v61 = vpop.f32.mrb[92].mxu1 }
0x1c55   :  { %v4601_v62 = vadd.f32 %v2685_v24, %v2642_v61  ;;  %v3734_v63 = vpop.f32.mrb[93].mxu1 }
0x1c56   :  { %v2645_v1 = vpop.f32.mrb[94].mxu1 }
0x1c57   :  { %v3735_v3 = vpop.f32.mrb[95].mxu1 }
0x1c5c   :  { %v2735_v6 = vpop.f32.mrb[96].mxu1 }
0x1c5d   :  { %v2736_v36 = vadd.f32 %v4098_v34, %v2735_v6  ;;  %v3746_v37 = vpop.f32.mrb[97].mxu1 }
0x1c5e   :  { %v2738_v8 = vpop.f32.mrb[98].mxu1 }
0x1c5f   :  { %v3747_v10 = vpop.f32.mrb[99].mxu1  ;;  %v2741_v12 = vsel %vm204_vm2, %v2736_v36, -inf }
0x1c60   :  { %2742 = vmax.xlane.f32.xlu1 %v2741_v12 }
0x1c71   :  { %2751 = vrot.lane.b32.xlu1 %v4503_v5, %s3956_s0 }
0x1c75   :  { %2846 = vrot.lane.b32.xlu1 %v4503_v5, %s3957_s16 }
0x1ced   :  { %v2743_v14 = vpop.xlane.xlu1 %2742 }
0x1cee   :  { %v2744_v19 = vsub.f32 %v2736_v36, %v2743_v14 }
0x1cf0   :  { %v2745_v0 = vmul.f32 1.442695, %v2744_v19 }
0x1cf1   :  { %v2752_v20 = vpop.permute.xlu1 %2751 }
0x1cf2   :  { %3900 = vpow2.f32 %v2745_v0  ;;  %v2757_v23 = vsel %vm266_vm4, %v2752_v20, 0 }
0x1cf3   :  { %3749 = vmatpush3.bf16.msra.mxu0 %v2757_v23 }
0x1cf4   :  { %3760 = vmatprep.subr.bf16.mxu0 %v3946_v4 }
0x1cf5   :  { %v2847_v30 = vpop.permute.xlu1 %2846 }
0x1cfc   :  { %v3901_v21 = vpop.eup %3900 }
0x1cfd   :  { %v2747_v25 = vsel %vm204_vm2, %v3901_v21, 0.0  ;;  %v2750_v26 = vpack.c.bf16 %v3901_v21, %v3901_v21 }
0x1cfe   :  { %2748 = vadd.xlane.f32.xlu1 %v2747_v25 }
0x1cff   :  { %3751 = vmatmul.mubr.msk.bf16.vlgmr.msra.gmra.mrb[88].mxu0 %vm204_vm2, %v2750_v26 }
0x1d00   :  { %3761 = vmatpush3.bf16.xpose.msra.mxu0 %v2854_v28  ;;  %3762 = vmatprep.mubr.msk.bf16.mxu0 %vm3947_vm0, %v3946_v4 }
0x1d01   :  { %3772 = vmatprep.subr.bf16.mxu0 %v3946_v4 }
0x1d07   :  { %3763 = vmatmul.mubr.msk.bf16.vlgmr.msra.gmra.mrb[92].mxu0 %vm204_vm2, %v2847_v30 }
0x1d08   :  { %3773 = vmatpush3.bf16.msra.mxu0 %v4550_v50  ;;  %3774 = vmatprep.mubr.msk.bf16.mxu0 %vm3947_vm0, %v3946_v4 }
0x1d09   :  { %3786 = vmatprep.subr.bf16.mxu0 %v3946_v4 }
0x1d8b   :  { %v2749_v9 = vpop.xlane.xlu1 %2748 }
0x1d8c   :  { %3902 = vrcp.f32 %v2749_v9  ;;  %v3827_v9 = vld [vmem:[%s4722_s8 + $0x18] sm:$0xff]  }
0x1d96   :  { %v3903_v15 = vpop.eup %3902 }
0x1dd2   :  { %v2793_v11 = vpop.f32.mrb[88].mxu0 }
0x1dd3   :  { %v2800_v31 = vmul.f32 %v3903_v15, %v2793_v11  ;;  %v3752_v33 = vpop.f32.mrb[89].mxu0 }
0x1dd4   :  { %v2796_v38 = vpop.f32.mrb[90].mxu0 }
0x1dd5   :  { %v2801_v39 = vpack.c.bf16 %v2800_v31, %v2800_v31  ;;  %v3753_v40 = vpop.f32.mrb[91].mxu0 }
0x1dd7   :  { %3757 = vmatmul.mubr.msk.bf16.vlgmr.msra.gmra.mrb[100].mxu1 %vm204_vm2, %v2801_v39 }
0x1dd8   :  { %3768 = vmatprep.mubr.msk.bf16.mxu1 %vm3947_vm0, %v3946_v4 }
0x1dda   :  { %v2890_v50 = vpop.f32.mrb[92].mxu0 }
0x1ddb   :  { %v2891_v41 = vadd.f32 %v4098_v34, %v2890_v50  ;;  %v3764_v42 = vpop.f32.mrb[93].mxu0  ;;  %v3001_v34 = vadd.f32 %v4586_v2, %v4394_v27  ;;  %v4659_v50 = vld [vmem:[%s4726_s12 + $0x4] sm:$0xf] }
0x1ddc   :  { %v2893_v55 = vpop.f32.mrb[94].mxu0 }
0x1ddd   :  { %v3765_v44 = vpop.f32.mrb[95].mxu0  ;;  %v2896_v45 = vsel %vm204_vm2, %v2891_v41, -inf  ;;  %v3009_v46 = vadd.f32 %v3325_v43, %v3001_v34  ;;  %v3828_v34 = vld [vmem:[%s4724_s10 + $0x20] sm:$0xff]  }
0x1dde   :  { %2897 = vmax.xlane.f32.xlu0 %v2896_v45 }
0x1ddf   :  { %v3011_v53 = vsel %vm155_vm1, %v3009_v46, 0.0 }
0x1df4   :  { %2906 = vrot.lane.b32.xlu0 %v4503_v5, %s3958_s19 }
0x1e6b   :  { %v2898_v47 = vpop.xlane.xlu0 %2897 }
0x1e6c   :  { %v2899_v48 = vsub.f32 %v2891_v41, %v2898_v47  ;;  %v3040_v41 = vrot.slane %v4659_v50, %v1489_v7  ;;  %v3046_v47 = vrot.slane %v4659_v50, %v1495_v35  ;;  %v3829_v7 = vld [vmem:[%s4724_s10 + $0x28] sm:$0xff]   ;;  %v3830_v35 = vld [vmem:[%s4724_s10 + $0x30] sm:$0xff]  }
0x1e6e   :  { %v2900_v49 = vmul.f32 1.442695, %v2899_v48 }
0x1e6f   :  { %v2907_v57 = vpop.permute.xlu0 %2906 }
0x1e70   :  { %3904 = vpow2.f32 %v2900_v49  ;;  %v2912_v18 = vsel %vm266_vm4, %v2907_v57, 0 }
0x1e71   :  { %3767 = vmatpush3.bf16.msra.mxu1 %v2912_v18 }
0x1e72   :  { %3778 = vmatprep.subr.bf16.mxu1 %v3946_v4 }
0x1e7a   :  { %v3905_v51 = vpop.eup %3904 }
0x1e7b   :  { %v2902_v5 = vsel %vm204_vm2, %v3905_v51, 0.0  ;;  %v2905_v52 = vpack.c.bf16 %v3905_v51, %v3905_v51  ;;  %v3326_v51 = vld [vmem:[%s4723_s9 + $0x1] ss:$0 sm:$0xff] }
0x1e7c   :  { %2903 = vadd.xlane.f32.xlu1 %v2902_v5 }
0x1e7d   :  { %3769 = vmatmul.mubr.msk.bf16.vlgmr.msra.gmra.mrb[104].mxu1 %vm204_vm2, %v2905_v52 }
0x1e7e   :  { %3782 = vmatprep.mubr.msk.bf16.mxu1 %vm3947_vm0, %v3946_v4 }
0x1e80   :  { %3012 = vadd.xlane.f32.xlu1 %v3011_v53 }
0x1eaa   :  { %v2839_v54 = vpop.f32.mrb[100].mxu1 }
0x1eab   :  { %v2845_v27 = vadd.f32 %v2839_v54, %v4601_v62  ;;  %v3758_v2 = vpop.f32.mrb[101].mxu1 }
0x1eac   :  { %v2842_v56 = vpop.f32.mrb[102].mxu1 }
0x1ead   :  { %v3759_v58 = vpop.f32.mrb[103].mxu1 }
0x1f09   :  { %v2904_v24 = vpop.xlane.xlu1 %2903 }
0x1f0a   :  { %3906 = vrcp.f32 %v2904_v24 }
0x1f0d   :  { %v3013_v6 = vpop.xlane.xlu1 %3012 }
0x1f0e   :  { %v3017_v36 = vmul.f32 0.03125, %v3013_v6 }
0x1f10   :  { %v3019_v12 = vsub.f32 %v3009_v46, %v3017_v36 }
0x1f12   :  { %v3021_v23 = vmul.f32 %v3019_v12, %v3019_v12 }
0x1f14   :  { %v3907_v59 = vpop.eup %3906  ;;  %v3023_v21 = vsel %vm155_vm1, %v3021_v23, 0.0 }
0x1f50   :  { %v2948_v60 = vpop.f32.mrb[104].mxu1 }
0x1f51   :  { %v2955_v16 = vmul.f32 %v3907_v59, %v2948_v60  ;;  %v3770_v61 = vpop.f32.mrb[105].mxu1 }
0x1f52   :  { %v2951_v63 = vpop.f32.mrb[106].mxu1 }
0x1f53   :  { %v2956_v1 = vpack.c.bf16 %v2955_v16, %v2955_v16  ;;  %v3771_v3 = vpop.f32.mrb[107].mxu1 }
0x1f54   :  { %v3330_v3 = vld [vmem:[%s4725_s11 + $0x1] ss:$0 sm:$0xff]  ;;  %s3959_s11 = smov [#allocation2]  }
0x1f55   :  { %3775 = vmatmul.mubr.msk.bf16.vlgmr.msra.gmra.mrb[96].mxu0 %vm204_vm2, %v2956_v1  ;;  %s3244_s1 = sshll.u32 %s3959_s11, 4  ;;  %s3245_s1 = int_to_ptr.vmem [resolvable:$true] %s3244_s1 }
0x1f56   :  { %3794 = vmatprep.mubr.msk.bf16.mxu0 %vm3947_vm0, %v3946_v4  ;;  %3787 = vmatpush3.bf16.msra.mxu0 %v3828_v34  ;;  %s3921_s3 = scalar_lea.vmem %s3245_s1, 256  ;;  %p3926_p1 = scmp.lt.s32.totalorder %s3245_s1, %s3245_s1 }
0x1f57   :  { %3788 = vmatprep.subr.bf16.mxu0 %v3946_v4  ;;  %p3922_p0 = scmp.ne.s32.totalorder %s3245_s1, %s3921_s3  ;;  %p3927_p2 = scmp.lt.s32.totalorder %s3921_s3, %s3921_s3 }
0x1f59   :  { %p3928_p3 = por %p3927_p2, %p3926_p1 }
0x1f5a   :  { %3789 = vmatpush3.bf16.msra.mxu0 %v3829_v7 }
0x1f5b   :  { %3790 = vmatprep.subr.bf16.mxu0 %v3946_v4  ;;  %p3929_p4 = pnand %p3928_p3, %p3922_p0 }
0x1f5e   :  { %3791 = vmatpush3.bf16.msra.mxu0 %v3830_v35 }
0x1f5f   :  { %3792 = vmatprep.subr.bf16.mxu0 %v3946_v4 }
0x2028   :  { %v2994_v62 = vpop.f32.mrb[96].mxu0 }
0x2029   :  { %v3000_v37 = vadd.f32 %v2994_v62, %v2845_v27  ;;  %v3776_v8 = vpop.f32.mrb[97].mxu0 }
0x202a   :  { %v2997_v10 = vpop.f32.mrb[98].mxu0 }
0x202b   :  { %v3002_v14 = vadd.f32 %v3000_v37, %v4396_v29  ;;  %v3777_v19 = vpop.f32.mrb[99].mxu0  ;;  %v3826_v29 = vld [vmem:[%s4722_s8 + $0x10] sm:$0xff]  }
0x202c   :  { %3779 = vmatpush3.bf16.msra.mxu1 %v3826_v29 }
0x202d   :  { %v3010_v0 = vadd.f32 %v3325_v43, %v3002_v14  ;;  %3780 = vmatprep.subr.bf16.mxu1 %v3946_v4  ;;  %v3831_v43 = vld [vmem:[%s4724_s10 + $0x38] sm:$0xff]  }
0x202e   :  { %3793 = vmatpush3.bf16.msra.mxu0 %v3831_v43 }
0x202f   :  { %v3014_v20 = vsel %vm155_vm1, %v3010_v0, 0.0 }
0x2030   :  { %3015 = vadd.xlane.f32.xlu1 %v3014_v20  ;;  %3781 = vmatpush3.bf16.msra.mxu1 %v3827_v9 }
0x2034   :  { %3024 = vadd.xlane.f32.xlu1 %v3023_v21 }
0x20bd   :  { %v3016_v22 = vpop.xlane.xlu1 %3015 }
0x20be   :  { %v3018_v25 = vmul.f32 0.03125, %v3016_v22 }
0x20c0   :  { %v3020_v26 = vsub.f32 %v3010_v0, %v3018_v25 }
0x20c1   :  { %v3025_v15 = vpop.xlane.xlu1 %3024 }
0x20c2   :  { %v3022_v28 = vmul.f32 %v3020_v26, %v3020_v26  ;;  %v3029_v11 = vmul.f32 0.03125, %v3025_v15 }
0x20c4   :  { %v3026_v30 = vsel %vm155_vm1, %v3022_v28, 0.0  ;;  %v3031_v31 = vadd.f32 1e-05, %v3029_v11 }
0x20c5   :  { %3027 = vadd.xlane.f32.xlu1 %v3026_v30 }
0x20c6   :  { %3908 = vrsqrt.f32 %v3031_v31 }
0x20d0   :  { %v3909_v40 = vpop.eup %3908 }
0x20d1   :  { %v3035_v42 = vmul.f32 %v3909_v40, %v3019_v12  ;;  %v3228_v40 = vrot.slane %v4659_v50, %v1678_v13 }
0x20d3   :  { %v3041_v44 = vmul.f32 %v3040_v41, %v3035_v42 }
0x20d5   :  { %v3047_v49 = vadd.f32 %v3046_v47, %v3041_v44 }
0x2152   :  { %v3028_v33 = vpop.xlane.xlu1 %3027 }
0x2153   :  { %v3030_v38 = vmul.f32 0.03125, %v3028_v33 }
0x2155   :  { %v3032_v39 = vadd.f32 1e-05, %v3030_v38 }
0x2157   :  { %3910 = vrsqrt.f32 %v3032_v39 }
0x2161   :  { %v3911_v55 = vpop.eup %3910 }
0x2162   :  { %v3036_v45 = vmul.f32 %v3911_v55, %v3020_v26  ;;  %v3234_v55 = vrot.slane %v4659_v50, %v1684_v17 }
0x2164   :  { %v3042_v48 = vmul.f32 %v3040_v41, %v3036_v45 }
0x2166   :  { %v3048_v57 = vadd.f32 %v3046_v47, %v3042_v48 }
0x2168   :  { %v3049_v18 = vpack.c.bf16 %v3048_v57, %v3047_v49 }
0x216a   :  { %3783 = vmatmul.mubr.msk.bf16.vlgmr.msra.gmra.mrb[108].mxu1 %vm155_vm1, %v3049_v18 }
0x223d   :  { %v3105_v5 = vpop.f32.mrb[108].mxu1 }
0x223e   :  { %v3106_v52 = vadd.f32 %v3326_v51, %v3105_v5  ;;  %v3784_v46 = vpop.f32.mrb[109].mxu1 }
0x223f   :  { %v3108_v53 = vpop.f32.mrb[110].mxu1 }
0x2240   :  { %v3114_v54 = vmul.f32 0.70710677, %v3106_v52  ;;  %v3109_v27 = vadd.f32 %v3326_v51, %v3108_v53  ;;  %v3785_v2 = vpop.f32.mrb[111].mxu1  ;;  %v3112_v59 = vmul.f32 0.5, %v3106_v52 }
0x2242   :  { %3912 = verf.f32 %v3114_v54  ;;  %v3115_v56 = vmul.f32 0.70710677, %v3109_v27  ;;  %v3113_v60 = vmul.f32 0.5, %v3109_v27 }
0x2244   :  { %3914 = verf.f32 %v3115_v56 }
0x224c   :  { %v3913_v4 = vpop.eup %3912 }
0x224d   :  { %v3118_v58 = vadd.f32 1.0, %v3913_v4 }
0x224e   :  { %v3915_v24 = vpop.eup %3914 }
0x224f   :  { %v3119_v16 = vadd.f32 1.0, %v3915_v24  ;;  %v3120_v61 = vmul.f32 %v3118_v58, %v3112_v59 }
0x2251   :  { %v3121_v63 = vmul.f32 %v3119_v16, %v3113_v60 }
0x2253   :  { %v3122_v1 = vpack.c.bf16 %v3121_v63, %v3120_v61 }
0x2255   :  { %3795 = vmatmul.mubr.msk.bf16.vlgmr.msra.gmra.mrb[100].mxu0 %vm1603_vm5, %v3122_v1 }
0x2328   :  { %v3190_v6 = vpop.f32.mrb[100].mxu0 }
0x2329   :  { %v3191_v36 = vadd.f32 %v3330_v3, %v3190_v6  ;;  %v3796_v62 = vpop.f32.mrb[101].mxu0 }
0x232a   :  { %v3193_v37 = vpop.f32.mrb[102].mxu0 }
0x232b   :  { %v3197_v8 = vadd.f32 %v3191_v36, %v3047_v49  ;;  %v3194_v10 = vadd.f32 %v3330_v3, %v3193_v37  ;;  %v3797_v12 = vpop.f32.mrb[103].mxu0 }
0x232d   :  { %v3199_v14 = vsel %vm155_vm1, %v3197_v8, 0.0  ;;  %v3198_v19 = vadd.f32 %v3194_v10, %v3048_v57 }
0x232e   :  { %3200 = vadd.xlane.f32.xlu0 %v3199_v14 }
0x232f   :  { %v3202_v0 = vsel %vm155_vm1, %v3198_v19, 0.0 }
0x2330   :  { %3203 = vadd.xlane.f32.xlu1 %v3202_v0 }
0x23bb   :  { %v3201_v20 = vpop.xlane.xlu0 %3200 }
0x23bc   :  { %v3205_v23 = vmul.f32 0.03125, %v3201_v20 }
0x23bd   :  { %v3204_v21 = vpop.xlane.xlu1 %3203 }
0x23be   :  { %v3207_v22 = vsub.f32 %v3197_v8, %v3205_v23  ;;  %v3206_v25 = vmul.f32 0.03125, %v3204_v21 }
0x23c0   :  { %v3208_v26 = vsub.f32 %v3198_v19, %v3206_v25  ;;  %v3209_v28 = vmul.f32 %v3207_v22, %v3207_v22 }
0x23c2   :  { %v3211_v30 = vsel %vm155_vm1, %v3209_v28, 0.0  ;;  %v3210_v29 = vmul.f32 %v3208_v26, %v3208_v26 }
0x23c3   :  { %3212 = vadd.xlane.f32.xlu1 %v3211_v30 }
0x23c4   :  { %v3214_v9 = vsel %vm155_vm1, %v3210_v29, 0.0 }
0x23c7   :  { %3215 = vadd.xlane.f32.xlu1 %v3214_v9 }
0x2450   :  { %v3213_v15 = vpop.xlane.xlu1 %3212 }
0x2451   :  { %v3217_v11 = vmul.f32 0.03125, %v3213_v15 }
0x2453   :  { %v3219_v31 = vadd.f32 1e-05, %v3217_v11 }
0x2454   :  { %v3216_v33 = vpop.xlane.xlu1 %3215 }
0x2455   :  { %3916 = vrsqrt.f32 %v3219_v31  ;;  %v3218_v38 = vmul.f32 0.03125, %v3216_v33 }
0x2457   :  { %v3220_v39 = vadd.f32 1e-05, %v3218_v38 }
0x2459   :  { %3918 = vrsqrt.f32 %v3220_v39 }
0x245f   :  { %v3917_v41 = vpop.eup %3916 }
0x2460   :  { %v3223_v42 = vmul.f32 %v3917_v41, %v3207_v22 }
0x2462   :  { %v3229_v44 = vmul.f32 %v3228_v40, %v3223_v42 }
0x2463   :  { %v3919_v45 = vpop.eup %3918 }
0x2464   :  { %v3224_v47 = vmul.f32 %v3919_v45, %v3208_v26  ;;  %v3235_v48 = vadd.f32 %v3234_v55, %v3229_v44 }
0x2466   :  { %v3230_v49 = vmul.f32 %v3228_v40, %v3224_v47  ;;  %3237 = vst.msk [vmem:[#allocation2] sm:$0xff] %vm155_vm1, %v3235_v48 }
0x2468   :  { %v3236_v57 = vadd.f32 %v3234_v55, %v3230_v49 }
0x246a   :  { %3238 = vst.msk [vmem:[#allocation2 + $0x8] sm:$0xff] %vm155_vm1, %v3236_v57 }
0x246b   :  { %3932 = shalt.err (!%p3929_p4)
}
0x246c   :  { %s3933_s29 = scalar_lea.hbm %s4727_s13, 256 }
0x246d   :  { %p3934_p5 = scmp.ne.s32.totalorder %s4727_s13, %s3933_s29  ;;  %p3937_p6 = scmp.lt.u32.totalorder %s3933_s29, %s4727_s13 }
0x246f   :  { %p3939_p7 = pnand %p3937_p6, %p3934_p5 }
0x2471   :  { %3942 = shalt.err (!%p3939_p7)
}
0x2472   :  { %s3960_s6 = smov 128   ;;  %s3961_s23 = smov 8  }
0x2473   :  { %3250 = dma.vmem_to_hbm [thread:$0]  %s3245_s1, 256, %s4727_s13, [#allocation3], %s3960_s6, %s3960_s6, %s3961_s23  }
0x2474   :  { %3943 = dma.done.wait [#allocation3], 256  }
0x2475   :  { %3944 = vsyncadd [#allocation3], 4294967040 }
0x2476   :  { %3254 = vsyncpa [#allocation3], 1 }

</bundles_post_ra>
